<compile_context>
chip_gen: v6e
topology: v6e:2x2x1
jax: 0.10.0
libtpu: 0.0.40
codegen_flags: <defaults>
</compile_context>

<pallas_src>
import functools

import jax
import jax.numpy as jnp
from jax.experimental import pallas as pl
from jax.experimental.pallas import tpu as pltpu


def _timestep_embedding(t, dim, max_period=10000.0):
    half = dim // 2
    freqs = jnp.exp(
        -jnp.log(max_period) * jnp.arange(half, dtype=jnp.float32) / half
    )
    args = t.astype(jnp.float32)[:, None] * freqs[None, :]
    return jnp.concatenate([jnp.cos(args), jnp.sin(args)], axis=-1)


def denoiser_kernel(qa_ref, qs_ref, tgt_ref, nz_ref, win_ref, bin_ref,
                    shift_ref, scale_ref, gate_ref, w1_ref, b1_ref,
                    w2_ref, b2_ref, fshift_ref, fscale_ref, wout_ref,
                    bout_ref, loss_ref, h_ref, hn_ref, v_ref,
                    *, BB, N, C, W):
    """Grid = (num_batch_blocks, depth, hid_chunks).

    qa/qs    : (BB, 1, C) f32      sqrt(acp[t]) / sqrt(1-acp[t]) per sample
    tgt/nz   : (BB, N, C) f32      target / noise tokens (resident across d, c)
    win/bin  : (C, W) bf16 / (1, W) f32
    shift/scale/gate : (1, BB, 1, W) f32   per-block AdaLN modulation
    w1/b1    : (1, W, HC) bf16 / (1, 1, HC) f32     hidden chunk HC
    w2/b2    : (1, HC, W) bf16 / (1, 1, W) f32
    fshift/fscale : (BB, 1, W) f32
    wout/bout: (W, C) bf16 / (1, C) f32
    loss_ref : (1, BB, 128) f32    per-sample mean MSE (lane-broadcast), written once
    h_ref    : VMEM (BB, N, W) f32       persistent activations across depth
    hn_ref   : VMEM (BB*N, W) bf16       LN+modulated MLP input (per depth step)
    v_ref    : VMEM (BB*N, W) f32        second-matmul accumulator over hid chunks
    """
    d = pl.program_id(1)
    c = pl.program_id(2)
    last_d = pl.num_programs(1) - 1
    last_c = pl.num_programs(2) - 1

    # ---- first step of a batch block: q_sample + input projection ----
    @pl.when((d == 0) & (c == 0))
    def _init():
        x_t = qa_ref[...] * tgt_ref[...] + qs_ref[...] * nz_ref[...]   # (BB, N, C)
        h = (jnp.dot(x_t.reshape(BB * N, C).astype(jnp.bfloat16), win_ref[...],
                     preferred_element_type=jnp.float32) + bin_ref[...])
        h_ref[...] = h.reshape(BB, N, W)

    # ---- once per depth step: fused LN (E[x], E[x^2]) + AdaLN modulate; zero v ----
    @pl.when(c == 0)
    def _prologue():
        h = h_ref[...]                                                 # (BB, N, W)
        mu = jnp.mean(h, axis=-1, keepdims=True)
        ex2 = jnp.mean(h * h, axis=-1, keepdims=True)
        var = jnp.maximum(ex2 - mu * mu, 0.0)
        hn = (h - mu) * jax.lax.rsqrt(var + 1e-6)
        hn = hn * (1.0 + scale_ref[0]) + shift_ref[0]                  # (BB,1,W) bcast
        hn_ref[...] = hn.reshape(BB * N, W).astype(jnp.bfloat16)
        v_ref[...] = jnp.zeros_like(v_ref)

    # ---- one hidden chunk: matmul pair with fused bias+SiLU, bf16 into 2nd dot ----
    u = (jnp.dot(hn_ref[...], w1_ref[0], preferred_element_type=jnp.float32)
         + b1_ref[0])
    u = (u * jax.nn.sigmoid(u)).astype(jnp.bfloat16)                   # SiLU -> bf16
    v_ref[...] += jnp.dot(u, w2_ref[0], preferred_element_type=jnp.float32)

    # ---- last chunk of a block: gated residual update ----
    @pl.when(c == last_c)
    def _residual():
        v = v_ref[...].reshape(BB, N, W) + b2_ref[...]                 # (+ (1,1,W))
        h_ref[...] = h_ref[...] + gate_ref[0] * v

    # ---- last chunk of last block: final LN + output projection + per-sample MSE ----
    @pl.when((d == last_d) & (c == last_c))
    def _final():
        h = h_ref[...]
        mu = jnp.mean(h, axis=-1, keepdims=True)
        ex2 = jnp.mean(h * h, axis=-1, keepdims=True)
        var = jnp.maximum(ex2 - mu * mu, 0.0)
        hn = (h - mu) * jax.lax.rsqrt(var + 1e-6)
        hm = hn * (1.0 + fscale_ref[...]) + fshift_ref[...]            # (BB,1,W) bcast
        eps = (jnp.dot(hm.reshape(BB * N, W).astype(jnp.bfloat16), wout_ref[...],
                       preferred_element_type=jnp.float32) + bout_ref[...])
        diff = eps.reshape(BB, N, C) - nz_ref[...]                     # (BB, N, C)
        sq = diff * diff
        per = jnp.sum(jnp.sum(sq, axis=2, keepdims=True), axis=1)      # (BB, 1)
        loss_ref[0] = jnp.broadcast_to(per * (1.0 / float(N * C)), (BB, 128))


def make_params(key, *, in_channels, width, depth, mlp_ratio, z_channels,
                num_classes, t_emb_dim):
    ks = jax.random.split(key, 10)
    hid = width * mlp_ratio
    scale = 0.02
    p = {}
    p["cls_table"] = scale * jax.random.normal(ks[0], (num_classes, z_channels), jnp.float32)
    p["w_t"] = scale * jax.random.normal(ks[1], (t_emb_dim, width), jnp.float32)
    p["b_t"] = jnp.zeros((width,), jnp.float32)
    p["w_c"] = scale * jax.random.normal(ks[2], (z_channels, width), jnp.float32)
    p["b_c"] = jnp.zeros((width,), jnp.float32)
    p["w_in"] = scale * jax.random.normal(ks[3], (in_channels, width), jnp.float32)
    p["b_in"] = jnp.zeros((1, width), jnp.float32)
    p["w_mod"] = scale * jax.random.normal(ks[4], (depth, width, 3 * width), jnp.float32)
    p["b_mod"] = jnp.zeros((depth, 3 * width), jnp.float32)
    p["w1"] = scale * jax.random.normal(ks[5], (depth, width, hid), jnp.float32)
    p["b1"] = jnp.zeros((depth, 1, hid), jnp.float32)
    p["w2"] = scale * jax.random.normal(ks[6], (depth, hid, width), jnp.float32)
    p["b2"] = jnp.zeros((depth, 1, width), jnp.float32)
    p["w_fmod"] = scale * jax.random.normal(ks[7], (width, 2 * width), jnp.float32)
    p["b_fmod"] = jnp.zeros((2 * width,), jnp.float32)
    p["w_out"] = scale * jax.random.normal(ks[8], (width, in_channels), jnp.float32)
    p["b_out"] = jnp.zeros((1, in_channels), jnp.float32)
    return p


def _pick_hid_chunk(hid, max_chunk=512):
    """Largest 128-multiple divisor of hid that is <= max_chunk (or hid itself)."""
    if hid <= max_chunk:
        return hid
    for cand in range(max_chunk, 127, -128):
        if hid % cand == 0:
            return cand
    return hid


def _vmem_limit_bytes(BB, N, C, width, HC):
    """Per-step VMEM budget with headroom; capped below physical VMEM of this chip."""
    f32, bf16 = 4, 2
    lane = 128
    c_pad = max(C, lane)
    tok = 2 * 2 * BB * N * c_pad * f32                        # tgt+nz, double-buffered, lane-padded
    scr = BB * N * width * (2 * f32 + bf16)                   # h + v + hn scratches
    wts = 2 * ((width * HC + HC * width) * bf16 + (HC + width) * f32)   # chunk weights, 2 buffers
    mods = 2 * 5 * BB * 8 * max(width, lane) * f32            # shift/scale/gate/fshift/fscale
    proj = 2 * width * c_pad * bf16 + (width + c_pad) * f32   # in/out projections
    act = BB * N * HC * (f32 + bf16)                          # transient SiLU slab
    est = tok + scr + wts + mods + proj + act
    try:
        cap = pltpu.get_tpu_info().vmem_capacity_bytes        # 64 MiB v7x, 128 MiB v5e/v6e
    except Exception:
        cap = 64 * 1024 * 1024
    cap = int(cap * 0.80)                                     # leave Mosaic internal-scratch headroom
    return int(min(max(2 * est, 32 * 1024 * 1024), cap))


def denoiser_forward(params, target, cls_label, rng, *, depth, width, mlp_ratio,
                     num_timesteps=1000, batch_block=None, max_hid_chunk=512):
    B, C, H, Wsp = target.shape
    N = H * Wsp
    assert N % 8 == 0, "token count must be a multiple of 8 (sublane tiling)"
    hid = width * mlp_ratio

    # batch block: guarantee >=2 batch-grid steps for small batches (v7x megacore);
    # on v5e/v6e (128 MiB VMEM) pass batch_block=16..32 to raise the MXU M-dim.
    if batch_block is not None:
        BB = min(batch_block, B)
    elif B <= 16:
        BB = max(1, -(-B // 2))
    else:
        BB = 8
    nb = -(-B // BB)
    Bp = nb * BB

    HC = _pick_hid_chunk(hid, max_hid_chunk)
    n_hc = hid // HC

    # ---- glue (plain JAX): randomness, embedding lookup, conditioning ----
    k_t, k_n = jax.random.split(rng)
    t = jax.random.randint(k_t, (B,), 0, num_timesteps)                 # torch.randint
    noise = jax.random.normal(k_n, target.shape, jnp.float32)
    cls_emb = jnp.take(params["cls_table"], cls_label, axis=0)          # nn.Embedding

    # linear beta schedule; endpoints scaled by 1000/T as in the reference diffusion
    sc = 1000.0 / float(num_timesteps)
    betas = jnp.linspace(sc * 1e-4, sc * 0.02, num_timesteps, dtype=jnp.float32)
    acp = jnp.cumprod(1.0 - betas)
    sqrt_a = jnp.sqrt(acp)[t]                                           # (B,)
    sqrt_s = jnp.sqrt(1.0 - acp)[t]                                     # (B,)

    # conditioning vector and per-block AdaLN modulation (tiny matmuls, glue)
    t_emb = _timestep_embedding(t, width)
    cond = jax.nn.silu(t_emb @ params["w_t"] + params["b_t"]
                       + cls_emb @ params["w_c"] + params["b_c"])       # (B, W)
    mod = jnp.einsum("bw,dwk->bdk", cond, params["w_mod"]) + params["b_mod"]
    mod = mod.reshape(B, depth, 3, width)                               # (B, depth, 3, W)
    fmod = (cond @ params["w_fmod"] + params["b_fmod"]).reshape(B, 2, width)

    # tokens: NCHW -> (B, N, C)
    tgt_tok = jnp.transpose(target, (0, 2, 3, 1)).reshape(B, N, C)
    nz_tok = jnp.transpose(noise, (0, 2, 3, 1)).reshape(B, N, C)

    if Bp != B:   # pad batch to a multiple of the batch block (masked out of the loss)
        pad = Bp - B
        tgt_tok = jnp.pad(tgt_tok, ((0, pad), (0, 0), (0, 0)))
        nz_tok = jnp.pad(nz_tok, ((0, pad), (0, 0), (0, 0)))
        sqrt_a = jnp.pad(sqrt_a, ((0, pad),))
        sqrt_s = jnp.pad(sqrt_s, ((0, pad),))
        mod = jnp.pad(mod, ((0, pad), (0, 0), (0, 0), (0, 0)))
        fmod = jnp.pad(fmod, ((0, pad), (0, 0), (0, 0)))

    # q_sample coefficients as (Bp,1,C) VMEM tiles -> plain (BB,1,C)x(BB,N,C) broadcast
    qa = jnp.broadcast_to(sqrt_a[:, None, None], (Bp, 1, C)).astype(jnp.float32)
    qs = jnp.broadcast_to(sqrt_s[:, None, None], (Bp, 1, C)).astype(jnp.float32)

    # AdaLN modulation laid out as (depth, Bp, 1, W) so in-kernel reads are (BB,1,W)
    mod_t = jnp.transpose(mod, (2, 1, 0, 3))           # (3, depth, Bp, W)
    shift_all = mod_t[0][:, :, None, :]                # (depth, Bp, 1, W)
    scale_all = mod_t[1][:, :, None, :]
    gate_all = mod_t[2][:, :, None, :]
    fmod_t = jnp.transpose(fmod, (1, 0, 2))            # (2, Bp, W)
    fshift = fmod_t[0][:, None, :]                     # (Bp, 1, W)
    fscale = fmod_t[1][:, None, :]

    # bf16 weights for the MXU; biases / LN math / accumulation stay fp32
    w_in = params["w_in"].astype(jnp.bfloat16)
    w1 = params["w1"].astype(jnp.bfloat16)
    w2 = params["w2"].astype(jnp.bfloat16)
    w_out = params["w_out"].astype(jnp.bfloat16)

    kernel = functools.partial(denoiser_kernel, BB=BB, N=N, C=C, W=width)

    losses = pl.pallas_call(
        kernel,
        out_shape=jax.ShapeDtypeStruct((nb, BB, 128), jnp.float32),
        grid_spec=pltpu.PrefetchScalarGridSpec(
            num_scalar_prefetch=0,
            grid=(nb, depth, n_hc),
            in_specs=[
                pl.BlockSpec((BB, 1, C), lambda b, d, c: (b, 0, 0)),            # qa
                pl.BlockSpec((BB, 1, C), lambda b, d, c: (b, 0, 0)),            # qs
                pl.BlockSpec((BB, N, C), lambda b, d, c: (b, 0, 0)),            # target tokens
                pl.BlockSpec((BB, N, C), lambda b, d, c: (b, 0, 0)),            # noise tokens
                pl.BlockSpec((C, width), lambda b, d, c: (0, 0)),               # w_in (bf16)
                pl.BlockSpec((1, width), lambda b, d, c: (0, 0)),               # b_in
                pl.BlockSpec((1, BB, 1, width), lambda b, d, c: (d, b, 0, 0)),  # shift[d]
                pl.BlockSpec((1, BB, 1, width), lambda b, d, c: (d, b, 0, 0)),  # scale[d]
                pl.BlockSpec((1, BB, 1, width), lambda b, d, c: (d, b, 0, 0)),  # gate[d]
                pl.BlockSpec((1, width, HC), lambda b, d, c: (d, 0, c)),        # w1[d] chunk c
                pl.BlockSpec((1, 1, HC), lambda b, d, c: (d, 0, c)),            # b1[d] chunk c
                pl.BlockSpec((1, HC, width), lambda b, d, c: (d, c, 0)),        # w2[d] chunk c
                pl.BlockSpec((1, 1, width), lambda b, d, c: (d, 0, 0)),         # b2[d]
                pl.BlockSpec((BB, 1, width), lambda b, d, c: (b, 0, 0)),        # final shift
                pl.BlockSpec((BB, 1, width), lambda b, d, c: (b, 0, 0)),        # final scale
                pl.BlockSpec((width, C), lambda b, d, c: (0, 0)),               # w_out (bf16)
                pl.BlockSpec((1, C), lambda b, d, c: (0, 0)),                   # b_out
            ],
            out_specs=pl.BlockSpec((1, BB, 128), lambda b, d, c: (b, 0, 0)),
            scratch_shapes=[
                pltpu.VMEM((BB, N, width), jnp.float32),       # persistent h
                pltpu.VMEM((BB * N, width), jnp.bfloat16),     # LN+modulated MLP input
                pltpu.VMEM((BB * N, width), jnp.float32),      # v accumulator
            ]),
        compiler_params=pltpu.CompilerParams(
            dimension_semantics=("parallel", "arbitrary", "arbitrary"),
            vmem_limit_bytes=_vmem_limit_bytes(BB, N, C, width, HC)),
    )(qa, qs, tgt_tok, nz_tok, w_in, params["b_in"], shift_all, scale_all,
      gate_all, w1, params["b1"], w2, params["b2"], fshift, fscale,
      w_out, params["b_out"])

    # loss.mean() over the real (unpadded) batch; column 0 carries the per-sample loss
    return jnp.mean(losses[..., 0].reshape(Bp)[:B])


if __name__ == "__main__":
    # small shapes consistent with the module's forward
    B, C, H, W = 2, 4, 16, 16
    width, depth, mlp_ratio = 32, 2, 4
    z_channels, num_classes = 32, 10

    key = jax.random.PRNGKey(0)
    k_p, k_x, k_y, k_fwd = jax.random.split(key, 4)

    params = make_params(k_p, in_channels=C, width=width, depth=depth,
                         mlp_ratio=mlp_ratio, z_channels=z_channels,
                         num_classes=num_classes, t_emb_dim=width)
    target = jax.random.normal(k_x, (B, C, H, W), jnp.float32)
    cls_label = jax.random.randint(k_y, (B,), 0, num_classes)

    fwd = jax.jit(functools.partial(denoiser_forward, depth=depth,
                                    width=width, mlp_ratio=mlp_ratio))
    loss = fwd(params, target, cls_label, k_fwd)
    jax.block_until_ready(loss)
    assert loss.shape == () and bool(jnp.isfinite(loss))
    print("KERNEL_OK")
</pallas_src>

<mosaic_0001>
module attributes {stable_mosaic.version = 11 : i64} {
  func.func @denoiser_kernel(%arg0: i32, %arg1: i32, %arg2: i32, %arg3: memref<1x1x4xf32, #tpu.memory_space<vmem>>, %arg4: memref<1x1x4xf32, #tpu.memory_space<vmem>>, %arg5: memref<1x256x4xf32, #tpu.memory_space<vmem>>, %arg6: memref<1x256x4xf32, #tpu.memory_space<vmem>>, %arg7: memref<4x32xbf16, #tpu.memory_space<vmem>>, %arg8: memref<1x32xf32, #tpu.memory_space<vmem>>, %arg9: memref<1x1x1x32xf32, #tpu.memory_space<vmem>>, %arg10: memref<1x1x1x32xf32, #tpu.memory_space<vmem>>, %arg11: memref<1x1x1x32xf32, #tpu.memory_space<vmem>>, %arg12: memref<1x32x128xbf16, #tpu.memory_space<vmem>>, %arg13: memref<1x1x128xf32, #tpu.memory_space<vmem>>, %arg14: memref<1x128x32xbf16, #tpu.memory_space<vmem>>, %arg15: memref<1x1x32xf32, #tpu.memory_space<vmem>>, %arg16: memref<1x1x32xf32, #tpu.memory_space<vmem>>, %arg17: memref<1x1x32xf32, #tpu.memory_space<vmem>>, %arg18: memref<32x4xbf16, #tpu.memory_space<vmem>>, %arg19: memref<1x4xf32, #tpu.memory_space<vmem>>, %arg20: memref<1x1x128xf32, #tpu.memory_space<vmem>>, %arg21: memref<1x256x32xf32, #tpu.memory_space<vmem>>, %arg22: memref<256x32xbf16, #tpu.memory_space<vmem>>, %arg23: memref<256x32xf32, #tpu.memory_space<vmem>>) attributes {dimension_semantics = [#tpu.dimension_semantics<parallel>, #tpu.dimension_semantics<arbitrary>, #tpu.dimension_semantics<arbitrary>], iteration_bounds = array<i64: 2, 2, 1>, scalar_prefetch = 0 : i64, scratch_operands = 3 : i64, tpu.core_type = #tpu.core_type<tc>, window_params = [{transform_indices = @transform_0, window_bounds = array<i64: 1, 1, 4>}, {transform_indices = @transform_1, window_bounds = array<i64: 1, 1, 4>}, {transform_indices = @transform_2, window_bounds = array<i64: 1, 256, 4>}, {transform_indices = @transform_3, window_bounds = array<i64: 1, 256, 4>}, {pipeline_mode = #tpu.pipeline_mode<synchronous>, transform_indices = @transform_4, window_bounds = array<i64: 4, 32>}, {pipeline_mode = #tpu.pipeline_mode<synchronous>, transform_indices = @transform_5, window_bounds = array<i64: 1, 32>}, {transform_indices = @transform_6, window_bounds = array<i64: 1, 1, 1, 32>}, {transform_indices = @transform_7, window_bounds = array<i64: 1, 1, 1, 32>}, {transform_indices = @transform_8, window_bounds = array<i64: 1, 1, 1, 32>}, {transform_indices = @transform_9, window_bounds = array<i64: 1, 32, 128>}, {transform_indices = @transform_10, window_bounds = array<i64: 1, 1, 128>}, {transform_indices = @transform_11, window_bounds = array<i64: 1, 128, 32>}, {transform_indices = @transform_12, window_bounds = array<i64: 1, 1, 32>}, {transform_indices = @transform_13, window_bounds = array<i64: 1, 1, 32>}, {transform_indices = @transform_14, window_bounds = array<i64: 1, 1, 32>}, {pipeline_mode = #tpu.pipeline_mode<synchronous>, transform_indices = @transform_15, window_bounds = array<i64: 32, 4>}, {pipeline_mode = #tpu.pipeline_mode<synchronous>, transform_indices = @transform_16, window_bounds = array<i64: 1, 4>}, {transform_indices = @transform_17, window_bounds = array<i64: 1, 1, 128>}]} {
    %c0_i32 = arith.constant 0 : i32
    %0 = arith.cmpi eq, %arg1, %c0_i32 : i32
    %c0_i32_0 = arith.constant 0 : i32
    %1 = arith.cmpi eq, %arg2, %c0_i32_0 : i32
    %2 = arith.andi %0, %1 : i1
    %3 = arith.extui %2 : i1 to i32
    %c0_i32_1 = arith.constant 0 : i32
    %4 = arith.cmpi ne, %3, %c0_i32_1 : i32
    scf.if %4 {
      %c0_24 = arith.constant 0 : index
      %c0_25 = arith.constant 0 : index
      %c0_26 = arith.constant 0 : index
      %37 = vector.load %arg3[%c0_24, %c0_25, %c0_26] : memref<1x1x4xf32, #tpu.memory_space<vmem>>, vector<1x1x4xf32>
      %c0_27 = arith.constant 0 : index
      %c0_28 = arith.constant 0 : index
      %c0_29 = arith.constant 0 : index
      %38 = vector.load %arg5[%c0_27, %c0_28, %c0_29] : memref<1x256x4xf32, #tpu.memory_space<vmem>>, vector<1x256x4xf32>
      %39 = vector.broadcast %37 : vector<1x1x4xf32> to vector<1x256x4xf32>
      %40 = arith.mulf %39, %38 : vector<1x256x4xf32>
      %c0_30 = arith.constant 0 : index
      %c0_31 = arith.constant 0 : index
      %c0_32 = arith.constant 0 : index
      %41 = vector.load %arg4[%c0_30, %c0_31, %c0_32] : memref<1x1x4xf32, #tpu.memory_space<vmem>>, vector<1x1x4xf32>
      %c0_33 = arith.constant 0 : index
      %c0_34 = arith.constant 0 : index
      %c0_35 = arith.constant 0 : index
      %42 = vector.load %arg6[%c0_33, %c0_34, %c0_35] : memref<1x256x4xf32, #tpu.memory_space<vmem>>, vector<1x256x4xf32>
      %43 = vector.broadcast %41 : vector<1x1x4xf32> to vector<1x256x4xf32>
      %44 = arith.mulf %43, %42 : vector<1x256x4xf32>
      %45 = arith.addf %40, %44 : vector<1x256x4xf32>
      %46 = vector.shape_cast %45 : vector<1x256x4xf32> to vector<256x4xf32>
      %47 = arith.truncf %46 : vector<256x4xf32> to vector<256x4xbf16>
      %c0_36 = arith.constant 0 : index
      %c0_37 = arith.constant 0 : index
      %48 = vector.load %arg7[%c0_36, %c0_37] : memref<4x32xbf16, #tpu.memory_space<vmem>>, vector<4x32xbf16>
      %cst_38 = arith.constant dense<0.000000e+00> : vector<256x32xf32>
      %49 = tpu.matmul %47, %48, %cst_38 {dimension_numbers = #tpu.dot_dimension_numbers<[1], [0], [0], [1], [0, 0, 1, 1], [], []>} : vector<256x4xbf16>, vector<4x32xbf16>, vector<256x32xf32> -> vector<256x32xf32>
      %c0_39 = arith.constant 0 : index
      %c0_40 = arith.constant 0 : index
      %50 = vector.load %arg8[%c0_39, %c0_40] : memref<1x32xf32, #tpu.memory_space<vmem>>, vector<1x32xf32>
      %51 = vector.broadcast %50 : vector<1x32xf32> to vector<256x32xf32>
      %52 = arith.addf %49, %51 : vector<256x32xf32>
      %53 = vector.shape_cast %52 : vector<256x32xf32> to vector<1x256x32xf32>
      %c0_41 = arith.constant 0 : index
      %c0_42 = arith.constant 0 : index
      %c0_43 = arith.constant 0 : index
      %54 = vector.load %arg21[%c0_41, %c0_42, %c0_43] : memref<1x256x32xf32, #tpu.memory_space<vmem>>, vector<1x256x32xf32>
      tpu.vector_store %arg21[%c0_41, %c0_42, %c0_43], %53 {strides = array<i32>} : memref<1x256x32xf32, #tpu.memory_space<vmem>>, vector<1x256x32xf32>,
    } else {
    }
    %c0_i32_2 = arith.constant 0 : i32
    %5 = arith.cmpi eq, %arg2, %c0_i32_2 : i32
    %6 = arith.extui %5 : i1 to i32
    %c0_i32_3 = arith.constant 0 : i32
    %7 = arith.cmpi ne, %6, %c0_i32_3 : i32
    scf.if %7 {
      %c0_24 = arith.constant 0 : index
      %c0_25 = arith.constant 0 : index
      %c0_26 = arith.constant 0 : index
      %37 = vector.load %arg21[%c0_24, %c0_25, %c0_26] : memref<1x256x32xf32, #tpu.memory_space<vmem>>, vector<1x256x32xf32>
      %cst_27 = arith.constant dense<0.000000e+00> : vector<1x256xf32>
      %38 = vector.multi_reduction <add>, %37, %cst_27 [2] : vector<1x256x32xf32> to vector<1x256xf32>
      %39 = vector.shape_cast %38 : vector<1x256xf32> to vector<1x256x1xf32>
      %cst_28 = arith.constant 3.200000e+01 : f32
      %40 = vector.broadcast %cst_28 : f32 to vector<1x256x1xf32>
      %41 = arith.divf %39, %40 : vector<1x256x1xf32>
      %42 = arith.mulf %37, %37 : vector<1x256x32xf32>
      %cst_29 = arith.constant dense<0.000000e+00> : vector<1x256xf32>
      %43 = vector.multi_reduction <add>, %42, %cst_29 [2] : vector<1x256x32xf32> to vector<1x256xf32>
      %44 = vector.shape_cast %43 : vector<1x256xf32> to vector<1x256x1xf32>
      %cst_30 = arith.constant 3.200000e+01 : f32
      %45 = vector.broadcast %cst_30 : f32 to vector<1x256x1xf32>
      %46 = arith.divf %44, %45 : vector<1x256x1xf32>
      %47 = arith.mulf %41, %41 : vector<1x256x1xf32>
      %48 = arith.subf %46, %47 : vector<1x256x1xf32>
      %cst_31 = arith.constant 0.000000e+00 : f32
      %49 = vector.broadcast %cst_31 : f32 to vector<1x256x1xf32>
      %50 = arith.maximumf %48, %49 : vector<1x256x1xf32>
      %51 = vector.broadcast %41 : vector<1x256x1xf32> to vector<1x256x32xf32>
      %52 = arith.subf %37, %51 : vector<1x256x32xf32>
      %cst_32 = arith.constant 9.99999997E-7 : f32
      %53 = vector.broadcast %cst_32 : f32 to vector<1x256x1xf32>
      %54 = arith.addf %50, %53 : vector<1x256x1xf32>
      %55 = math.rsqrt %54 : vector<1x256x1xf32>
      %56 = vector.broadcast %55 : vector<1x256x1xf32> to vector<1x256x32xf32>
      %57 = arith.mulf %52, %56 : vector<1x256x32xf32>
      %c0_33 = arith.constant 0 : index
      %c0_34 = arith.constant 0 : index
      %c0_35 = arith.constant 0 : index
      %c0_36 = arith.constant 0 : index
      %58 = vector.load %arg10[%c0_33, %c0_34, %c0_35, %c0_36] : memref<1x1x1x32xf32, #tpu.memory_space<vmem>>, vector<1x1x1x32xf32>
      %59 = vector.shape_cast %58 : vector<1x1x1x32xf32> to vector<1x1x32xf32>
      %cst_37 = arith.constant 1.000000e+00 : f32
      %60 = vector.broadcast %cst_37 : f32 to vector<1x1x32xf32>
      %61 = arith.addf %60, %59 : vector<1x1x32xf32>
      %62 = vector.broadcast %61 : vector<1x1x32xf32> to vector<1x256x32xf32>
      %63 = arith.mulf %57, %62 : vector<1x256x32xf32>
      %c0_38 = arith.constant 0 : index
      %c0_39 = arith.constant 0 : index
      %c0_40 = arith.constant 0 : index
      %c0_41 = arith.constant 0 : index
      %64 = vector.load %arg9[%c0_38, %c0_39, %c0_40, %c0_41] : memref<1x1x1x32xf32, #tpu.memory_space<vmem>>, vector<1x1x1x32xf32>
      %65 = vector.shape_cast %64 : vector<1x1x1x32xf32> to vector<1x1x32xf32>
      %66 = vector.broadcast %65 : vector<1x1x32xf32> to vector<1x256x32xf32>
      %67 = arith.addf %63, %66 : vector<1x256x32xf32>
      %68 = vector.shape_cast %67 : vector<1x256x32xf32> to vector<256x32xf32>
      %69 = arith.truncf %68 : vector<256x32xf32> to vector<256x32xbf16>
      %c0_42 = arith.constant 0 : index
      %c0_43 = arith.constant 0 : index
      %70 = vector.load %arg22[%c0_42, %c0_43] : memref<256x32xbf16, #tpu.memory_space<vmem>>, vector<256x32xbf16>
      tpu.vector_store %arg22[%c0_42, %c0_43], %69 {strides = array<i32>} : memref<256x32xbf16, #tpu.memory_space<vmem>>, vector<256x32xbf16>,
      %cst_44 = arith.constant 0.000000e+00 : f32
      %71 = vector.broadcast %cst_44 : f32 to vector<256x32xf32>
      %c0_45 = arith.constant 0 : index
      %c0_46 = arith.constant 0 : index
      %72 = vector.load %arg23[%c0_45, %c0_46] : memref<256x32xf32, #tpu.memory_space<vmem>>, vector<256x32xf32>
      tpu.vector_store %arg23[%c0_45, %c0_46], %71 {strides = array<i32>} : memref<256x32xf32, #tpu.memory_space<vmem>>, vector<256x32xf32>,
    } else {
    }
    %c0 = arith.constant 0 : index
    %c0_4 = arith.constant 0 : index
    %8 = vector.load %arg22[%c0, %c0_4] : memref<256x32xbf16, #tpu.memory_space<vmem>>, vector<256x32xbf16>
    %c0_5 = arith.constant 0 : index
    %c0_6 = arith.constant 0 : index
    %c0_7 = arith.constant 0 : index
    %9 = vector.load %arg12[%c0_5, %c0_6, %c0_7] : memref<1x32x128xbf16, #tpu.memory_space<vmem>>, vector<1x32x128xbf16>
    %10 = vector.shape_cast %9 : vector<1x32x128xbf16> to vector<32x128xbf16>
    %cst = arith.constant dense<0.000000e+00> : vector<256x128xf32>
    %11 = tpu.matmul %8, %10, %cst {dimension_numbers = #tpu.dot_dimension_numbers<[1], [0], [0], [1], [0, 0, 1, 1], [], []>} : vector<256x32xbf16>, vector<32x128xbf16>, vector<256x128xf32> -> vector<256x128xf32>
    %c0_8 = arith.constant 0 : index
    %c0_9 = arith.constant 0 : index
    %c0_10 = arith.constant 0 : index
    %12 = vector.load %arg13[%c0_8, %c0_9, %c0_10] : memref<1x1x128xf32, #tpu.memory_space<vmem>>, vector<1x1x128xf32>
    %13 = vector.shape_cast %12 : vector<1x1x128xf32> to vector<1x128xf32>
    %14 = vector.broadcast %13 : vector<1x128xf32> to vector<256x128xf32>
    %15 = arith.addf %11, %14 : vector<256x128xf32>
    %16 = arith.negf %15 : vector<256x128xf32>
    %17 = math.exp %16 : vector<256x128xf32>
    %cst_11 = arith.constant 1.000000e+00 : f32
    %18 = vector.broadcast %cst_11 : f32 to vector<256x128xf32>
    %19 = arith.addf %18, %17 : vector<256x128xf32>
    %20 = arith.divf %18, %19 : vector<256x128xf32>
    %21 = arith.mulf %15, %20 : vector<256x128xf32>
    %22 = arith.truncf %21 : vector<256x128xf32> to vector<256x128xbf16>
    %c0_12 = arith.constant 0 : index
    %c0_13 = arith.constant 0 : index
    %23 = vector.load %arg23[%c0_12, %c0_13] : memref<256x32xf32, #tpu.memory_space<vmem>>, vector<256x32xf32>
    %c0_14 = arith.constant 0 : index
    %c0_15 = arith.constant 0 : index
    %c0_16 = arith.constant 0 : index
    %24 = vector.load %arg14[%c0_14, %c0_15, %c0_16] : memref<1x128x32xbf16, #tpu.memory_space<vmem>>, vector<1x128x32xbf16>
    %25 = vector.shape_cast %24 : vector<1x128x32xbf16> to vector<128x32xbf16>
    %cst_17 = arith.constant dense<0.000000e+00> : vector<256x32xf32>
    %26 = tpu.matmul %22, %25, %cst_17 {dimension_numbers = #tpu.dot_dimension_numbers<[1], [0], [0], [1], [0, 0, 1, 1], [], []>} : vector<256x128xbf16>, vector<128x32xbf16>, vector<256x32xf32> -> vector<256x32xf32>
    %27 = arith.addf %23, %26 : vector<256x32xf32>
    %c0_18 = arith.constant 0 : index
    %c0_19 = arith.constant 0 : index
    %28 = vector.load %arg23[%c0_18, %c0_19] : memref<256x32xf32, #tpu.memory_space<vmem>>, vector<256x32xf32>
    tpu.vector_store %arg23[%c0_18, %c0_19], %27 {strides = array<i32>} : memref<256x32xf32, #tpu.memory_space<vmem>>, vector<256x32xf32>,
    %c0_i32_20 = arith.constant 0 : i32
    %29 = arith.cmpi eq, %arg2, %c0_i32_20 : i32
    %30 = arith.extui %29 : i1 to i32
    %c0_i32_21 = arith.constant 0 : i32
    %31 = arith.cmpi ne, %30, %c0_i32_21 : i32
    scf.if %31 {
      %c0_24 = arith.constant 0 : index
      %c0_25 = arith.constant 0 : index
      %37 = vector.load %arg23[%c0_24, %c0_25] : memref<256x32xf32, #tpu.memory_space<vmem>>, vector<256x32xf32>
      %38 = vector.shape_cast %37 : vector<256x32xf32> to vector<1x256x32xf32>
      %c0_26 = arith.constant 0 : index
      %c0_27 = arith.constant 0 : index
      %c0_28 = arith.constant 0 : index
      %39 = vector.load %arg15[%c0_26, %c0_27, %c0_28] : memref<1x1x32xf32, #tpu.memory_space<vmem>>, vector<1x1x32xf32>
      %40 = vector.broadcast %39 : vector<1x1x32xf32> to vector<1x256x32xf32>
      %41 = arith.addf %38, %40 : vector<1x256x32xf32>
      %c0_29 = arith.constant 0 : index
      %c0_30 = arith.constant 0 : index
      %c0_31 = arith.constant 0 : index
      %42 = vector.load %arg21[%c0_29, %c0_30, %c0_31] : memref<1x256x32xf32, #tpu.memory_space<vmem>>, vector<1x256x32xf32>
      %c0_32 = arith.constant 0 : index
      %c0_33 = arith.constant 0 : index
      %c0_34 = arith.constant 0 : index
      %c0_35 = arith.constant 0 : index
      %43 = vector.load %arg11[%c0_32, %c0_33, %c0_34, %c0_35] : memref<1x1x1x32xf32, #tpu.memory_space<vmem>>, vector<1x1x1x32xf32>
      %44 = vector.shape_cast %43 : vector<1x1x1x32xf32> to vector<1x1x32xf32>
      %45 = vector.broadcast %44 : vector<1x1x32xf32> to vector<1x256x32xf32>
      %46 = arith.mulf %45, %41 : vector<1x256x32xf32>
      %47 = arith.addf %42, %46 : vector<1x256x32xf32>
      %c0_36 = arith.constant 0 : index
      %c0_37 = arith.constant 0 : index
      %c0_38 = arith.constant 0 : index
      %48 = vector.load %arg21[%c0_36, %c0_37, %c0_38] : memref<1x256x32xf32, #tpu.memory_space<vmem>>, vector<1x256x32xf32>
      tpu.vector_store %arg21[%c0_36, %c0_37, %c0_38], %47 {strides = array<i32>} : memref<1x256x32xf32, #tpu.memory_space<vmem>>, vector<1x256x32xf32>,
    } else {
    }
    %c1_i32 = arith.constant 1 : i32
    %32 = arith.cmpi eq, %arg1, %c1_i32 : i32
    %c0_i32_22 = arith.constant 0 : i32
    %33 = arith.cmpi eq, %arg2, %c0_i32_22 : i32
    %34 = arith.andi %32, %33 : i1
    %35 = arith.extui %34 : i1 to i32
    %c0_i32_23 = arith.constant 0 : i32
    %36 = arith.cmpi ne, %35, %c0_i32_23 : i32
    scf.if %36 {
      %c0_24 = arith.constant 0 : index
      %c0_25 = arith.constant 0 : index
      %c0_26 = arith.constant 0 : index
      %37 = vector.load %arg21[%c0_24, %c0_25, %c0_26] : memref<1x256x32xf32, #tpu.memory_space<vmem>>, vector<1x256x32xf32>
      %cst_27 = arith.constant dense<0.000000e+00> : vector<1x256xf32>
      %38 = vector.multi_reduction <add>, %37, %cst_27 [2] : vector<1x256x32xf32> to vector<1x256xf32>
      %39 = vector.shape_cast %38 : vector<1x256xf32> to vector<1x256x1xf32>
      %cst_28 = arith.constant 3.200000e+01 : f32
      %40 = vector.broadcast %cst_28 : f32 to vector<1x256x1xf32>
      %41 = arith.divf %39, %40 : vector<1x256x1xf32>
      %42 = arith.mulf %37, %37 : vector<1x256x32xf32>
      %cst_29 = arith.constant dense<0.000000e+00> : vector<1x256xf32>
      %43 = vector.multi_reduction <add>, %42, %cst_29 [2] : vector<1x256x32xf32> to vector<1x256xf32>
      %44 = vector.shape_cast %43 : vector<1x256xf32> to vector<1x256x1xf32>
      %cst_30 = arith.constant 3.200000e+01 : f32
      %45 = vector.broadcast %cst_30 : f32 to vector<1x256x1xf32>
      %46 = arith.divf %44, %45 : vector<1x256x1xf32>
      %47 = arith.mulf %41, %41 : vector<1x256x1xf32>
      %48 = arith.subf %46, %47 : vector<1x256x1xf32>
      %cst_31 = arith.constant 0.000000e+00 : f32
      %49 = vector.broadcast %cst_31 : f32 to vector<1x256x1xf32>
      %50 = arith.maximumf %48, %49 : vector<1x256x1xf32>
      %51 = vector.broadcast %41 : vector<1x256x1xf32> to vector<1x256x32xf32>
      %52 = arith.subf %37, %51 : vector<1x256x32xf32>
      %cst_32 = arith.constant 9.99999997E-7 : f32
      %53 = vector.broadcast %cst_32 : f32 to vector<1x256x1xf32>
      %54 = arith.addf %50, %53 : vector<1x256x1xf32>
      %55 = math.rsqrt %54 : vector<1x256x1xf32>
      %56 = vector.broadcast %55 : vector<1x256x1xf32> to vector<1x256x32xf32>
      %57 = arith.mulf %52, %56 : vector<1x256x32xf32>
      %c0_33 = arith.constant 0 : index
      %c0_34 = arith.constant 0 : index
      %c0_35 = arith.constant 0 : index
      %58 = vector.load %arg17[%c0_33, %c0_34, %c0_35] : memref<1x1x32xf32, #tpu.memory_space<vmem>>, vector<1x1x32xf32>
      %cst_36 = arith.constant 1.000000e+00 : f32
      %59 = vector.broadcast %cst_36 : f32 to vector<1x1x32xf32>
      %60 = arith.addf %59, %58 : vector<1x1x32xf32>
      %61 = vector.broadcast %60 : vector<1x1x32xf32> to vector<1x256x32xf32>
      %62 = arith.mulf %57, %61 : vector<1x256x32xf32>
      %c0_37 = arith.constant 0 : index
      %c0_38 = arith.constant 0 : index
      %c0_39 = arith.constant 0 : index
      %63 = vector.load %arg16[%c0_37, %c0_38, %c0_39] : memref<1x1x32xf32, #tpu.memory_space<vmem>>, vector<1x1x32xf32>
      %64 = vector.broadcast %63 : vector<1x1x32xf32> to vector<1x256x32xf32>
      %65 = arith.addf %62, %64 : vector<1x256x32xf32>
      %66 = vector.shape_cast %65 : vector<1x256x32xf32> to vector<256x32xf32>
      %67 = arith.truncf %66 : vector<256x32xf32> to vector<256x32xbf16>
      %c0_40 = arith.constant 0 : index
      %c0_41 = arith.constant 0 : index
      %68 = vector.load %arg18[%c0_40, %c0_41] : memref<32x4xbf16, #tpu.memory_space<vmem>>, vector<32x4xbf16>
      %cst_42 = arith.constant dense<0.000000e+00> : vector<256x4xf32>
      %69 = tpu.matmul %67, %68, %cst_42 {dimension_numbers = #tpu.dot_dimension_numbers<[1], [0], [0], [1], [0, 0, 1, 1], [], []>} : vector<256x32xbf16>, vector<32x4xbf16>, vector<256x4xf32> -> vector<256x4xf32>
      %c0_43 = arith.constant 0 : index
      %c0_44 = arith.constant 0 : index
      %70 = vector.load %arg19[%c0_43, %c0_44] : memref<1x4xf32, #tpu.memory_space<vmem>>, vector<1x4xf32>
      %71 = vector.broadcast %70 : vector<1x4xf32> to vector<256x4xf32>
      %72 = arith.addf %69, %71 : vector<256x4xf32>
      %73 = vector.shape_cast %72 : vector<256x4xf32> to vector<1x256x4xf32>
      %c0_45 = arith.constant 0 : index
      %c0_46 = arith.constant 0 : index
      %c0_47 = arith.constant 0 : index
      %74 = vector.load %arg6[%c0_45, %c0_46, %c0_47] : memref<1x256x4xf32, #tpu.memory_space<vmem>>, vector<1x256x4xf32>
      %75 = arith.subf %73, %74 : vector<1x256x4xf32>
      %76 = arith.mulf %75, %75 : vector<1x256x4xf32>
      %cst_48 = arith.constant dense<0.000000e+00> : vector<1x256xf32>
      %77 = vector.multi_reduction <add>, %76, %cst_48 [2] : vector<1x256x4xf32> to vector<1x256xf32>
      %78 = vector.shape_cast %77 : vector<1x256xf32> to vector<1x256x1xf32>
      %cst_49 = arith.constant dense<0.000000e+00> : vector<1x1xf32>
      %79 = vector.multi_reduction <add>, %78, %cst_49 [1] : vector<1x256x1xf32> to vector<1x1xf32>
      %cst_50 = arith.constant 9.765625E-4 : f32
      %80 = vector.broadcast %cst_50 : f32 to vector<1x1xf32>
      %81 = arith.mulf %79, %80 : vector<1x1xf32>
      %82 = vector.shape_cast %81 : vector<1x1xf32> to vector<1x1xf32>
      %83 = vector.broadcast %82 : vector<1x1xf32> to vector<1x128xf32>
      %c0_51 = arith.constant 0 : index
      %c0_52 = arith.constant 0 : index
      %c0_53 = arith.constant 0 : index
      %84 = vector.load %arg20[%c0_51, %c0_52, %c0_53] : memref<1x1x128xf32, #tpu.memory_space<vmem>>, vector<1x1x128xf32>
      %85 = vector.shape_cast %84 : vector<1x1x128xf32> to vector<1x128xf32>
      %86 = vector.shape_cast %83 : vector<1x128xf32> to vector<1x1x128xf32>
      tpu.vector_store %arg20[%c0_51, %c0_52, %c0_53], %86 {strides = array<i32>} : memref<1x1x128xf32, #tpu.memory_space<vmem>>, vector<1x1x128xf32>,
    } else {
    }
    return
  }
  func.func @transform_0(%arg0: i32, %arg1: i32, %arg2: i32) -> (i32, i32, i32) {
    %c0_i32 = arith.constant 0 : i32
    %c0_i32_0 = arith.constant 0 : i32
    %c0_i32_1 = arith.constant 0 : i32
    return %arg0, %c0_i32, %c0_i32_0 : i32, i32, i32
  }
  func.func @transform_1(%arg0: i32, %arg1: i32, %arg2: i32) -> (i32, i32, i32) {
    %c0_i32 = arith.constant 0 : i32
    %c0_i32_0 = arith.constant 0 : i32
    %c0_i32_1 = arith.constant 0 : i32
    return %arg0, %c0_i32, %c0_i32_0 : i32, i32, i32
  }
  func.func @transform_2(%arg0: i32, %arg1: i32, %arg2: i32) -> (i32, i32, i32) {
    %c0_i32 = arith.constant 0 : i32
    %c0_i32_0 = arith.constant 0 : i32
    %c0_i32_1 = arith.constant 0 : i32
    return %arg0, %c0_i32, %c0_i32_0 : i32, i32, i32
  }
  func.func @transform_3(%arg0: i32, %arg1: i32, %arg2: i32) -> (i32, i32, i32) {
    %c0_i32 = arith.constant 0 : i32
    %c0_i32_0 = arith.constant 0 : i32
    %c0_i32_1 = arith.constant 0 : i32
    return %arg0, %c0_i32, %c0_i32_0 : i32, i32, i32
  }
  func.func @transform_4(%arg0: i32, %arg1: i32, %arg2: i32) -> (i32, i32) {
    %c0_i32 = arith.constant 0 : i32
    %c0_i32_0 = arith.constant 0 : i32
    %c0_i32_1 = arith.constant 0 : i32
    return %c0_i32, %c0_i32_0 : i32, i32
  }
  func.func @transform_5(%arg0: i32, %arg1: i32, %arg2: i32) -> (i32, i32) {
    %c0_i32 = arith.constant 0 : i32
    %c0_i32_0 = arith.constant 0 : i32
    %c0_i32_1 = arith.constant 0 : i32
    return %c0_i32, %c0_i32_0 : i32, i32
  }
  func.func @transform_6(%arg0: i32, %arg1: i32, %arg2: i32) -> (i32, i32, i32, i32) {
    %c0_i32 = arith.constant 0 : i32
    %c0_i32_0 = arith.constant 0 : i32
    %c0_i32_1 = arith.constant 0 : i32
    return %arg1, %arg0, %c0_i32, %c0_i32_0 : i32, i32, i32, i32
  }
  func.func @transform_7(%arg0: i32, %arg1: i32, %arg2: i32) -> (i32, i32, i32, i32) {
    %c0_i32 = arith.constant 0 : i32
    %c0_i32_0 = arith.constant 0 : i32
    %c0_i32_1 = arith.constant 0 : i32
    return %arg1, %arg0, %c0_i32, %c0_i32_0 : i32, i32, i32, i32
  }
  func.func @transform_8(%arg0: i32, %arg1: i32, %arg2: i32) -> (i32, i32, i32, i32) {
    %c0_i32 = arith.constant 0 : i32
    %c0_i32_0 = arith.constant 0 : i32
    %c0_i32_1 = arith.constant 0 : i32
    return %arg1, %arg0, %c0_i32, %c0_i32_0 : i32, i32, i32, i32
  }
  func.func @transform_9(%arg0: i32, %arg1: i32, %arg2: i32) -> (i32, i32, i32) {
    %c0_i32 = arith.constant 0 : i32
    %c0_i32_0 = arith.constant 0 : i32
    return %arg1, %c0_i32, %arg2 : i32, i32, i32
  }
  func.func @transform_10(%arg0: i32, %arg1: i32, %arg2: i32) -> (i32, i32, i32) {
    %c0_i32 = arith.constant 0 : i32
    %c0_i32_0 = arith.constant 0 : i32
    return %arg1, %c0_i32, %arg2 : i32, i32, i32
  }
  func.func @transform_11(%arg0: i32, %arg1: i32, %arg2: i32) -> (i32, i32, i32) {
    %c0_i32 = arith.constant 0 : i32
    %c0_i32_0 = arith.constant 0 : i32
    return %arg1, %arg2, %c0_i32 : i32, i32, i32
  }
  func.func @transform_12(%arg0: i32, %arg1: i32, %arg2: i32) -> (i32, i32, i32) {
    %c0_i32 = arith.constant 0 : i32
    %c0_i32_0 = arith.constant 0 : i32
    %c0_i32_1 = arith.constant 0 : i32
    return %arg1, %c0_i32, %c0_i32_0 : i32, i32, i32
  }
  func.func @transform_13(%arg0: i32, %arg1: i32, %arg2: i32) -> (i32, i32, i32) {
    %c0_i32 = arith.constant 0 : i32
    %c0_i32_0 = arith.constant 0 : i32
    %c0_i32_1 = arith.constant 0 : i32
    return %arg0, %c0_i32, %c0_i32_0 : i32, i32, i32
  }
  func.func @transform_14(%arg0: i32, %arg1: i32, %arg2: i32) -> (i32, i32, i32) {
    %c0_i32 = arith.constant 0 : i32
    %c0_i32_0 = arith.constant 0 : i32
    %c0_i32_1 = arith.constant 0 : i32
    return %arg0, %c0_i32, %c0_i32_0 : i32, i32, i32
  }
  func.func @transform_15(%arg0: i32, %arg1: i32, %arg2: i32) -> (i32, i32) {
    %c0_i32 = arith.constant 0 : i32
    %c0_i32_0 = arith.constant 0 : i32
    %c0_i32_1 = arith.constant 0 : i32
    return %c0_i32, %c0_i32_0 : i32, i32
  }
  func.func @transform_16(%arg0: i32, %arg1: i32, %arg2: i32) -> (i32, i32) {
    %c0_i32 = arith.constant 0 : i32
    %c0_i32_0 = arith.constant 0 : i32
    %c0_i32_1 = arith.constant 0 : i32
    return %c0_i32, %c0_i32_0 : i32, i32
  }
  func.func @transform_17(%arg0: i32, %arg1: i32, %arg2: i32) -> (i32, i32, i32) {
    %c0_i32 = arith.constant 0 : i32
    %c0_i32_0 = arith.constant 0 : i32
    %c0_i32_1 = arith.constant 0 : i32
    return %arg0, %c0_i32, %c0_i32_0 : i32, i32, i32
  }
}

</mosaic_0001>

<bundles_post_ra>
// kernel: denoiser_forward.1
= control target key start
LH: loop header
LB: loop body
LE: loop exit
PB: predicated region body
PF: predicated region fallthrough
CT: control target
= control target key end

     0   :  { %s5465_s24 = smov 0   ;;  %s5467_s25 = smov 0   ;;  %s7274_s0 = inlined_call_operand.vmem [shape: f32[2,1,4], index: 0, kind: input, shape index: {}]   ;;  %s7275_s1 = inlined_call_operand.vmem [shape: f32[2,1,4], index: 1, kind: input, shape index: {}]   ;;  %s7276_s2 = inlined_call_operand.vmem [shape: f32[2,256,4], index: 2, kind: input, shape index: {}]   ;;  %s7277_s3 = inlined_call_operand.vmem [shape: f32[2,256,4], index: 3, kind: input, shape index: {}]   ;;  %s7278_s4 = inlined_call_operand.vmem [shape: bf16[4,32], index: 4, kind: input, shape index: {}]   ;;  %s7279_s5 = inlined_call_operand.vmem [shape: f32[1,32], index: 5, kind: input, shape index: {}]   ;;  %s7280_s6 = inlined_call_operand.vmem [shape: f32[2,2,1,32], index: 6, kind: input, shape index: {}]   ;;  %s7281_s7 = inlined_call_operand.vmem [shape: f32[2,2,1,32], index: 7, kind: input, shape index: {}]   ;;  %s7282_s8 = inlined_call_operand.vmem [shape: f32[2,2,1,32], index: 8, kind: input, shape index: {}]   ;;  %s7283_s9 = inlined_call_operand.vmem [shape: bf16[2,32,128], index: 9, kind: input, shape index: {}]   ;;  %s7284_s10 = inlined_call_operand.vmem [shape: f32[2,1,128], index: 10, kind: input, shape index: {}]   ;;  %s7285_s11 = inlined_call_operand.vmem [shape: bf16[2,128,32], index: 11, kind: input, shape index: {}]   ;;  %s7286_s12 = inlined_call_operand.vmem [shape: f32[2,1,32], index: 12, kind: input, shape index: {}]   ;;  %s7287_s13 = inlined_call_operand.vmem [shape: f32[2,1,32], index: 13, kind: input, shape index: {}]   ;;  %s7288_s14 = inlined_call_operand.vmem [shape: f32[2,1,32], index: 14, kind: input, shape index: {}]   ;;  %s7289_s15 = inlined_call_operand.vmem [shape: bf16[32,4], index: 15, kind: input, shape index: {}]   ;;  %s7290_s16 = inlined_call_operand.vmem [shape: f32[1,4], index: 16, kind: input, shape index: {}]   ;;  %s7291_s17 = inlined_call_operand.vmem [shape: f32[2,1,128], index: 17, kind: output, shape index: {}]  }
   0x1   :  { %7302 = sst [smem:[#allocation14_spill]] %s7274_s0  ;;  %s5469_s26 = smov 0  }
   0x2   :  { %7303 = sst [smem:[#allocation15_spill]] %s7275_s1  ;;  %s5471_s27 = smov 0  }
   0x3   :  { %7304 = sst [smem:[#allocation16_spill]] %s7276_s2  ;;  %s5473_s28 = smov 0  }
   0x4   :  { %7305 = sst [smem:[#allocation17_spill]] %s7277_s3 }
   0x5   :  { %7306 = sst [smem:[#allocation18_spill]] %s7278_s4 }
   0x6   :  { %7307 = sst [smem:[#allocation19_spill]] %s7279_s5 }
   0x7   :  { %7308 = sst [smem:[#allocation20_spill]] %s7280_s6 }
   0x8   :  { %7309 = sst [smem:[#allocation21_spill]] %s7283_s9 }
   0x9   :  { %7310 = sst [smem:[#allocation22_spill]] %s7289_s15 }
   0xa   :  { %7311 = sst [smem:[#allocation23_spill]] %s7290_s16 }
   0xb LB: > { %7312 = sst [smem:[#allocation5_spill]] %s5356_s24  ;;  %s42_s29 = sadd.s32 1, %s5364_s26  ;;  %s5372_s28 = sphi %s5473_s28, %s27_s28   ;;  %s5368_s27 = sphi %s5471_s27, %s7344_s27   ;;  %s5364_s26 = sphi %s5469_s26, %s7343_s26   ;;  %s5360_s25 = sphi %s5467_s25, %s7342_s25   ;;  %s5356_s24 = sphi %s5465_s24, %s7341_s24  }
   0xc   : > { %7313 = sst [smem:[#allocation6_spill]] %s5364_s26  ;;  %s46_s0 = sadd.s32 1, %s5368_s27 }
   0xd   : > { %7314 = sst [smem:[#allocation7_spill]] %s5368_s27  ;;  %p44_p0 = scmp.ge.s32.totalorder %s42_s29, 2 }
   0xe   : > { %7315 = sst [smem:[#allocation8_spill]] %s5372_s28  ;;  %p4542_p1 = scmp.ge.s32.totalorder %s5372_s28, 1 }
   0xf   : > { %p643_p2 = scmp.lt.s32.totalorder %s5372_s28, 5  ;;  %s7346_s29 = smov (%p44_p0, %s42_s29), 0 }
  0x10   : > { %7316 = sst [smem:[#allocation9_spill]] %s7346_s29  ;;  %s7348_s0 = smov (!%p44_p0, %s46_s0), %s5368_s27 }
  0x11   : > { %p644_p3 = pnand %p4542_p1, %p643_p2  ;;  %p48_p4 = scmp.ge.s32.totalorder %s7348_s0, 2 }
  0x13   : > { %s7350_s0 = smov (%p48_p4, %s7348_s0), 0  ;;  %647 = sbr.rel (%p644_p3) target bundleno = 1697 (0x6a1), region = 88 }
  0x14   : > { %7317 = sst [smem:[#allocation10_spill]] %s7350_s0 }
  0x18   : > { %p757_p5 = scmp.lt.s32.totalorder %s5360_s25, 1  ;;  %p773_p6 = scmp.lt.s32.totalorder %s5356_s24, 1 }
  0x19   : > { %p831_p7 = scmp.eq.s32.totalorder %s5356_s24, 0  ;;  %s7318_s1 = sld [smem:[#allocation14_spill]] }
  0x1a   : > { %s7352_s25 = smov (!%p757_p5, %s5360_s25), 1  ;;  %s7319_s23 = sld [smem:[#allocation15_spill]]  ;;  %vm1084_vm0 = vcmask (%p831_p7), 1041408   ;;  %vm1035_vm1 = vcmask (%p831_p7), 31744   ;;  %vm1249_vm2 = vcmask (%p831_p7), 261120  }
  0x1b   : > { %s5502_s30 = scalar_select %p773_p6, %s5356_s24, 1 }
  0x1c   : > { %s4707_s29 = sshll.u32 %s7352_s25, 8  ;;  %s7320_s2 = sld [smem:[#allocation16_spill]] }
  0x1d   : > { %s4547_s27 = sshll.u32 %s5502_s30, 1  ;;  %s7322_s3 = sld [smem:[#allocation17_spill]] }
  0x1e   : > { %s4709_s21 = sshll.u32 %s5502_s30, 4  ;;  %s7324_s6 = sld [smem:[#allocation20_spill]] }
  0x1f   : > { %s759_s20 = scalar_lea.vmem %s7318_s1, %s7352_s25  ;;  %s5525_s1 = sadd.s32 %s4547_s27, %s7352_s25 }
  0x20   : > { %s762_s0 = scalar_lea.vmem %s7319_s23, %s7352_s25  ;;  %s7326_s9 = sld [smem:[#allocation21_spill]]  ;;  %v5578_v1 = vld [vmem:[%s759_s20] ss:$0 sm:$0xff] (%p831_p7) }
  0x21   : > { %s4710_s22 = sshll.u32 %s5502_s30, 6  ;;  %s823_s18 = scalar_lea.vmem %s7287_s13, %s7352_s25  ;;  %v5583_v6 = vld [vmem:[%s762_s0] ss:$0 sm:$0xff] (%p831_p7) }
  0x22   : > { %s5517_s16 = scalar_lea.vmem %s7320_s2, %s4707_s29  ;;  %s820_s2 = scalar_lea.vmem %s7286_s12, %s5502_s30 }
  0x23   : > { %7321 = sst [smem:[#allocation11_spill]] %s5517_s16  ;;  %s5522_s15 = scalar_lea.vmem %s7322_s3, %s4707_s29 }
  0x24   : > { %7323 = sst [smem:[#allocation12_spill]] %s5522_s15  ;;  %s5532_s5 = scalar_lea.vmem %s7324_s6, %s5525_s1 }
  0x25   : > { %7325 = sst [smem:[#allocation13_spill]] %s5532_s5  ;;  %s5555_s5 = scalar_lea.vmem %s7285_s11, %s4710_s22 }
  0x26   : > { %s5545_s19 = scalar_lea.vmem %s7326_s9, %s4709_s21  ;;  %s826_s28 = scalar_lea.vmem %s7288_s14, %s7352_s25 }
  0x27   : > { %s829_s24 = scalar_lea.vmem %s7291_s17, %s7352_s25  ;;  %836 = sbr.rel (!%p831_p7) target bundleno = 286 (0x11e), region = 92 }
  0x28   : > { %s7328_s23 = sld [smem:[#allocation18_spill]] (%p831_p7) }
  0x29   : > { %s7329_s4 = sld [smem:[#allocation11_spill]] (%p831_p7) }
  0x2a   : > { %s7330_s26 = sld [smem:[#allocation12_spill]] (%p831_p7) }
  0x2b   : > { %s7331_s20 = sld [smem:[#allocation19_spill]] (%p831_p7) }
  0x2e   : > { %v1027_v0 = vld [vmem:[%s7328_s23] sm:$0x3] }
  0x2f   : > { %v838_v2 = vld [vmem:[%s7329_s4] sm:$0xff]  ;;  %4998 = vmatprep.subr.msk.bf16.mxu0 %vm1084_vm0, %v1027_v0  ;;  %4999 = vmatprep.subr.msk.bf16.mxu1 %vm1084_vm0, %v1027_v0  ;;  %v1086_v3 = vsel %vm1084_vm0, %v1027_v0, 0  ;;  %v839_v4 = vld [vmem:[%s7329_s4 + $0x8] sm:$0xff]  ;;  %v840_v18 = vld [vmem:[%s7329_s4 + $0x10] sm:$0xff] }
  0x30   : > { %v876_v5 = vmul.f32 %v5578_v1, %v838_v2  ;;  %v909_v7 = vld [vmem:[%s7330_s26] sm:$0xff]  ;;  %4823 = vmatpush3.bf16.msra.mxu0 %v1086_v3  ;;  %4977 = vmatpush3.bf16.msra.mxu1 %v1086_v3  ;;  %v877_v8 = vmul.f32 %v5578_v1, %v839_v4  ;;  %v910_v9 = vld [vmem:[%s7330_s26 + $0x8] sm:$0xff]  ;;  %v841_v22 = vld [vmem:[%s7329_s4 + $0x18] sm:$0xff]  ;;  %v878_v23 = vmul.f32 %v5578_v1, %v840_v18 }
  0x31   : > { %v947_v10 = vmul.f32 %v5583_v6, %v909_v7  ;;  %v854_v11 = vld [vmem:[%s7329_s4 + $0x80] sm:$0xff]  ;;  %v855_v12 = vld [vmem:[%s7329_s4 + $0x88] sm:$0xff]  ;;  %v948_v13 = vmul.f32 %v5583_v6, %v910_v9  ;;  %v911_v24 = vld [vmem:[%s7330_s26 + $0x10] sm:$0xff]  ;;  %v879_v27 = vmul.f32 %v5578_v1, %v841_v22 }
  0x32   : > { %v892_v14 = vmul.f32 %v5578_v1, %v854_v11  ;;  %v893_v15 = vmul.f32 %v5578_v1, %v855_v12  ;;  %v925_v16 = vld [vmem:[%s7330_s26 + $0x80] sm:$0xff]  ;;  %v926_v17 = vld [vmem:[%s7330_s26 + $0x88] sm:$0xff]  ;;  %v912_v25 = vld [vmem:[%s7330_s26 + $0x18] sm:$0xff]  ;;  %v949_v28 = vmul.f32 %v5583_v6, %v911_v24 }
  0x33   : > { %v979_v19 = vadd.f32 %v947_v10, %v876_v5  ;;  %v963_v20 = vmul.f32 %v5583_v6, %v925_v16  ;;  %v964_v21 = vmul.f32 %v5583_v6, %v926_v17  ;;  %v980_v26 = vadd.f32 %v948_v13, %v877_v8  ;;  %v856_v30 = vld [vmem:[%s7329_s4 + $0x90] sm:$0xff]  ;;  %v857_v31 = vld [vmem:[%s7329_s4 + $0x98] sm:$0xff]  ;;  %v842_v38 = vld [vmem:[%s7329_s4 + $0x20] sm:$0xff] }
  0x34   : > { %v950_v29 = vmul.f32 %v5583_v6, %v912_v25  ;;  %v927_v32 = vld [vmem:[%s7330_s26 + $0x90] sm:$0xff]  ;;  %v894_v35 = vmul.f32 %v5578_v1, %v856_v30  ;;  %v895_v36 = vmul.f32 %v5578_v1, %v857_v31  ;;  %v928_v37 = vld [vmem:[%s7330_s26 + $0x98] sm:$0xff]  ;;  %v843_v39 = vld [vmem:[%s7329_s4 + $0x28] sm:$0xff]  ;;  %v981_v41 = vadd.f32 %v949_v28, %v878_v23 }
  0x35   : > { %v995_v33 = vadd.f32 %v963_v20, %v892_v14  ;;  %v996_v34 = vadd.f32 %v964_v21, %v893_v15  ;;  %v1011_v40 = vpack.c.bf16 %v980_v26, %v979_v19  ;;  %v965_v43 = vmul.f32 %v5583_v6, %v927_v32  ;;  %v913_v44 = vld [vmem:[%s7330_s26 + $0x20] sm:$0xff]  ;;  %v914_v45 = vld [vmem:[%s7330_s26 + $0x28] sm:$0xff]  ;;  %v844_v58 = vld [vmem:[%s7329_s4 + $0x30] sm:$0xff] }
  0x36   : > { %v982_v42 = vadd.f32 %v950_v29, %v879_v27  ;;  %v858_v46 = vld [vmem:[%s7329_s4 + $0xa0] sm:$0xff]  ;;  %v966_v48 = vmul.f32 %v5583_v6, %v928_v37  ;;  %v880_v49 = vmul.f32 %v5578_v1, %v842_v38  ;;  %v881_v50 = vmul.f32 %v5578_v1, %v843_v39  ;;  %v859_v51 = vld [vmem:[%s7329_s4 + $0xa8] sm:$0xff]  ;;  %v845_v59 = vld [vmem:[%s7329_s4 + $0x38] sm:$0xff] }
  0x37   : > { %v1019_v47 = vpack.c.bf16 %v996_v34, %v995_v33  ;;  %v929_v52 = vld [vmem:[%s7330_s26 + $0xa0] sm:$0xff]  ;;  %v930_v53 = vld [vmem:[%s7330_s26 + $0xa8] sm:$0xff]  ;;  %4824 = vmatprep.mubr.msk.bf16.mxu0 %vm1035_vm1, %v1011_v40  ;;  %v997_v55 = vadd.f32 %v965_v43, %v894_v35  ;;  %v951_v56 = vmul.f32 %v5583_v6, %v913_v44  ;;  %v952_v57 = vmul.f32 %v5583_v6, %v914_v45  ;;  %v915_v60 = vld [vmem:[%s7330_s26 + $0x30] sm:$0xff] }
  0x38   : > { %v1012_v54 = vpack.c.bf16 %v982_v42, %v981_v41  ;;  %v998_v61 = vadd.f32 %v966_v48, %v895_v36  ;;  %v896_v62 = vmul.f32 %v5578_v1, %v858_v46  ;;  %v897_v63 = vmul.f32 %v5578_v1, %v859_v51  ;;  %v916_v2 = vld [vmem:[%s7330_s26 + $0x38] sm:$0xff]  ;;  %v860_v3 = vld [vmem:[%s7329_s4 + $0xb0] sm:$0xff]  ;;  %v846_v16 = vld [vmem:[%s7329_s4 + $0x40] sm:$0xff] }
  0x39   : > { %4840 = vmatprep.mubr.msk.bf16.mxu1 %vm1035_vm1, %v1019_v47  ;;  %v967_v0 = vmul.f32 %v5583_v6, %v929_v52  ;;  %v983_v4 = vadd.f32 %v951_v56, %v880_v49  ;;  %v984_v5 = vadd.f32 %v952_v57, %v881_v50  ;;  %v968_v7 = vmul.f32 %v5583_v6, %v930_v53  ;;  %v861_v9 = vld [vmem:[%s7329_s4 + $0xb8] sm:$0xff]  ;;  %v931_v10 = vld [vmem:[%s7330_s26 + $0xb0] sm:$0xff]  ;;  %v847_v17 = vld [vmem:[%s7329_s4 + $0x48] sm:$0xff] }
  0x3a   : > { %4825 = vmatmul.mubr.msk.bf16.vlgmr.msra.gmra.mxu0 %vm1035_vm1, %v1012_v54  ;;  %v882_v8 = vmul.f32 %v5578_v1, %v844_v58  ;;  %v932_v11 = vld [vmem:[%s7330_s26 + $0xb8] sm:$0xff]  ;;  %v1020_v12 = vpack.c.bf16 %v998_v61, %v997_v55  ;;  %v883_v14 = vmul.f32 %v5578_v1, %v845_v59  ;;  %v953_v15 = vmul.f32 %v5583_v6, %v915_v60  ;;  %v917_v22 = vld [vmem:[%s7330_s26 + $0x40] sm:$0xff]  ;;  %v918_v23 = vld [vmem:[%s7330_s26 + $0x48] sm:$0xff] }
  0x3b   : > { %v999_v13 = vadd.f32 %v967_v0, %v896_v62  ;;  %v1013_v18 = vpack.c.bf16 %v984_v5, %v983_v4  ;;  %v1000_v19 = vadd.f32 %v968_v7, %v897_v63  ;;  %v954_v20 = vmul.f32 %v5583_v6, %v916_v2  ;;  %v862_v28 = vld [vmem:[%s7329_s4 + $0xc0] sm:$0xff]  ;;  %v863_v29 = vld [vmem:[%s7329_s4 + $0xc8] sm:$0xff]  ;;  %v848_v40 = vld [vmem:[%s7329_s4 + $0x50] sm:$0xff] }
  0x3c   : > { %v898_v21 = vmul.f32 %v5578_v1, %v860_v3  ;;  %4841 = vmatmul.mubr.msk.bf16.vlgmr.msra.gmra.mxu1 %vm1035_vm1, %v1020_v12  ;;  %v985_v24 = vadd.f32 %v953_v15, %v882_v8  ;;  %v899_v25 = vmul.f32 %v5578_v1, %v861_v9  ;;  %v969_v26 = vmul.f32 %v5583_v6, %v931_v10  ;;  %v933_v30 = vld [vmem:[%s7330_s26 + $0xc0] sm:$0xff]  ;;  %v934_v35 = vld [vmem:[%s7330_s26 + $0xc8] sm:$0xff]  ;;  %v849_v41 = vld [vmem:[%s7329_s4 + $0x58] sm:$0xff] }
  0x3d   : > { %v970_v27 = vmul.f32 %v5583_v6, %v932_v11  ;;  %4828 = vmatprep.mubr.msk.bf16.mxu0 %vm1035_vm1, %v1013_v18  ;;  %v1021_v31 = vpack.c.bf16 %v1000_v19, %v999_v13  ;;  %v986_v32 = vadd.f32 %v954_v20, %v883_v14  ;;  %v884_v33 = vmul.f32 %v5578_v1, %v846_v16  ;;  %v919_v42 = vld [vmem:[%s7330_s26 + $0x50] sm:$0xff]  ;;  %v920_v47 = vld [vmem:[%s7330_s26 + $0x58] sm:$0xff]  ;;  %v850_v60 = vld [vmem:[%s7329_s4 + $0x60] sm:$0xff] }
  0x3e   : > { %v885_v34 = vmul.f32 %v5578_v1, %v847_v17  ;;  %v1001_v36 = vadd.f32 %v969_v26, %v898_v21  ;;  %v955_v38 = vmul.f32 %v5583_v6, %v917_v22  ;;  %v956_v39 = vmul.f32 %v5583_v6, %v918_v23  ;;  %v864_v48 = vld [vmem:[%s7329_s4 + $0xd0] sm:$0xff]  ;;  %v865_v53 = vld [vmem:[%s7329_s4 + $0xd8] sm:$0xff]  ;;  %v851_v2 = vld [vmem:[%s7329_s4 + $0x68] sm:$0xff] }
  0x3f   : > { %v1002_v37 = vadd.f32 %v970_v27, %v899_v25  ;;  %4844 = vmatprep.mubr.msk.bf16.mxu1 %vm1035_vm1, %v1021_v31  ;;  %v1014_v43 = vpack.c.bf16 %v986_v32, %v985_v24  ;;  %v900_v44 = vmul.f32 %v5578_v1, %v862_v28  ;;  %v901_v45 = vmul.f32 %v5578_v1, %v863_v29  ;;  %v935_v54 = vld [vmem:[%s7330_s26 + $0xd0] sm:$0xff]  ;;  %v936_v55 = vld [vmem:[%s7330_s26 + $0xd8] sm:$0xff]  ;;  %v921_v3 = vld [vmem:[%s7330_s26 + $0x60] sm:$0xff] }
  0x40   : > { %v971_v46 = vmul.f32 %v5583_v6, %v933_v30  ;;  %v987_v50 = vadd.f32 %v955_v38, %v884_v33  ;;  %v988_v51 = vadd.f32 %v956_v39, %v885_v34  ;;  %v972_v52 = vmul.f32 %v5583_v6, %v934_v35  ;;  %v922_v9 = vld [vmem:[%s7330_s26 + $0x68] sm:$0xff]  ;;  %v866_v10 = vld [vmem:[%s7329_s4 + $0xe0] sm:$0xff]  ;;  %v852_v21 = vld [vmem:[%s7329_s4 + $0x70] sm:$0xff] }
  0x41   : > { %v1022_v49 = vpack.c.bf16 %v1002_v37, %v1001_v36  ;;  %v886_v57 = vmul.f32 %v5578_v1, %v848_v40  ;;  %v887_v58 = vmul.f32 %v5578_v1, %v849_v41  ;;  %v957_v59 = vmul.f32 %v5583_v6, %v919_v42  ;;  %v867_v11 = vld [vmem:[%s7329_s4 + $0xe8] sm:$0xff]  ;;  %v937_v15 = vld [vmem:[%s7330_s26 + $0xe0] sm:$0xff]  ;;  %v853_v22 = vld [vmem:[%s7329_s4 + $0x78] sm:$0xff] }
  0x42   : > { %4829 = vmatmul.mubr.msk.bf16.gmra.mxu0 %vm1035_vm1, %v1014_v43  ;;  %v1003_v56 = vadd.f32 %v971_v46, %v900_v44  ;;  %v1015_v61 = vpack.c.bf16 %v988_v51, %v987_v50  ;;  %v1004_v62 = vadd.f32 %v972_v52, %v901_v45  ;;  %v958_v63 = vmul.f32 %v5583_v6, %v920_v47  ;;  %v938_v16 = vld [vmem:[%s7330_s26 + $0xe8] sm:$0xff]  ;;  %v923_v23 = vld [vmem:[%s7330_s26 + $0x70] sm:$0xff]  ;;  %v924_v28 = vld [vmem:[%s7330_s26 + $0x78] sm:$0xff] }
  0x43   : > { %v902_v0 = vmul.f32 %v5578_v1, %v864_v48  ;;  %v989_v4 = vadd.f32 %v957_v59, %v886_v57  ;;  %v903_v5 = vmul.f32 %v5578_v1, %v865_v53  ;;  %v973_v7 = vmul.f32 %v5583_v6, %v935_v54  ;;  %v868_v29 = vld [vmem:[%s7329_s4 + $0xf0] sm:$0xff]  ;;  %v869_v34 = vld [vmem:[%s7329_s4 + $0xf8] sm:$0xff] }
  0x44   : > { %v974_v8 = vmul.f32 %v5583_v6, %v936_v55  ;;  %4845 = vmatmul.mubr.msk.bf16.gmra.mxu1 %vm1035_vm1, %v1022_v49  ;;  %4832 = vmatprep.mubr.msk.bf16.mxu0 %vm1035_vm1, %v1015_v61  ;;  %v1023_v12 = vpack.c.bf16 %v1004_v62, %v1003_v56  ;;  %v990_v13 = vadd.f32 %v958_v63, %v887_v58  ;;  %v939_v35 = vld [vmem:[%s7330_s26 + $0xf0] sm:$0xff]  ;;  %v940_v40 = vld [vmem:[%s7330_s26 + $0xf8] sm:$0xff] }
  0x45   : > { %v888_v14 = vmul.f32 %v5578_v1, %v850_v60  ;;  %v1005_v17 = vadd.f32 %v973_v7, %v902_v0  ;;  %v889_v19 = vmul.f32 %v5578_v1, %v851_v2  ;;  %v959_v20 = vmul.f32 %v5583_v6, %v921_v3 }
  0x46   : > { %v1006_v18 = vadd.f32 %v974_v8, %v903_v5  ;;  %4848 = vmatprep.mubr.msk.bf16.mxu1 %vm1035_vm1, %v1023_v12  ;;  %v1016_v24 = vpack.c.bf16 %v990_v13, %v989_v4  ;;  %v960_v25 = vmul.f32 %v5583_v6, %v922_v9  ;;  %v904_v26 = vmul.f32 %v5578_v1, %v866_v10 }
  0x47   : > { %v905_v27 = vmul.f32 %v5578_v1, %v867_v11  ;;  %v991_v31 = vadd.f32 %v959_v20, %v888_v14  ;;  %v975_v32 = vmul.f32 %v5583_v6, %v937_v15  ;;  %v976_v33 = vmul.f32 %v5583_v6, %v938_v16 }
  0x48   : > { %v1024_v30 = vpack.c.bf16 %v1006_v18, %v1005_v17  ;;  %v992_v36 = vadd.f32 %v960_v25, %v889_v19  ;;  %v890_v37 = vmul.f32 %v5578_v1, %v852_v21  ;;  %v891_v38 = vmul.f32 %v5578_v1, %v853_v22 }
  0x49   : > { %v961_v39 = vmul.f32 %v5583_v6, %v923_v23  ;;  %v1007_v41 = vadd.f32 %v975_v32, %v904_v26  ;;  %v1008_v42 = vadd.f32 %v976_v33, %v905_v27  ;;  %v962_v43 = vmul.f32 %v5583_v6, %v924_v28 }
  0x4a   : > { %4833 = vmatmul.mubr.msk.bf16.gmra.mxu0 %vm1035_vm1, %v1016_v24  ;;  %v906_v44 = vmul.f32 %v5578_v1, %v868_v29  ;;  %v1017_v45 = vpack.c.bf16 %v992_v36, %v991_v31  ;;  %v907_v47 = vmul.f32 %v5578_v1, %v869_v34  ;;  %v977_v48 = vmul.f32 %v5583_v6, %v939_v35  ;;  %v5729_v1 = vld [vmem:[%s7331_s20] ss:$0 sm:$0xff] }
  0x4b   : > { %v993_v46 = vadd.f32 %v961_v39, %v890_v37  ;;  %v1025_v49 = vpack.c.bf16 %v1008_v42, %v1007_v41  ;;  %v994_v50 = vadd.f32 %v962_v43, %v891_v38  ;;  %v978_v51 = vmul.f32 %v5583_v6, %v940_v40 }
  0x4c   : > { %4849 = vmatmul.mubr.msk.bf16.gmra.mxu1 %vm1035_vm1, %v1024_v30  ;;  %4836 = vmatprep.mubr.msk.bf16.mxu0 %vm1035_vm1, %v1017_v45  ;;  %v1009_v52 = vadd.f32 %v977_v48, %v906_v44 }
  0x4d   : > { %4852 = vmatprep.mubr.msk.bf16.mxu1 %vm1035_vm1, %v1025_v49  ;;  %v1018_v53 = vpack.c.bf16 %v994_v50, %v993_v46  ;;  %v1010_v54 = vadd.f32 %v978_v51, %v907_v47 }
  0x4f   : > { %v1026_v55 = vpack.c.bf16 %v1010_v54, %v1009_v52 }
  0x52   : > { %4837 = vmatmul.mubr.msk.bf16.gmra.mxu0 %vm1035_vm1, %v1018_v53 }
  0x54   : > { %4853 = vmatmul.mubr.msk.bf16.gmra.mxu1 %vm1035_vm1, %v1026_v55 }
  0xfa   : > { %v4826_v6 = vpop.f32.mrf.mxu0 }
  0xfb   : > { %v1131_v56 = vadd.f32 %v4826_v6, %v5729_v1 }
  0xfc   : > { %v1122_v57 = vpop.f32.mrf.mxu0  ;;  %v4842_v58 = vpop.f32.mrf.mxu1 }
  0xfd   : > { %1252 = vst.msk [vmem:[#allocation2 + $0x10] sm:$0xff] %vm1249_vm2, %v1131_v56  ;;  %v1123_v59 = vadd.f32 %v5729_v1, %v1122_v57  ;;  %v1195_v60 = vadd.f32 %v4842_v58, %v5729_v1 }
  0xfe   : > { %v4827_v61 = vpop.f32.mrf.mxu0  ;;  %v1186_v62 = vpop.f32.mrf.mxu1 }
  0xff   : > { %1250 = vst.msk [vmem:[#allocation2] sm:$0xff] %vm1249_vm2, %v1123_v59  ;;  %v1134_v63 = vadd.f32 %v4827_v61, %v5729_v1  ;;  %1268 = vst.msk [vmem:[#allocation2 + $0x90] sm:$0xff] %vm1249_vm2, %v1195_v60  ;;  %v1187_v0 = vadd.f32 %v5729_v1, %v1186_v62 }
 0x100   : > { %v1125_v2 = vpop.f32.mrf.mxu0  ;;  %v4843_v3 = vpop.f32.mrf.mxu1 }
 0x101   : > { %1253 = vst.msk [vmem:[#allocation2 + $0x18] sm:$0xff] %vm1249_vm2, %v1134_v63  ;;  %v1126_v4 = vadd.f32 %v5729_v1, %v1125_v2  ;;  %1266 = vst.msk [vmem:[#allocation2 + $0x80] sm:$0xff] %vm1249_vm2, %v1187_v0  ;;  %v1198_v5 = vadd.f32 %v4843_v3, %v5729_v1 }
 0x102   : > { %v4830_v7 = vpop.f32.mrf.mxu0  ;;  %v1189_v8 = vpop.f32.mrf.mxu1 }
 0x103   : > { %1251 = vst.msk [vmem:[#allocation2 + $0x8] sm:$0xff] %vm1249_vm2, %v1126_v4  ;;  %v1147_v9 = vadd.f32 %v4830_v7, %v5729_v1  ;;  %1269 = vst.msk [vmem:[#allocation2 + $0x98] sm:$0xff] %vm1249_vm2, %v1198_v5  ;;  %v1190_v10 = vadd.f32 %v5729_v1, %v1189_v8 }
 0x104   : > { %v1138_v11 = vpop.f32.mrf.mxu0  ;;  %v4846_v12 = vpop.f32.mrf.mxu1 }
 0x105   : > { %1256 = vst.msk [vmem:[#allocation2 + $0x30] sm:$0xff] %vm1249_vm2, %v1147_v9  ;;  %v1139_v13 = vadd.f32 %v5729_v1, %v1138_v11  ;;  %1267 = vst.msk [vmem:[#allocation2 + $0x88] sm:$0xff] %vm1249_vm2, %v1190_v10  ;;  %v1211_v14 = vadd.f32 %v4846_v12, %v5729_v1 }
 0x106   : > { %v4831_v15 = vpop.f32.mrf.mxu0  ;;  %v1202_v16 = vpop.f32.mrf.mxu1 }
 0x107   : > { %1254 = vst.msk [vmem:[#allocation2 + $0x20] sm:$0xff] %vm1249_vm2, %v1139_v13  ;;  %v1150_v17 = vadd.f32 %v4831_v15, %v5729_v1  ;;  %1272 = vst.msk [vmem:[#allocation2 + $0xb0] sm:$0xff] %vm1249_vm2, %v1211_v14  ;;  %v1203_v18 = vadd.f32 %v5729_v1, %v1202_v16 }
 0x108   : > { %v1141_v19 = vpop.f32.mrf.mxu0  ;;  %v4847_v20 = vpop.f32.mrf.mxu1 }
 0x109   : > { %1257 = vst.msk [vmem:[#allocation2 + $0x38] sm:$0xff] %vm1249_vm2, %v1150_v17  ;;  %v1142_v21 = vadd.f32 %v5729_v1, %v1141_v19  ;;  %1270 = vst.msk [vmem:[#allocation2 + $0xa0] sm:$0xff] %vm1249_vm2, %v1203_v18  ;;  %v1214_v22 = vadd.f32 %v4847_v20, %v5729_v1 }
 0x10a   : > { %v4834_v23 = vpop.f32.mrf.mxu0  ;;  %v1205_v24 = vpop.f32.mrf.mxu1 }
 0x10b   : > { %1255 = vst.msk [vmem:[#allocation2 + $0x28] sm:$0xff] %vm1249_vm2, %v1142_v21  ;;  %v1163_v25 = vadd.f32 %v4834_v23, %v5729_v1  ;;  %1273 = vst.msk [vmem:[#allocation2 + $0xb8] sm:$0xff] %vm1249_vm2, %v1214_v22  ;;  %v1206_v26 = vadd.f32 %v5729_v1, %v1205_v24 }
 0x10c   : > { %v1154_v27 = vpop.f32.mrf.mxu0  ;;  %v4850_v28 = vpop.f32.mrf.mxu1 }
 0x10d   : > { %1260 = vst.msk [vmem:[#allocation2 + $0x50] sm:$0xff] %vm1249_vm2, %v1163_v25  ;;  %v1155_v29 = vadd.f32 %v5729_v1, %v1154_v27  ;;  %1271 = vst.msk [vmem:[#allocation2 + $0xa8] sm:$0xff] %vm1249_vm2, %v1206_v26  ;;  %v1227_v30 = vadd.f32 %v4850_v28, %v5729_v1 }
 0x10e   : > { %v4835_v31 = vpop.f32.mrf.mxu0  ;;  %v1218_v32 = vpop.f32.mrf.mxu1 }
 0x10f   : > { %1258 = vst.msk [vmem:[#allocation2 + $0x40] sm:$0xff] %vm1249_vm2, %v1155_v29  ;;  %v1166_v33 = vadd.f32 %v4835_v31, %v5729_v1  ;;  %1276 = vst.msk [vmem:[#allocation2 + $0xd0] sm:$0xff] %vm1249_vm2, %v1227_v30  ;;  %v1219_v34 = vadd.f32 %v5729_v1, %v1218_v32 }
 0x110   : > { %v1157_v35 = vpop.f32.mrf.mxu0  ;;  %v4851_v36 = vpop.f32.mrf.mxu1 }
 0x111   : > { %1261 = vst.msk [vmem:[#allocation2 + $0x58] sm:$0xff] %vm1249_vm2, %v1166_v33  ;;  %v1158_v37 = vadd.f32 %v5729_v1, %v1157_v35  ;;  %1274 = vst.msk [vmem:[#allocation2 + $0xc0] sm:$0xff] %vm1249_vm2, %v1219_v34  ;;  %v1230_v38 = vadd.f32 %v4851_v36, %v5729_v1 }
 0x112   : > { %v4838_v39 = vpop.f32.mrf.mxu0  ;;  %v1221_v40 = vpop.f32.mrf.mxu1 }
 0x113   : > { %1259 = vst.msk [vmem:[#allocation2 + $0x48] sm:$0xff] %vm1249_vm2, %v1158_v37  ;;  %v1179_v41 = vadd.f32 %v4838_v39, %v5729_v1  ;;  %1277 = vst.msk [vmem:[#allocation2 + $0xd8] sm:$0xff] %vm1249_vm2, %v1230_v38  ;;  %v1222_v42 = vadd.f32 %v5729_v1, %v1221_v40 }
 0x114   : > { %v1170_v43 = vpop.f32.mrf.mxu0  ;;  %v4854_v44 = vpop.f32.mrf.mxu1 }
 0x115   : > { %1264 = vst.msk [vmem:[#allocation2 + $0x70] sm:$0xff] %vm1249_vm2, %v1179_v41  ;;  %v1171_v45 = vadd.f32 %v5729_v1, %v1170_v43  ;;  %1275 = vst.msk [vmem:[#allocation2 + $0xc8] sm:$0xff] %vm1249_vm2, %v1222_v42  ;;  %v1243_v46 = vadd.f32 %v4854_v44, %v5729_v1 }
 0x116   : > { %v4839_v47 = vpop.f32.mrf.mxu0  ;;  %v1234_v48 = vpop.f32.mrf.mxu1 }
 0x117   : > { %1262 = vst.msk [vmem:[#allocation2 + $0x60] sm:$0xff] %vm1249_vm2, %v1171_v45  ;;  %v1182_v49 = vadd.f32 %v4839_v47, %v5729_v1  ;;  %1280 = vst.msk [vmem:[#allocation2 + $0xf0] sm:$0xff] %vm1249_vm2, %v1243_v46  ;;  %v1235_v50 = vadd.f32 %v5729_v1, %v1234_v48 }
 0x118   : > { %v1173_v51 = vpop.f32.mrf.mxu0  ;;  %v4855_v52 = vpop.f32.mrf.mxu1 }
 0x119   : > { %1265 = vst.msk [vmem:[#allocation2 + $0x78] sm:$0xff] %vm1249_vm2, %v1182_v49  ;;  %v1174_v53 = vadd.f32 %v5729_v1, %v1173_v51  ;;  %1278 = vst.msk [vmem:[#allocation2 + $0xe0] sm:$0xff] %vm1249_vm2, %v1235_v50  ;;  %v1246_v54 = vadd.f32 %v4855_v52, %v5729_v1 }
 0x11a   : > { %v1237_v55 = vpop.f32.mrf.mxu1 }
 0x11b   : > { %1263 = vst.msk [vmem:[#allocation2 + $0x68] sm:$0xff] %vm1249_vm2, %v1174_v53  ;;  %1281 = vst.msk [vmem:[#allocation2 + $0xf8] sm:$0xff] %vm1249_vm2, %v1246_v54  ;;  %v1238_v6 = vadd.f32 %v5729_v1, %v1237_v55 }
 0x11d   : > { %1279 = vst.msk [vmem:[#allocation2 + $0xe8] sm:$0xff] %vm1249_vm2, %v1238_v6 }
 0x11e PF: > { %v5795_v56 = vld [vmem:[#allocation2 + $0x10] sm:$0xff]  ;;  %vm1317_vm3 = vcmask 261120   ;;  %v5797_v57 = vld [vmem:[#allocation2] sm:$0xff]  ;;  %v5799_v58 = vld [vmem:[#allocation2 + $0x18] sm:$0xff]  ;;  %s7332_s16 = scalar_lea.vmem %s7281_s7, %s5525_s1  ;;  %s7333_s21 = sld [smem:[#allocation13_spill]]  ;;  %vm2038_vm4 = vcmask 257024  }
 0x11f   : > { %v1324_v59 = vsel %vm1317_vm3, %v5795_v56, 0.0  ;;  %v1318_v60 = vsel %vm1317_vm3, %v5797_v57, 0.0  ;;  %v5805_v61 = vld [vmem:[#allocation2 + $0x8] sm:$0xff]  ;;  %v1327_v1 = vsel %vm1317_vm3, %v5799_v58, 0.0  ;;  %v1447_v0 = vmul.f32 %v5797_v57, %v5797_v57  ;;  %v5825_v10 = vld [vmem:[#allocation2 + $0x20] sm:$0xff]  ;;  %v5831_v13 = vld [vmem:[#allocation2 + $0x38] sm:$0xff]  ;;  %s7334_s15 = scalar_lea.vmem %s7284_s10, %s5502_s30  ;;  %s7336_s26 = scalar_lea.vmem %s7282_s8, %s5525_s1 }
 0x120   : > { %1325 = vadd.xlane.f32.xlu1 %v1324_v59  ;;  %1319 = vadd.xlane.f32.xlu0 %v1318_v60  ;;  %v1321_v62 = vsel %vm1317_vm3, %v5805_v61, 0.0  ;;  %v1448_v63 = vmul.f32 %v5805_v61, %v5805_v61  ;;  %v1450_v4 = vmul.f32 %v5799_v58, %v5799_v58  ;;  %v1449_v5 = vmul.f32 %v5795_v56, %v5795_v56  ;;  %v5823_v9 = vld [vmem:[#allocation2 + $0x28] sm:$0xff]  ;;  %v5833_v14 = vld [vmem:[#allocation2 + $0x30] sm:$0xff]  ;;  %v5853_v26 = vld [vmem:[#allocation2 + $0x40] sm:$0xff] }
 0x121   : > { %v1479_v3 = vsel %vm1317_vm3, %v1447_v0, 0.0  ;;  %v1333_v11 = vsel %vm1317_vm3, %v5823_v9, 0.0  ;;  %v1330_v12 = vsel %vm1317_vm3, %v5825_v10, 0.0  ;;  %v1452_v15 = vmul.f32 %v5823_v9, %v5823_v9  ;;  %v5851_v25 = vld [vmem:[#allocation2 + $0x48] sm:$0xff]  ;;  %v5859_v29 = vld [vmem:[#allocation2 + $0x58] sm:$0xff]  ;;  %v5861_v30 = vld [vmem:[#allocation2 + $0x50] sm:$0xff] }
 0x122   : > { %v1482_v2 = vsel %vm1317_vm3, %v1448_v63, 0.0  ;;  %v1488_v7 = vsel %vm1317_vm3, %v1450_v4, 0.0  ;;  %v1485_v8 = vsel %vm1317_vm3, %v1449_v5, 0.0  ;;  %v1451_v16 = vmul.f32 %v5825_v10, %v5825_v10  ;;  %v5879_v41 = vld [vmem:[#allocation2 + $0x68] sm:$0xff]  ;;  %v5881_v42 = vld [vmem:[#allocation2 + $0x60] sm:$0xff]  ;;  %v5887_v45 = vld [vmem:[#allocation2 + $0x78] sm:$0xff] }
 0x123   : > { %v1339_v17 = vsel %vm1317_vm3, %v5831_v13, 0.0  ;;  %v1336_v18 = vsel %vm1317_vm3, %v5833_v14, 0.0  ;;  %v1494_v19 = vsel %vm1317_vm3, %v1452_v15, 0.0  ;;  %v1454_v21 = vmul.f32 %v5831_v13, %v5831_v13  ;;  %v5889_v46 = vld [vmem:[#allocation2 + $0x70] sm:$0xff]  ;;  %v5041_v55 = vld [vmem:[%s5545_s19 + $0x8] sm:$0xff]  }
 0x124   : > { %1328 = vadd.xlane.f32.xlu1 %v1327_v1  ;;  %1322 = vadd.xlane.f32.xlu0 %v1321_v62  ;;  %v1491_v20 = vsel %vm1317_vm3, %v1451_v16, 0.0  ;;  %v1453_v22 = vmul.f32 %v5833_v14, %v5833_v14  ;;  %v1345_v27 = vsel %vm1317_vm3, %v5851_v25, 0.0  ;;  %v1342_v28 = vsel %vm1317_vm3, %v5853_v26, 0.0  ;;  %v5908_v60 = vld [vmem:[#allocation2 + $0x88] sm:$0xff]  ;;  %v5910_v1 = vld [vmem:[#allocation2 + $0x80] sm:$0xff] }
 0x125   : > { %v1500_v23 = vsel %vm1317_vm3, %v1454_v21, 0.0  ;;  %v1351_v31 = vsel %vm1317_vm3, %v5859_v29, 0.0  ;;  %v1348_v32 = vsel %vm1317_vm3, %v5861_v30, 0.0  ;;  %v1456_v33 = vmul.f32 %v5851_v25, %v5851_v25  ;;  %4856 = vmatprep.subr.bf16.mxu0 %v5041_v55  ;;  %v5042_v62 = vld [vmem:[%s5545_s19] sm:$0xff]  }
 0x126   : > { %v1497_v24 = vsel %vm1317_vm3, %v1453_v22, 0.0  ;;  %v1455_v34 = vmul.f32 %v5853_v26, %v5853_v26  ;;  %v1458_v37 = vmul.f32 %v5859_v29, %v5859_v29  ;;  %v1457_v38 = vmul.f32 %v5861_v30, %v5861_v30  ;;  %4857 = vmatpush3.bf16.msra.mxu0 %v5041_v55 }
 0x127   : > { %v1506_v35 = vsel %vm1317_vm3, %v1456_v33, 0.0  ;;  %v1357_v43 = vsel %vm1317_vm3, %v5879_v41, 0.0  ;;  %v1354_v44 = vsel %vm1317_vm3, %v5881_v42, 0.0  ;;  %v1363_v47 = vsel %vm1317_vm3, %v5887_v45, 0.0  ;;  %4858 = vmatprep.subr.bf16.mxu0 %v5042_v62 }
 0x128   : > { %1483 = vadd.xlane.f32.xlu1 %v1482_v2  ;;  %1480 = vadd.xlane.f32.xlu0 %v1479_v3  ;;  %v1503_v36 = vsel %vm1317_vm3, %v1455_v34, 0.0  ;;  %v1512_v39 = vsel %vm1317_vm3, %v1458_v37, 0.0  ;;  %v1509_v40 = vsel %vm1317_vm3, %v1457_v38, 0.0  ;;  %v1360_v48 = vsel %vm1317_vm3, %v5889_v46, 0.0  ;;  %v5917_v2 = vld [vmem:[#allocation2 + $0x98] sm:$0xff]  ;;  %v5919_v3 = vld [vmem:[#allocation2 + $0x90] sm:$0xff] }
 0x129   : > { %v1460_v49 = vmul.f32 %v5879_v41, %v5879_v41  ;;  %v1459_v50 = vmul.f32 %v5881_v42, %v5881_v42  ;;  %v1462_v53 = vmul.f32 %v5887_v45, %v5887_v45  ;;  %v1461_v54 = vmul.f32 %v5889_v46, %v5889_v46 }
 0x12a   : > { %v1369_v63 = vsel %vm1317_vm3, %v5908_v60, 0.0  ;;  %v1366_v0 = vsel %vm1317_vm3, %v5910_v1, 0.0  ;;  %4859 = vmatpush3.bf16.msra.mxu0 %v5042_v62  ;;  %v1375_v4 = vsel %vm1317_vm3, %v5917_v2, 0.0  ;;  %v1372_v5 = vsel %vm1317_vm3, %v5919_v3, 0.0 }
 0x12b   : > { %v1518_v51 = vsel %vm1317_vm3, %v1460_v49, 0.0  ;;  %v1515_v52 = vsel %vm1317_vm3, %v1459_v50, 0.0  ;;  %v1524_v6 = vsel %vm1317_vm3, %v1462_v53, 0.0  ;;  %v1521_v59 = vsel %vm1317_vm3, %v1461_v54, 0.0 }
 0x12c   : > { %1489 = vadd.xlane.f32.xlu1 %v1488_v7  ;;  %1486 = vadd.xlane.f32.xlu0 %v1485_v8  ;;  %v1464_v7 = vmul.f32 %v5908_v60, %v5908_v60  ;;  %v1463_v8 = vmul.f32 %v5910_v1, %v5910_v1  ;;  %v1466_v15 = vmul.f32 %v5917_v2, %v5917_v2 }
 0x12d   : > { %v1465_v16 = vmul.f32 %v5919_v3, %v5919_v3 }
 0x130   : > { %1334 = vadd.xlane.f32.xlu1 %v1333_v11  ;;  %1331 = vadd.xlane.f32.xlu0 %v1330_v12  ;;  %v1530_v11 = vsel %vm1317_vm3, %v1464_v7, 0.0  ;;  %v1527_v12 = vsel %vm1317_vm3, %v1463_v8, 0.0  ;;  %v1316_v7 = vld [vmem:[#allocation2 + $0xf8] sm:$0xff]  ;;  %v1315_v8 = vld [vmem:[#allocation2 + $0xf0] sm:$0xff] }
 0x134   : > { %1340 = vadd.xlane.f32.xlu1 %v1339_v17  ;;  %1337 = vadd.xlane.f32.xlu0 %v1336_v18  ;;  %v1536_v17 = vsel %vm1317_vm3, %v1466_v15, 0.0  ;;  %v1533_v18 = vsel %vm1317_vm3, %v1465_v16, 0.0 }
 0x138   : > { %1495 = vadd.xlane.f32.xlu1 %v1494_v19  ;;  %1492 = vadd.xlane.f32.xlu0 %v1491_v20  ;;  %v5937_v19 = vld [vmem:[#allocation2 + $0xa8] sm:$0xff]  ;;  %v5939_v20 = vld [vmem:[#allocation2 + $0xa0] sm:$0xff] }
 0x139   : > { %v1381_v21 = vsel %vm1317_vm3, %v5937_v19, 0.0  ;;  %v1378_v22 = vsel %vm1317_vm3, %v5939_v20, 0.0 }
 0x13c   : > { %1501 = vadd.xlane.f32.xlu1 %v1500_v23  ;;  %1498 = vadd.xlane.f32.xlu0 %v1497_v24  ;;  %v5945_v23 = vld [vmem:[#allocation2 + $0xb8] sm:$0xff]  ;;  %v5947_v24 = vld [vmem:[#allocation2 + $0xb0] sm:$0xff] }
 0x140   : > { %1346 = vadd.xlane.f32.xlu1 %v1345_v27  ;;  %1343 = vadd.xlane.f32.xlu0 %v1342_v28  ;;  %v1387_v27 = vsel %vm1317_vm3, %v5945_v23, 0.0  ;;  %v1384_v28 = vsel %vm1317_vm3, %v5947_v24, 0.0 }
 0x144   : > { %1352 = vadd.xlane.f32.xlu1 %v1351_v31  ;;  %1349 = vadd.xlane.f32.xlu0 %v1348_v32  ;;  %v1468_v31 = vmul.f32 %v5937_v19, %v5937_v19  ;;  %v1467_v32 = vmul.f32 %v5939_v20, %v5939_v20 }
 0x146   : > { %v1542_v33 = vsel %vm1317_vm3, %v1468_v31, 0.0  ;;  %v1539_v34 = vsel %vm1317_vm3, %v1467_v32, 0.0 }
 0x148   : > { %1507 = vadd.xlane.f32.xlu1 %v1506_v35  ;;  %1504 = vadd.xlane.f32.xlu0 %v1503_v36  ;;  %v1470_v35 = vmul.f32 %v5945_v23, %v5945_v23  ;;  %v1469_v36 = vmul.f32 %v5947_v24, %v5947_v24 }
 0x14a   : > { %v1548_v37 = vsel %vm1317_vm3, %v1470_v35, 0.0  ;;  %v1545_v38 = vsel %vm1317_vm3, %v1469_v36, 0.0 }
 0x14c   : > { %1513 = vadd.xlane.f32.xlu1 %v1512_v39  ;;  %1510 = vadd.xlane.f32.xlu0 %v1509_v40  ;;  %v1310_v39 = vld [vmem:[#allocation2 + $0xc8] sm:$0xff]  ;;  %v1309_v40 = vld [vmem:[#allocation2 + $0xc0] sm:$0xff] }
 0x150   : > { %1358 = vadd.xlane.f32.xlu1 %v1357_v43  ;;  %1355 = vadd.xlane.f32.xlu0 %v1354_v44  ;;  %v1393_v43 = vsel %vm1317_vm3, %v1310_v39, 0.0  ;;  %v1390_v44 = vsel %vm1317_vm3, %v1309_v40, 0.0 }
 0x154   : > { %1364 = vadd.xlane.f32.xlu1 %v1363_v47  ;;  %1361 = vadd.xlane.f32.xlu0 %v1360_v48  ;;  %v1312_v47 = vld [vmem:[#allocation2 + $0xd8] sm:$0xff]  ;;  %v1311_v48 = vld [vmem:[#allocation2 + $0xd0] sm:$0xff] }
 0x155   : > { %v1399_v49 = vsel %vm1317_vm3, %v1312_v47, 0.0  ;;  %v1396_v50 = vsel %vm1317_vm3, %v1311_v48, 0.0  ;;  %v1474_v55 = vmul.f32 %v1312_v47, %v1312_v47 }
 0x158   : > { %1519 = vadd.xlane.f32.xlu1 %v1518_v51  ;;  %1516 = vadd.xlane.f32.xlu0 %v1515_v52  ;;  %v1472_v51 = vmul.f32 %v1310_v39, %v1310_v39  ;;  %v1471_v52 = vmul.f32 %v1309_v40, %v1309_v40 }
 0x15a   : > { %v1554_v53 = vsel %vm1317_vm3, %v1472_v51, 0.0  ;;  %v1551_v54 = vsel %vm1317_vm3, %v1471_v52, 0.0 }
 0x15c   : > { %1525 = vadd.xlane.f32.xlu1 %v1524_v6  ;;  %1522 = vadd.xlane.f32.xlu0 %v1521_v59  ;;  %v1473_v6 = vmul.f32 %v1311_v48, %v1311_v48  ;;  %v1560_v59 = vsel %vm1317_vm3, %v1474_v55, 0.0 }
 0x15e   : > { %v1557_v62 = vsel %vm1317_vm3, %v1473_v6, 0.0 }
 0x160   : > { %1370 = vadd.xlane.f32.xlu1 %v1369_v63  ;;  %1367 = vadd.xlane.f32.xlu0 %v1366_v0  ;;  %v1314_v63 = vld [vmem:[#allocation2 + $0xe8] sm:$0xff]  ;;  %v1313_v0 = vld [vmem:[#allocation2 + $0xe0] sm:$0xff] }
 0x161   : > { %v1476_v15 = vmul.f32 %v1314_v63, %v1314_v63  ;;  %v1475_v16 = vmul.f32 %v1313_v0, %v1313_v0 }
 0x164   : > { %1376 = vadd.xlane.f32.xlu1 %v1375_v4  ;;  %1373 = vadd.xlane.f32.xlu0 %v1372_v5  ;;  %v1405_v4 = vsel %vm1317_vm3, %v1314_v63, 0.0  ;;  %v1402_v5 = vsel %vm1317_vm3, %v1313_v0, 0.0 }
 0x168   : > { %1531 = vadd.xlane.f32.xlu1 %v1530_v11  ;;  %1528 = vadd.xlane.f32.xlu0 %v1527_v12  ;;  %v1411_v11 = vsel %vm1317_vm3, %v1316_v7, 0.0  ;;  %v1408_v12 = vsel %vm1317_vm3, %v1315_v8, 0.0 }
 0x16c   : > { %1537 = vadd.xlane.f32.xlu1 %v1536_v17  ;;  %1534 = vadd.xlane.f32.xlu0 %v1533_v18  ;;  %v1566_v17 = vsel %vm1317_vm3, %v1476_v15, 0.0  ;;  %v1563_v18 = vsel %vm1317_vm3, %v1475_v16, 0.0 }
 0x170   : > { %1382 = vadd.xlane.f32.xlu1 %v1381_v21  ;;  %1379 = vadd.xlane.f32.xlu0 %v1378_v22  ;;  %v1478_v21 = vmul.f32 %v1316_v7, %v1316_v7  ;;  %v1477_v22 = vmul.f32 %v1315_v8, %v1315_v8  ;;  %v1834_v7 = vlaneseq }
 0x174   : > { %1388 = vadd.xlane.f32.xlu1 %v1387_v27  ;;  %1385 = vadd.xlane.f32.xlu0 %v1384_v28  ;;  %v1572_v27 = vsel %vm1317_vm3, %v1478_v21, 0.0  ;;  %v1569_v28 = vsel %vm1317_vm3, %v1477_v22, 0.0 }
 0x178   : > { %1543 = vadd.xlane.f32.xlu1 %v1542_v33  ;;  %1540 = vadd.xlane.f32.xlu0 %v1539_v34 }
 0x17c   : > { %1549 = vadd.xlane.f32.xlu1 %v1548_v37  ;;  %1546 = vadd.xlane.f32.xlu0 %v1545_v38 }
 0x180   : > { %1394 = vadd.xlane.f32.xlu1 %v1393_v43  ;;  %1391 = vadd.xlane.f32.xlu0 %v1390_v44 }
 0x184   : > { %1400 = vadd.xlane.f32.xlu1 %v1399_v49  ;;  %1397 = vadd.xlane.f32.xlu0 %v1396_v50 }
 0x188   : > { %1555 = vadd.xlane.f32.xlu1 %v1554_v53  ;;  %1552 = vadd.xlane.f32.xlu0 %v1551_v54 }
 0x18c   : > { %1561 = vadd.xlane.f32.xlu1 %v1560_v59  ;;  %1558 = vadd.xlane.f32.xlu0 %v1557_v62 }
 0x190   : > { %1406 = vadd.xlane.f32.xlu1 %v1405_v4  ;;  %1403 = vadd.xlane.f32.xlu0 %v1402_v5 }
 0x194   : > { %1412 = vadd.xlane.f32.xlu1 %v1411_v11  ;;  %1409 = vadd.xlane.f32.xlu0 %v1408_v12 }
 0x198   : > { %1567 = vadd.xlane.f32.xlu1 %v1566_v17  ;;  %1564 = vadd.xlane.f32.xlu0 %v1563_v18  ;;  %v5997_v18 = vshrl.u32 %v1834_v7, 7 }
 0x19c   : > { %1573 = vadd.xlane.f32.xlu1 %v1572_v27  ;;  %1570 = vadd.xlane.f32.xlu0 %v1569_v28  ;;  %v1831_v27 = vld [vmem:[%s7332_s16] sm:$0x1] }
 0x1a9   : > { %v1326_v31 = vpop.xlane.xlu1 %1325  ;;  %v1320_v32 = vpop.xlane.xlu0 %1319 }
 0x1aa   : > { %v5981_v35 = vmul.f32 0.03125, %v1320_v32  ;;  %v5985_v37 = vmul.f32 0.03125, %v1326_v31  ;;  %v1832_v32 = vadd.f32 1.0, %v1831_v27 }
 0x1ac   : > { %v1607_v43 = vmul.f32 %v5981_v35, %v5981_v35  ;;  %v1609_v51 = vmul.f32 %v5985_v37, %v5985_v37 }
 0x1ad   : > { %v1329_v33 = vpop.xlane.xlu1 %1328  ;;  %v1323_v34 = vpop.xlane.xlu0 %1322 }
 0x1ae   : > { %v5983_v36 = vmul.f32 0.03125, %v1323_v34  ;;  %v5987_v38 = vmul.f32 0.03125, %v1329_v33  ;;  %v1836_v33 = vsub.s32 0, %v5997_v18 }
 0x1b0   : > { %v1608_v44 = vmul.f32 %v5983_v36, %v5983_v36  ;;  %v1610_v52 = vmul.f32 %v5987_v38, %v5987_v38  ;;  %v1706_v27 = vsub.f32 %v5799_v58, %v5987_v38 }
 0x1b1   : > { %v1484_v39 = vpop.xlane.xlu1 %1483  ;;  %v1481_v40 = vpop.xlane.xlu0 %1480 }
 0x1b2   : > { %v1576_v47 = vmul.f32 0.03125, %v1484_v39  ;;  %v1575_v48 = vmul.f32 0.03125, %v1481_v40 }
 0x1b4   : > { %v1640_v49 = vsub.f32 %v1576_v47, %v1608_v44  ;;  %v1639_v50 = vsub.f32 %v1575_v48, %v1607_v43 }
 0x1b5   : > { %v1490_v53 = vpop.xlane.xlu1 %1489  ;;  %v1487_v54 = vpop.xlane.xlu0 %1486 }
 0x1b6   : > { %v1672_v55 = vmax.f32 %v1640_v49, 0.0  ;;  %v1671_v6 = vmax.f32 %v1639_v50, 0.0  ;;  %v1578_v59 = vmul.f32 0.03125, %v1490_v53  ;;  %v1577_v62 = vmul.f32 0.03125, %v1487_v54 }
 0x1b7   : > { %v6021_v53 = vrot.slane %v1832_v32, %v1836_v33 }
 0x1b8   : > { %v1736_v63 = vadd.f32 1e-06, %v1672_v55  ;;  %v1735_v0 = vadd.f32 1e-06, %v1671_v6  ;;  %v1642_v4 = vsub.f32 %v1578_v59, %v1610_v52  ;;  %v1641_v5 = vsub.f32 %v1577_v62, %v1609_v51 }
 0x1b9   : > { %v1335_v8 = vpop.xlane.xlu1 %1334  ;;  %v1332_v11 = vpop.xlane.xlu0 %1331  ;;  %v1704_v52 = vsub.f32 %v5805_v61, %v5983_v36 }
 0x1ba   : > { %5067 = vrsqrt.f32 %v1736_v63  ;;  %v1674_v12 = vmax.f32 %v1642_v4, 0.0  ;;  %v1673_v15 = vmax.f32 %v1641_v5, 0.0  ;;  %v6004_v28 = vmul.f32 0.03125, %v1335_v8 }
 0x1bb   : > { %5069 = vrsqrt.f32 %v1735_v0  ;;  %v6006_v31 = vmul.f32 0.03125, %v1332_v11  ;;  %v1703_v5 = vsub.f32 %v5797_v57, %v5981_v35 }
 0x1bc   : > { %v1738_v16 = vadd.f32 1e-06, %v1674_v12  ;;  %v1737_v17 = vadd.f32 1e-06, %v1673_v15  ;;  %v1612_v43 = vmul.f32 %v6004_v28, %v6004_v28  ;;  %v6030_v15 = vld [vmem:[%s7333_s21] ss:$0 sm:$0xff] }
 0x1bd   : > { %v1341_v21 = vpop.xlane.xlu1 %1340  ;;  %v1338_v22 = vpop.xlane.xlu0 %1337  ;;  %v1611_v44 = vmul.f32 %v6006_v31, %v6006_v31 }
 0x1be   : > { %5071 = vrsqrt.f32 %v1738_v16  ;;  %v6009_v34 = vmul.f32 0.03125, %v1341_v21  ;;  %v6015_v49 = vmul.f32 0.03125, %v1338_v22 }
 0x1bf   : > { %5073 = vrsqrt.f32 %v1737_v17 }
 0x1c0   : > { %v1614_v54 = vmul.f32 %v6009_v34, %v6009_v34  ;;  %v1613_v61 = vmul.f32 %v6015_v49, %v6015_v49 }
 0x1c1   : > { %v1496_v39 = vpop.xlane.xlu1 %1495  ;;  %v1493_v40 = vpop.xlane.xlu0 %1492 }
 0x1c2   : > { %v1580_v47 = vmul.f32 0.03125, %v1496_v39  ;;  %v1579_v48 = vmul.f32 0.03125, %v1493_v40  ;;  %v1705_v39 = vsub.f32 %v5795_v56, %v5985_v37 }
 0x1c4   : > { %v1644_v50 = vsub.f32 %v1580_v47, %v1612_v43  ;;  %v1643_v51 = vsub.f32 %v1579_v48, %v1611_v44 }
 0x1c5   : > { %v1502_v55 = vpop.xlane.xlu1 %1501  ;;  %v1499_v6 = vpop.xlane.xlu0 %1498 }
 0x1c6   : > { %v1676_v59 = vmax.f32 %v1644_v50, 0.0  ;;  %v1675_v62 = vmax.f32 %v1643_v51, 0.0  ;;  %v1582_v63 = vmul.f32 0.03125, %v1502_v55  ;;  %v1581_v0 = vmul.f32 0.03125, %v1499_v6 }
 0x1c7   : > { %v5068_v4 = vpop.eup %5067 }
 0x1c8   : > { %v5070_v36 = vpop.eup %5069  ;;  %v1800_v7 = vmul.f32 %v5068_v4, %v1704_v52  ;;  %v1740_v8 = vadd.f32 1e-06, %v1676_v59  ;;  %v1739_v11 = vadd.f32 1e-06, %v1675_v62  ;;  %v1646_v12 = vsub.f32 %v1582_v63, %v1614_v54 }
 0x1c9   : > { %v1799_v16 = vmul.f32 %v5070_v36, %v1703_v5  ;;  %v1645_v17 = vsub.f32 %v1581_v0, %v1613_v61  ;;  %v1347_v21 = vpop.xlane.xlu1 %1346  ;;  %v1344_v22 = vpop.xlane.xlu0 %1343 }
 0x1ca   : > { %v1840_v32 = vmul.f32 %v6021_v53, %v1800_v7  ;;  %5075 = vrsqrt.f32 %v1740_v8  ;;  %v1678_v57 = vmax.f32 %v1646_v12, 0.0  ;;  %v6041_v56 = vmul.f32 0.03125, %v1347_v21 }
 0x1cb   : > { %v5072_v35 = vpop.eup %5071  ;;  %v1839_v40 = vmul.f32 %v6021_v53, %v1799_v16  ;;  %5077 = vrsqrt.f32 %v1739_v11  ;;  %v1677_v43 = vmax.f32 %v1645_v17, 0.0  ;;  %v6044_v62 = vmul.f32 0.03125, %v1344_v22 }
 0x1cc   : > { %v5074_v44 = vpop.eup %5073  ;;  %v1879_v47 = vadd.f32 %v6030_v15, %v1840_v32  ;;  %v1802_v48 = vmul.f32 %v5072_v35, %v1706_v27  ;;  %v1742_v50 = vadd.f32 1e-06, %v1678_v57  ;;  %v1616_v36 = vmul.f32 %v6041_v56, %v6041_v56 }
 0x1cd   : > { %v1878_v58 = vadd.f32 %v6030_v15, %v1839_v40  ;;  %v1801_v38 = vmul.f32 %v5074_v44, %v1705_v39  ;;  %v1741_v51 = vadd.f32 1e-06, %v1677_v43  ;;  %v1353_v52 = vpop.xlane.xlu1 %1352  ;;  %v1350_v54 = vpop.xlane.xlu0 %1349  ;;  %v1615_v12 = vmul.f32 %v6044_v62, %v6044_v62 }
 0x1ce   : > { %v4713_v55 = vpack.c.bf16 %v1879_v47, %v1879_v47  ;;  %v1842_v6 = vmul.f32 %v6021_v53, %v1802_v48  ;;  %5079 = vrsqrt.f32 %v1742_v50  ;;  %v6052_v7 = vmul.f32 0.03125, %v1353_v52 }
 0x1cf   : > { %v4712_v37 = vpack.c.bf16 %v1878_v58, %v1878_v58  ;;  %v1841_v59 = vmul.f32 %v6021_v53, %v1801_v38  ;;  %5081 = vrsqrt.f32 %v1741_v51  ;;  %v6054_v8 = vmul.f32 0.03125, %v1350_v54 }
 0x1d0   : > { %2040 = vst.msk [vmem:[#allocation3 + $0x4] sm:$0xf] %vm2038_vm4, %v4713_v55  ;;  %v1881_v63 = vadd.f32 %v6030_v15, %v1842_v6  ;;  %v1708_v21 = vsub.f32 %v5823_v9, %v6004_v28  ;;  %v1618_v35 = vmul.f32 %v6052_v7, %v6052_v7  ;;  %v1707_v47 = vsub.f32 %v5825_v10, %v6006_v31 }
 0x1d1   : > { %2039 = vst.msk [vmem:[#allocation3] sm:$0xf] %vm2038_vm4, %v4712_v37  ;;  %v1880_v0 = vadd.f32 %v6030_v15, %v1841_v59  ;;  %v1508_v4 = vpop.xlane.xlu1 %1507  ;;  %v1505_v5 = vpop.xlane.xlu0 %1504  ;;  %v1617_v39 = vmul.f32 %v6054_v8, %v6054_v8  ;;  %v1710_v59 = vsub.f32 %v5831_v13, %v6009_v34  ;;  %v1709_v31 = vsub.f32 %v5833_v14, %v6015_v49 }
 0x1d2   : > { %v4715_v61 = vpack.c.bf16 %v1881_v63, %v1881_v63  ;;  %v1584_v16 = vmul.f32 0.03125, %v1508_v4  ;;  %v1583_v17 = vmul.f32 0.03125, %v1505_v5 }
 0x1d3   : > { %v4714_v11 = vpack.c.bf16 %v1880_v0, %v1880_v0 }
 0x1d4   : > { %2042 = vst.msk [vmem:[#allocation3 + $0xc] sm:$0xf] %vm2038_vm4, %v4715_v61  ;;  %v1648_v22 = vsub.f32 %v1584_v16, %v1616_v36  ;;  %v1647_v27 = vsub.f32 %v1583_v17, %v1615_v12 }
 0x1d5   : > { %2041 = vst.msk [vmem:[#allocation3 + $0x8] sm:$0xf] %vm2038_vm4, %v4714_v11  ;;  %v1514_v32 = vpop.xlane.xlu1 %1513  ;;  %v1511_v57 = vpop.xlane.xlu0 %1510 }
 0x1d6   : > { %v1586_v40 = vmul.f32 0.03125, %v1514_v32  ;;  %v1585_v43 = vmul.f32 0.03125, %v1511_v57  ;;  %v1680_v48 = vmax.f32 %v1648_v22, 0.0  ;;  %v1679_v50 = vmax.f32 %v1647_v27, 0.0 }
 0x1d7   : > { %v5076_v44 = vpop.eup %5075 }
 0x1d8   : > { %v5078_v58 = vpop.eup %5077  ;;  %v1804_v9 = vmul.f32 %v5076_v44, %v1708_v21  ;;  %v1650_v28 = vsub.f32 %v1586_v40, %v1618_v35  ;;  %v1649_v38 = vsub.f32 %v1585_v43, %v1617_v39  ;;  %v5043_v51 = vld [vmem:[#allocation3] sm:$0xff]   ;;  %v1744_v54 = vadd.f32 1e-06, %v1680_v48 }
 0x1d9   : > { %v1803_v52 = vmul.f32 %v5078_v58, %v1707_v47  ;;  %v1743_v55 = vadd.f32 1e-06, %v1679_v50  ;;  %v1359_v6 = vpop.xlane.xlu1 %1358  ;;  %v1356_v37 = vpop.xlane.xlu0 %1355  ;;  %4860 = vmatprep.mubr.msk.bf16.mxu0 %vm1317_vm3, %v5043_v51 }
 0x1da   : > { %v1844_v63 = vmul.f32 %v6021_v53, %v1804_v9  ;;  %v1682_v0 = vmax.f32 %v1650_v28, 0.0  ;;  %v1681_v4 = vmax.f32 %v1649_v38, 0.0  ;;  %5083 = vrsqrt.f32 %v1744_v54 }
 0x1db   : > { %v5080_v10 = vpop.eup %5079  ;;  %v1843_v5 = vmul.f32 %v6021_v53, %v1803_v52  ;;  %5085 = vrsqrt.f32 %v1743_v55  ;;  %v6078_v14 = vmul.f32 0.03125, %v1359_v6  ;;  %v6082_v35 = vmul.f32 0.03125, %v1356_v37 }
 0x1dc   : > { %v5082_v61 = vpop.eup %5081  ;;  %v1883_v36 = vadd.f32 %v6030_v15, %v1844_v63  ;;  %v1806_v11 = vmul.f32 %v5080_v10, %v1710_v59  ;;  %v1746_v12 = vadd.f32 1e-06, %v1682_v0  ;;  %v5044_v13 = vld [vmem:[#allocation3 + $0x8] sm:$0xff]   ;;  %v1745_v17 = vadd.f32 1e-06, %v1681_v4 }
 0x1dd   : > { %v1882_v34 = vadd.f32 %v6030_v15, %v1843_v5  ;;  %v1805_v16 = vmul.f32 %v5082_v61, %v1709_v31  ;;  %v1365_v21 = vpop.xlane.xlu1 %1364  ;;  %v1362_v22 = vpop.xlane.xlu0 %1361  ;;  %4861 = vmatmul.mubr.msk.bf16.vlgmr.msra.gmra.mxu0 %vm1317_vm3, %v5044_v13  ;;  %v1620_v48 = vmul.f32 %v6078_v14, %v6078_v14  ;;  %v1619_v28 = vmul.f32 %v6082_v35, %v6082_v35 }
 0x1de   : > { %v4717_v27 = vpack.c.bf16 %v1883_v36, %v1883_v36  ;;  %v1846_v32 = vmul.f32 %v6021_v53, %v1806_v11  ;;  %5087 = vrsqrt.f32 %v1746_v12  ;;  %v6090_v50 = vmul.f32 0.03125, %v1365_v21 }
 0x1df   : > { %v4716_v49 = vpack.c.bf16 %v1882_v34, %v1882_v34  ;;  %v1845_v57 = vmul.f32 %v6021_v53, %v1805_v16  ;;  %5089 = vrsqrt.f32 %v1745_v17  ;;  %v6092_v58 = vmul.f32 0.03125, %v1362_v22 }
 0x1e0   : > { %2044 = vst.msk [vmem:[#allocation3 + $0x14] sm:$0xf] %vm2038_vm4, %v4717_v27  ;;  %v1885_v39 = vadd.f32 %v6030_v15, %v1846_v32  ;;  %v1622_v37 = vmul.f32 %v6090_v50, %v6090_v50  ;;  %v1712_v4 = vsub.f32 %v5851_v25, %v6041_v56  ;;  %v1711_v61 = vsub.f32 %v5853_v26, %v6044_v62 }
 0x1e1   : > { %2043 = vst.msk [vmem:[#allocation3 + $0x10] sm:$0xf] %vm2038_vm4, %v4716_v49  ;;  %v1884_v40 = vadd.f32 %v6030_v15, %v1845_v57  ;;  %v1520_v43 = vpop.xlane.xlu1 %1519  ;;  %v1517_v44 = vpop.xlane.xlu0 %1516  ;;  %v1621_v59 = vmul.f32 %v6092_v58, %v6092_v58  ;;  %v1714_v27 = vsub.f32 %v5859_v29, %v6052_v7  ;;  %v1713_v26 = vsub.f32 %v5861_v30, %v6054_v8 }
 0x1e2   : > { %v4719_v47 = vpack.c.bf16 %v1885_v39, %v1885_v39  ;;  %v1588_v38 = vmul.f32 0.03125, %v1520_v43  ;;  %v1587_v51 = vmul.f32 0.03125, %v1517_v44 }
 0x1e3   : > { %v4718_v9 = vpack.c.bf16 %v1884_v40, %v1884_v40 }
 0x1e4   : > { %2046 = vst.msk [vmem:[#allocation3 + $0x1c] sm:$0xf] %vm2038_vm4, %v4719_v47  ;;  %v1652_v52 = vsub.f32 %v1588_v38, %v1620_v48  ;;  %v1651_v54 = vsub.f32 %v1587_v51, %v1619_v28 }
 0x1e5   : > { %2045 = vst.msk [vmem:[#allocation3 + $0x18] sm:$0xf] %vm2038_vm4, %v4718_v9  ;;  %v1526_v55 = vpop.xlane.xlu1 %1525  ;;  %v1523_v6 = vpop.xlane.xlu0 %1522 }
 0x1e6   : > { %v1590_v63 = vmul.f32 0.03125, %v1526_v55  ;;  %v1589_v0 = vmul.f32 0.03125, %v1523_v6  ;;  %v1684_v10 = vmax.f32 %v1652_v52, 0.0  ;;  %v1683_v31 = vmax.f32 %v1651_v54, 0.0 }
 0x1e7   : > { %v5084_v5 = vpop.eup %5083 }
 0x1e8   : > { %v1654_v36 = vsub.f32 %v1590_v63, %v1622_v37  ;;  %v1653_v11 = vsub.f32 %v1589_v0, %v1621_v59  ;;  %v5045_v12 = vld [vmem:[#allocation3 + $0x10] sm:$0xff]   ;;  %v5086_v13 = vpop.eup %5085  ;;  %v1808_v34 = vmul.f32 %v5084_v5, %v1712_v4  ;;  %v1748_v16 = vadd.f32 1e-06, %v1684_v10 }
 0x1e9   : > { %v1747_v17 = vadd.f32 1e-06, %v1683_v31  ;;  %v1371_v21 = vpop.xlane.xlu1 %1370  ;;  %v1368_v22 = vpop.xlane.xlu0 %1367  ;;  %v1807_v32 = vmul.f32 %v5086_v13, %v1711_v61  ;;  %4864 = vmatprep.mubr.msk.bf16.mxu0 %vm1317_vm3, %v5045_v12 }
 0x1ea   : > { %v1686_v25 = vmax.f32 %v1654_v36, 0.0  ;;  %v1685_v56 = vmax.f32 %v1653_v11, 0.0  ;;  %v1848_v62 = vmul.f32 %v6021_v53, %v1808_v34  ;;  %5091 = vrsqrt.f32 %v1748_v16 }
 0x1eb   : > { %v5088_v49 = vpop.eup %5087  ;;  %v1847_v39 = vmul.f32 %v6021_v53, %v1807_v32  ;;  %5093 = vrsqrt.f32 %v1747_v17  ;;  %v6116_v8 = vmul.f32 0.03125, %v1371_v21  ;;  %v6120_v52 = vmul.f32 0.03125, %v1368_v22 }
 0x1ec   : > { %v5090_v57 = vpop.eup %5089  ;;  %v1810_v40 = vmul.f32 %v5088_v49, %v1714_v27  ;;  %v1750_v43 = vadd.f32 1e-06, %v1686_v25  ;;  %v5046_v44 = vld [vmem:[#allocation3 + $0x18] sm:$0xff]   ;;  %v1887_v29 = vadd.f32 %v6030_v15, %v1848_v62  ;;  %v1749_v47 = vadd.f32 1e-06, %v1685_v56 }
 0x1ed   : > { %v1809_v7 = vmul.f32 %v5090_v57, %v1713_v26  ;;  %v1377_v48 = vpop.xlane.xlu1 %1376  ;;  %v1374_v9 = vpop.xlane.xlu0 %1373  ;;  %v1886_v28 = vadd.f32 %v6030_v15, %v1847_v39  ;;  %4865 = vmatmul.mubr.msk.bf16.gmra.mxu0 %vm1317_vm3, %v5046_v44  ;;  %v1624_v4 = vmul.f32 %v6116_v8, %v6116_v8  ;;  %v1623_v61 = vmul.f32 %v6120_v52, %v6120_v52 }
 0x1ee   : > { %v1850_v30 = vmul.f32 %v6021_v53, %v1810_v40  ;;  %5095 = vrsqrt.f32 %v1750_v43  ;;  %v4721_v38 = vpack.c.bf16 %v1887_v29, %v1887_v29  ;;  %v6125_v37 = vmul.f32 0.03125, %v1377_v48 }
 0x1ef   : > { %v1849_v51 = vmul.f32 %v6021_v53, %v1809_v7  ;;  %5097 = vrsqrt.f32 %v1749_v47  ;;  %v4720_v54 = vpack.c.bf16 %v1886_v28, %v1886_v28  ;;  %v6130_v10 = vmul.f32 0.03125, %v1374_v9 }
 0x1f0   : > { %v1889_v55 = vadd.f32 %v6030_v15, %v1850_v30  ;;  %2048 = vst.msk [vmem:[#allocation3 + $0x24] sm:$0xf] %vm2038_vm4, %v4721_v38  ;;  %v1626_v12 = vmul.f32 %v6125_v37, %v6125_v37  ;;  %v1716_v32 = vsub.f32 %v5879_v41, %v6078_v14  ;;  %v1715_v49 = vsub.f32 %v5881_v42, %v6082_v35 }
 0x1f1   : > { %v1888_v6 = vadd.f32 %v6030_v15, %v1849_v51  ;;  %v1532_v59 = vpop.xlane.xlu1 %1531  ;;  %v1529_v63 = vpop.xlane.xlu0 %1528  ;;  %2047 = vst.msk [vmem:[#allocation3 + $0x20] sm:$0xf] %vm2038_vm4, %v4720_v54  ;;  %v1625_v17 = vmul.f32 %v6130_v10, %v6130_v10  ;;  %v1718_v40 = vsub.f32 %v5887_v45, %v6090_v50  ;;  %v1717_v42 = vsub.f32 %v5889_v46, %v6092_v58 }
 0x1f2   : > { %v4723_v0 = vpack.c.bf16 %v1889_v55, %v1889_v55  ;;  %v1592_v31 = vmul.f32 0.03125, %v1532_v59  ;;  %v1591_v36 = vmul.f32 0.03125, %v1529_v63 }
 0x1f3   : > { %v4722_v5 = vpack.c.bf16 %v1888_v6, %v1888_v6 }
 0x1f4   : > { %2050 = vst.msk [vmem:[#allocation3 + $0x2c] sm:$0xf] %vm2038_vm4, %v4723_v0  ;;  %v1656_v11 = vsub.f32 %v1592_v31, %v1624_v4  ;;  %v1655_v13 = vsub.f32 %v1591_v36, %v1623_v61 }
 0x1f5   : > { %2049 = vst.msk [vmem:[#allocation3 + $0x28] sm:$0xf] %vm2038_vm4, %v4722_v5  ;;  %v1538_v34 = vpop.xlane.xlu1 %1537  ;;  %v1535_v16 = vpop.xlane.xlu0 %1534 }
 0x1f6   : > { %v1688_v21 = vmax.f32 %v1656_v11, 0.0  ;;  %v1594_v22 = vmul.f32 0.03125, %v1538_v34  ;;  %v1593_v27 = vmul.f32 0.03125, %v1535_v16  ;;  %v1687_v25 = vmax.f32 %v1655_v13, 0.0 }
 0x1f7   : > { %v5092_v56 = vpop.eup %5091 }
 0x1f8   : > { %v1752_v26 = vadd.f32 1e-06, %v1688_v21  ;;  %v1658_v62 = vsub.f32 %v1594_v22, %v1626_v12  ;;  %v1657_v57 = vsub.f32 %v1593_v27, %v1625_v17  ;;  %v5094_v39 = vpop.eup %5093  ;;  %v1812_v43 = vmul.f32 %v5092_v56, %v1716_v32  ;;  %v5047_v47 = vld [vmem:[#allocation3 + $0x20] sm:$0xff]  }
 0x1f9   : > { %v1751_v44 = vadd.f32 1e-06, %v1687_v25  ;;  %v1383_v29 = vpop.xlane.xlu1 %1382  ;;  %v1380_v7 = vpop.xlane.xlu0 %1379  ;;  %v1811_v48 = vmul.f32 %v5094_v39, %v1715_v49  ;;  %4868 = vmatprep.mubr.msk.bf16.mxu0 %vm1317_vm3, %v5047_v47  ;;  %v1720_v25 = vsub.f32 %v5908_v60, %v6116_v8 }
 0x1fa   : > { %5099 = vrsqrt.f32 %v1752_v26  ;;  %v1690_v41 = vmax.f32 %v1658_v62, 0.0  ;;  %v1689_v14 = vmax.f32 %v1657_v57, 0.0  ;;  %v1852_v35 = vmul.f32 %v6021_v53, %v1812_v43 }
 0x1fb   : > { %v5096_v9 = vpop.eup %5095  ;;  %5101 = vrsqrt.f32 %v1751_v44  ;;  %v1851_v45 = vmul.f32 %v6021_v53, %v1811_v48  ;;  %v6154_v58 = vmul.f32 0.03125, %v1383_v29  ;;  %v6157_v31 = vmul.f32 0.03125, %v1380_v7 }
 0x1fc   : > { %v5098_v28 = vpop.eup %5097  ;;  %v1814_v50 = vmul.f32 %v5096_v9, %v1718_v40  ;;  %v1754_v30 = vadd.f32 1e-06, %v1690_v41  ;;  %v1753_v38 = vadd.f32 1e-06, %v1689_v14  ;;  %v1891_v51 = vadd.f32 %v6030_v15, %v1852_v35  ;;  %v5048_v59 = vld [vmem:[#allocation3 + $0x28] sm:$0xff]  }
 0x1fd   : > { %v1813_v54 = vmul.f32 %v5098_v28, %v1717_v42  ;;  %v1389_v55 = vpop.xlane.xlu1 %1388  ;;  %v1386_v6 = vpop.xlane.xlu0 %1385  ;;  %v1890_v63 = vadd.f32 %v6030_v15, %v1851_v45  ;;  %4869 = vmatmul.mubr.msk.bf16.gmra.mxu0 %vm1317_vm3, %v5048_v59  ;;  %v1628_v34 = vmul.f32 %v6154_v58, %v6154_v58  ;;  %v1627_v22 = vmul.f32 %v6157_v31, %v6157_v31 }
 0x1fe   : > { %v1854_v46 = vmul.f32 %v6021_v53, %v1814_v50  ;;  %5103 = vrsqrt.f32 %v1754_v30  ;;  %v4725_v0 = vpack.c.bf16 %v1891_v51, %v1891_v51  ;;  %v6166_v16 = vmul.f32 0.03125, %v1389_v55 }
 0x1ff   : > { %v1853_v4 = vmul.f32 %v6021_v53, %v1813_v54  ;;  %5105 = vrsqrt.f32 %v1753_v38  ;;  %v4724_v5 = vpack.c.bf16 %v1890_v63, %v1890_v63  ;;  %v6168_v17 = vmul.f32 0.03125, %v1386_v6 }
 0x200   : > { %v1893_v61 = vadd.f32 %v6030_v15, %v1854_v46  ;;  %2052 = vst.msk [vmem:[#allocation3 + $0x34] sm:$0xf] %vm2038_vm4, %v4725_v0  ;;  %v1630_v57 = vmul.f32 %v6166_v16, %v6166_v16  ;;  %v1719_v29 = vsub.f32 %v5910_v1, %v6120_v52  ;;  %v1722_v45 = vsub.f32 %v5917_v2, %v6125_v37 }
 0x201   : > { %v1892_v36 = vadd.f32 %v6030_v15, %v1853_v4  ;;  %v1544_v11 = vpop.xlane.xlu1 %1543  ;;  %v1541_v12 = vpop.xlane.xlu0 %1540  ;;  %2051 = vst.msk [vmem:[#allocation3 + $0x30] sm:$0xf] %vm2038_vm4, %v4724_v5  ;;  %v1629_v39 = vmul.f32 %v6168_v17, %v6168_v17  ;;  %v1721_v52 = vsub.f32 %v5919_v3, %v6130_v10 }
 0x202   : > { %v4727_v13 = vpack.c.bf16 %v1893_v61, %v1893_v61  ;;  %v1596_v27 = vmul.f32 0.03125, %v1544_v11  ;;  %v1595_v32 = vmul.f32 0.03125, %v1541_v12 }
 0x203   : > { %v4726_v21 = vpack.c.bf16 %v1892_v36, %v1892_v36 }
 0x204   : > { %2054 = vst.msk [vmem:[#allocation3 + $0x3c] sm:$0xf] %vm2038_vm4, %v4727_v13  ;;  %v1660_v56 = vsub.f32 %v1596_v27, %v1628_v34  ;;  %v1659_v49 = vsub.f32 %v1595_v32, %v1627_v22 }
 0x205   : > { %2053 = vst.msk [vmem:[#allocation3 + $0x38] sm:$0xf] %vm2038_vm4, %v4726_v21  ;;  %v1550_v26 = vpop.xlane.xlu1 %1549  ;;  %v1547_v62 = vpop.xlane.xlu0 %1546 }
 0x206   : > { %v1598_v40 = vmul.f32 0.03125, %v1550_v26  ;;  %v1597_v43 = vmul.f32 0.03125, %v1547_v62  ;;  %v1692_v7 = vmax.f32 %v1660_v56, 0.0  ;;  %v1691_v47 = vmax.f32 %v1659_v49, 0.0 }
 0x207   : > { %v5100_v44 = vpop.eup %5099 }
 0x208   : > { %v5102_v48 = vpop.eup %5101  ;;  %v1816_v60 = vmul.f32 %v5100_v44, %v1720_v25  ;;  %v1662_v8 = vsub.f32 %v1598_v40, %v1630_v57  ;;  %v1661_v41 = vsub.f32 %v1597_v43, %v1629_v39  ;;  %v1756_v9 = vadd.f32 1e-06, %v1692_v7  ;;  %v5049_v51 = vld [vmem:[#allocation3 + $0x30] sm:$0xff]  }
 0x209   : > { %v1815_v14 = vmul.f32 %v5102_v48, %v1719_v29  ;;  %v1755_v42 = vadd.f32 1e-06, %v1691_v47  ;;  %v1395_v35 = vpop.xlane.xlu1 %1394  ;;  %v1392_v28 = vpop.xlane.xlu0 %1391  ;;  %4872 = vmatprep.mubr.msk.bf16.mxu0 %vm1317_vm3, %v5049_v51 }
 0x20a   : > { %v1856_v50 = vmul.f32 %v6021_v53, %v1816_v60  ;;  %v1694_v30 = vmax.f32 %v1662_v8, 0.0  ;;  %v1693_v38 = vmax.f32 %v1661_v41, 0.0  ;;  %5107 = vrsqrt.f32 %v1756_v9 }
 0x20b   : > { %v5104_v1 = vpop.eup %5103  ;;  %v1855_v54 = vmul.f32 %v6021_v53, %v1815_v14  ;;  %5109 = vrsqrt.f32 %v1755_v42  ;;  %v6192_v10 = vmul.f32 0.03125, %v1395_v35  ;;  %v6196_v12 = vmul.f32 0.03125, %v1392_v28 }
 0x20c   : > { %v5106_v55 = vpop.eup %5105  ;;  %v1895_v6 = vadd.f32 %v6030_v15, %v1856_v50  ;;  %v1818_v59 = vmul.f32 %v5104_v1, %v1722_v45  ;;  %v1758_v63 = vadd.f32 1e-06, %v1694_v30  ;;  %v5050_v2 = vld [vmem:[#allocation3 + $0x38] sm:$0xff]   ;;  %v1757_v0 = vadd.f32 1e-06, %v1693_v38 }
 0x20d   : > { %v1894_v37 = vadd.f32 %v6030_v15, %v1855_v54  ;;  %v1817_v46 = vmul.f32 %v5106_v55, %v1721_v52  ;;  %v1401_v4 = vpop.xlane.xlu1 %1400  ;;  %v1398_v5 = vpop.xlane.xlu0 %1397  ;;  %4873 = vmatmul.mubr.msk.bf16.gmra.mxu0 %vm1317_vm3, %v5050_v2  ;;  %v1632_v32 = vmul.f32 %v6192_v10, %v6192_v10  ;;  %v1631_v26 = vmul.f32 %v6196_v12, %v6196_v12 }
 0x20e   : > { %v4729_v61 = vpack.c.bf16 %v1895_v6, %v1895_v6  ;;  %v1858_v3 = vmul.f32 %v6021_v53, %v1818_v59  ;;  %5111 = vrsqrt.f32 %v1758_v63  ;;  %v6204_v25 = vmul.f32 0.03125, %v1401_v4 }
 0x20f   : > { %v4728_v36 = vpack.c.bf16 %v1894_v37, %v1894_v37  ;;  %v1857_v11 = vmul.f32 %v6021_v53, %v1817_v46  ;;  %5113 = vrsqrt.f32 %v1757_v0  ;;  %v6206_v56 = vmul.f32 0.03125, %v1398_v5 }
 0x210   : > { %2056 = vst.msk [vmem:[#allocation3 + $0x44] sm:$0xf] %vm2038_vm4, %v4729_v61  ;;  %v1897_v13 = vadd.f32 %v6030_v15, %v1858_v3  ;;  %v1634_v29 = vmul.f32 %v6204_v25, %v6204_v25  ;;  %v1724_v60 = vsub.f32 %v5937_v19, %v6154_v58  ;;  %v1723_v9 = vsub.f32 %v5939_v20, %v6157_v31 }
 0x211   : > { %2055 = vst.msk [vmem:[#allocation3 + $0x40] sm:$0xf] %vm2038_vm4, %v4728_v36  ;;  %v1896_v34 = vadd.f32 %v6030_v15, %v1857_v11  ;;  %v1556_v21 = vpop.xlane.xlu1 %1555  ;;  %v1553_v22 = vpop.xlane.xlu0 %1552  ;;  %v1633_v7 = vmul.f32 %v6206_v56, %v6206_v56  ;;  %v1726_v52 = vsub.f32 %v5945_v23, %v6166_v16  ;;  %v1725_v20 = vsub.f32 %v5947_v24, %v6168_v17 }
 0x212   : > { %v4731_v27 = vpack.c.bf16 %v1897_v13, %v1897_v13  ;;  %v1600_v62 = vmul.f32 0.03125, %v1556_v21  ;;  %v1599_v57 = vmul.f32 0.03125, %v1553_v22 }
 0x213   : > { %v4730_v49 = vpack.c.bf16 %v1896_v34, %v1896_v34 }
 0x214   : > { %2058 = vst.msk [vmem:[#allocation3 + $0x4c] sm:$0xf] %vm2038_vm4, %v4731_v27  ;;  %v1664_v39 = vsub.f32 %v1600_v62, %v1632_v32  ;;  %v1663_v40 = vsub.f32 %v1599_v57, %v1631_v26 }
 0x215   : > { %2057 = vst.msk [vmem:[#allocation3 + $0x48] sm:$0xf] %vm2038_vm4, %v4730_v49  ;;  %v1562_v43 = vpop.xlane.xlu1 %1561  ;;  %v1559_v44 = vpop.xlane.xlu0 %1558 }
 0x216   : > { %v1602_v47 = vmul.f32 0.03125, %v1562_v43  ;;  %v1601_v48 = vmul.f32 0.03125, %v1559_v44  ;;  %v1696_v8 = vmax.f32 %v1664_v39, 0.0  ;;  %v1695_v41 = vmax.f32 %v1663_v40, 0.0 }
 0x217   : > { %v5108_v14 = vpop.eup %5107 }
 0x218   : > { %v1666_v42 = vsub.f32 %v1602_v47, %v1634_v29  ;;  %v1665_v35 = vsub.f32 %v1601_v48, %v1633_v7  ;;  %v5051_v28 = vld [vmem:[#allocation3 + $0x40] sm:$0xff]   ;;  %v5110_v45 = vpop.eup %5109  ;;  %v1820_v50 = vmul.f32 %v5108_v14, %v1724_v60  ;;  %v1760_v30 = vadd.f32 1e-06, %v1696_v8  ;;  %v5259_v14 = vld [vmem:[#allocation2 + $0xc8] sm:$0xff] }
 0x219   : > { %v1759_v38 = vadd.f32 1e-06, %v1695_v41  ;;  %v1407_v51 = vpop.xlane.xlu1 %1406  ;;  %v1404_v1 = vpop.xlane.xlu0 %1403  ;;  %v1819_v54 = vmul.f32 %v5110_v45, %v1723_v9  ;;  %4876 = vmatprep.mubr.msk.bf16.mxu0 %vm1317_vm3, %v5051_v28  ;;  %v1728_v9 = vsub.f32 %v5259_v14, %v6192_v10  ;;  %v5260_v28 = vld [vmem:[#allocation2 + $0xc0] sm:$0xff] }
 0x21a   : > { %v1698_v19 = vmax.f32 %v1666_v42, 0.0  ;;  %v1697_v58 = vmax.f32 %v1665_v35, 0.0  ;;  %v1860_v31 = vmul.f32 %v6021_v53, %v1820_v50  ;;  %5115 = vrsqrt.f32 %v1760_v30 }
 0x21b   : > { %v5112_v55 = vpop.eup %5111  ;;  %v1859_v59 = vmul.f32 %v6021_v53, %v1819_v54  ;;  %5117 = vrsqrt.f32 %v1759_v38  ;;  %v6230_v17 = vmul.f32 0.03125, %v1407_v51  ;;  %v6234_v36 = vmul.f32 0.03125, %v1404_v1  ;;  %v5261_v1 = vld [vmem:[#allocation2 + $0xd8] sm:$0xff] }
 0x21c   : > { %v5114_v6 = vpop.eup %5113  ;;  %v1822_v63 = vmul.f32 %v5112_v55, %v1726_v52  ;;  %v1762_v2 = vadd.f32 1e-06, %v1698_v19  ;;  %v5052_v37 = vld [vmem:[#allocation3 + $0x48] sm:$0xff]   ;;  %v1899_v23 = vadd.f32 %v6030_v15, %v1860_v31  ;;  %v1761_v46 = vadd.f32 1e-06, %v1697_v58 }
 0x21d   : > { %v1821_v16 = vmul.f32 %v5114_v6, %v1725_v20  ;;  %v1413_v0 = vpop.xlane.xlu1 %1412  ;;  %v1410_v4 = vpop.xlane.xlu0 %1409  ;;  %v1898_v5 = vadd.f32 %v6030_v15, %v1859_v59  ;;  %4877 = vmatmul.mubr.msk.bf16.gmra.mxu0 %vm1317_vm3, %v5052_v37  ;;  %v1636_v49 = vmul.f32 %v6230_v17, %v6230_v17  ;;  %v1635_v39 = vmul.f32 %v6234_v36, %v6234_v36  ;;  %v5262_v6 = vld [vmem:[#allocation2 + $0xd0] sm:$0xff] }
 0x21e   : > { %v1862_v24 = vmul.f32 %v6021_v53, %v1822_v63  ;;  %5119 = vrsqrt.f32 %v1762_v2  ;;  %v4733_v61 = vpack.c.bf16 %v1899_v23, %v1899_v23  ;;  %v6239_v21 = vmul.f32 0.03125, %v1413_v0 }
 0x21f   : > { %v1861_v3 = vmul.f32 %v6021_v53, %v1821_v16  ;;  %5121 = vrsqrt.f32 %v1761_v46  ;;  %v4732_v11 = vpack.c.bf16 %v1898_v5, %v1898_v5  ;;  %v6244_v26 = vmul.f32 0.03125, %v1410_v4  ;;  %v5059_v4 = vld [vmem:[%s5555_s5 + $0x38] sm:$0xff]  }
 0x220   : > { %v1901_v13 = vadd.f32 %v6030_v15, %v1862_v24  ;;  %2060 = vst.msk [vmem:[#allocation3 + $0x54] sm:$0xf] %vm2038_vm4, %v4733_v61  ;;  %v1638_v44 = vmul.f32 %v6239_v21, %v6239_v21  ;;  %v1727_v45 = vsub.f32 %v5260_v28, %v6196_v12  ;;  %v1730_v52 = vsub.f32 %v5261_v1, %v6204_v25  ;;  %v5267_v1 = vld [vmem:[%s7333_s21] ss:$0 sm:$0xff] }
 0x221   : > { %v1900_v34 = vadd.f32 %v6030_v15, %v1861_v3  ;;  %v1568_v22 = vpop.xlane.xlu1 %1567  ;;  %v1565_v27 = vpop.xlane.xlu0 %1564  ;;  %2059 = vst.msk [vmem:[#allocation3 + $0x50] sm:$0xf] %vm2038_vm4, %v4732_v11  ;;  %v1637_v48 = vmul.f32 %v6244_v26, %v6244_v26  ;;  %v1729_v59 = vsub.f32 %v5262_v6, %v6206_v56  ;;  %4892 = vmatprep.subr.bf16.mxu0 %v5059_v4 }
 0x222   : > { %v4735_v32 = vpack.c.bf16 %v1901_v13, %v1901_v13  ;;  %v1604_v62 = vmul.f32 0.03125, %v1568_v22  ;;  %v1603_v40 = vmul.f32 0.03125, %v1565_v27  ;;  %4893 = vmatpush3.bf16.msra.mxu0 %v5059_v4  ;;  %4978 = vmatprep.subr.bf16.mxu1 %v5059_v4 }
 0x223   : > { %v4734_v57 = vpack.c.bf16 %v1900_v34, %v1900_v34  ;;  %v5060_v34 = vld [vmem:[%s5555_s5 + $0x30] sm:$0xff]   ;;  %4986 = vmatpush3.bf16.msra.mxu1 %v5059_v4 }
 0x224   : > { %2062 = vst.msk [vmem:[#allocation3 + $0x5c] sm:$0xf] %vm2038_vm4, %v4735_v32  ;;  %v1668_v43 = vsub.f32 %v1604_v62, %v1636_v49  ;;  %v1667_v29 = vsub.f32 %v1603_v40, %v1635_v39  ;;  %4894 = vmatprep.subr.bf16.mxu0 %v5060_v34  ;;  %4979 = vmatprep.subr.bf16.mxu1 %v5060_v34  ;;  %v5061_v32 = vld [vmem:[%s5555_s5 + $0x28] sm:$0xff]   ;;  %v5264_v39 = vld [vmem:[#allocation2 + $0xe0] sm:$0xff] }
 0x225   : > { %2061 = vst.msk [vmem:[#allocation3 + $0x58] sm:$0xf] %vm2038_vm4, %v4734_v57  ;;  %v1574_v7 = vpop.xlane.xlu1 %1573  ;;  %v1571_v47 = vpop.xlane.xlu0 %1570  ;;  %v5263_v49 = vld [vmem:[#allocation2 + $0xe8] sm:$0xff]  ;;  %v1731_v40 = vsub.f32 %v5264_v39, %v6234_v36 }
 0x226   : > { %v1700_v60 = vmax.f32 %v1668_v43, 0.0  ;;  %v1606_v8 = vmul.f32 0.03125, %v1574_v7  ;;  %v1605_v41 = vmul.f32 0.03125, %v1571_v47  ;;  %v1699_v42 = vmax.f32 %v1667_v29, 0.0  ;;  %4895 = vmatpush3.bf16.msra.mxu0 %v5060_v34  ;;  %v5062_v47 = vld [vmem:[%s5555_s5 + $0x20] sm:$0xff]  }
 0x227   : > { %v5116_v35 = vpop.eup %5115  ;;  %4987 = vmatpush3.bf16.msra.mxu1 %v5060_v34  ;;  %v1732_v62 = vsub.f32 %v5263_v49, %v6230_v17  ;;  %4896 = vmatprep.subr.bf16.mxu0 %v5061_v32 }
 0x228   : > { %v1764_v50 = vadd.f32 1e-06, %v1700_v60  ;;  %v1670_v30 = vsub.f32 %v1606_v8, %v1638_v44  ;;  %v1669_v38 = vsub.f32 %v1605_v41, %v1637_v48  ;;  %v5118_v51 = vpop.eup %5117  ;;  %v1824_v54 = vmul.f32 %v5116_v35, %v1728_v9  ;;  %v5053_v58 = vld [vmem:[#allocation3 + $0x50] sm:$0xff]   ;;  %4980 = vmatprep.subr.bf16.mxu1 %v5061_v32  ;;  %v5265_v48 = vld [vmem:[#allocation2 + $0xf8] sm:$0xff] }
 0x229   : > { %v1763_v19 = vadd.f32 1e-06, %v1699_v42  ;;  %v1823_v55 = vmul.f32 %v5118_v51, %v1727_v45  ;;  %4880 = vmatprep.mubr.msk.bf16.mxu0 %vm1317_vm3, %v5053_v58  ;;  %v1734_v60 = vsub.f32 %v5265_v48, %v6239_v21  ;;  %v5266_v41 = vld [vmem:[#allocation2 + $0xf0] sm:$0xff] }
 0x22a   : > { %5123 = vrsqrt.f32 %v1764_v50  ;;  %v1702_v20 = vmax.f32 %v1670_v30, 0.0  ;;  %v1701_v10 = vmax.f32 %v1669_v38, 0.0  ;;  %v1864_v12 = vmul.f32 %v6021_v53, %v1824_v54  ;;  %4897 = vmatpush3.bf16.msra.mxu0 %v5061_v32  ;;  %v5063_v50 = vld [vmem:[%s5555_s5 + $0x18] sm:$0xff]   ;;  %v5064_v54 = vld [vmem:[%s5555_s5 + $0x10] sm:$0xff]  }
 0x22b   : > { %v5120_v31 = vpop.eup %5119  ;;  %5125 = vrsqrt.f32 %v1763_v19  ;;  %v1863_v25 = vmul.f32 %v6021_v53, %v1823_v55  ;;  %4988 = vmatpush3.bf16.msra.mxu1 %v5061_v32  ;;  %v1733_v14 = vsub.f32 %v5266_v41, %v6244_v26  ;;  %4898 = vmatprep.subr.bf16.mxu0 %v5062_v47 }
 0x22c   : > { %v5122_v63 = vpop.eup %5121  ;;  %v1826_v2 = vmul.f32 %v5120_v31, %v1730_v52  ;;  %v1766_v37 = vadd.f32 1e-06, %v1702_v20  ;;  %v1765_v23 = vadd.f32 1e-06, %v1701_v10  ;;  %v1903_v16 = vadd.f32 %v6030_v15, %v1864_v12  ;;  %v5054_v0 = vld [vmem:[#allocation3 + $0x58] sm:$0xff]   ;;  %4981 = vmatprep.subr.bf16.mxu1 %v5062_v47  ;;  %v5066_v20 = vld [vmem:[%s5555_s5] sm:$0xff]  }
 0x22d   : > { %v1825_v46 = vmul.f32 %v5122_v63, %v1729_v59  ;;  %v1902_v5 = vadd.f32 %v6030_v15, %v1863_v25  ;;  %4881 = vmatmul.mubr.msk.bf16.gmra.mxu0 %vm1317_vm3, %v5054_v0  ;;  %v6304_v31 = vld [vmem:[%s7334_s15] ss:$0 sm:$0xff] }
 0x22e   : > { %v1866_v56 = vmul.f32 %v6021_v53, %v1826_v2  ;;  %5127 = vrsqrt.f32 %v1766_v37  ;;  %v4737_v24 = vpack.c.bf16 %v1903_v16, %v1903_v16  ;;  %4899 = vmatpush3.bf16.msra.mxu0 %v5062_v47 }
 0x22f   : > { %v1865_v61 = vmul.f32 %v6021_v53, %v1825_v46  ;;  %5129 = vrsqrt.f32 %v1765_v23  ;;  %v4736_v3 = vpack.c.bf16 %v1902_v5, %v1902_v5  ;;  %4989 = vmatpush3.bf16.msra.mxu1 %v5062_v47  ;;  %4900 = vmatprep.subr.bf16.mxu0 %v5063_v50  ;;  %v5374_v47 = vmov 0.0  }
 0x230   : > { %v1905_v11 = vadd.f32 %v6030_v15, %v1866_v56  ;;  %2064 = vst.msk [vmem:[#allocation3 + $0x64] sm:$0xf] %vm2038_vm4, %v4737_v24  ;;  %4982 = vmatprep.subr.bf16.mxu1 %v5063_v50 }
 0x231   : > { %v1904_v13 = vadd.f32 %v6030_v15, %v1865_v61  ;;  %2063 = vst.msk [vmem:[#allocation3 + $0x60] sm:$0xf] %vm2038_vm4, %v4736_v3 }
 0x232   : > { %v4739_v22 = vpack.c.bf16 %v1905_v11, %v1905_v11  ;;  %4901 = vmatpush3.bf16.msra.mxu0 %v5063_v50  ;;  %2073 = vst.msk [vmem:[#allocation4 + $0x10] sm:$0xff] %vm1317_vm3, %v5374_v47  ;;  %2071 = vst.msk [vmem:[#allocation4] sm:$0xff] %vm1317_vm3, %v5374_v47 }
 0x233   : > { %v4738_v27 = vpack.c.bf16 %v1904_v13, %v1904_v13  ;;  %4990 = vmatpush3.bf16.msra.mxu1 %v5063_v50  ;;  %4902 = vmatprep.subr.bf16.mxu0 %v5064_v54  ;;  %2072 = vst.msk [vmem:[#allocation4 + $0x8] sm:$0xff] %vm1317_vm3, %v5374_v47  ;;  %2074 = vst.msk [vmem:[#allocation4 + $0x18] sm:$0xff] %vm1317_vm3, %v5374_v47 }
 0x234   : > { %2066 = vst.msk [vmem:[#allocation3 + $0x6c] sm:$0xf] %vm2038_vm4, %v4739_v22  ;;  %4983 = vmatprep.subr.bf16.mxu1 %v5064_v54 }
 0x235   : > { %2065 = vst.msk [vmem:[#allocation3 + $0x68] sm:$0xf] %vm2038_vm4, %v4738_v27 }
 0x236   : > { %4903 = vmatpush3.bf16.msra.mxu0 %v5064_v54  ;;  %2075 = vst.msk [vmem:[#allocation4 + $0x20] sm:$0xff] %vm1317_vm3, %v5374_v47  ;;  %2076 = vst.msk [vmem:[#allocation4 + $0x28] sm:$0xff] %vm1317_vm3, %v5374_v47 }
 0x237   : > { %v5124_v57 = vpop.eup %5123  ;;  %4991 = vmatpush3.bf16.msra.mxu1 %v5064_v54  ;;  %2077 = vst.msk [vmem:[#allocation4 + $0x30] sm:$0xff] %vm1317_vm3, %v5374_v47  ;;  %2078 = vst.msk [vmem:[#allocation4 + $0x38] sm:$0xff] %vm1317_vm3, %v5374_v47 }
 0x238   : > { %v5126_v43 = vpop.eup %5125  ;;  %v1828_v44 = vmul.f32 %v5124_v57, %v1732_v62  ;;  %v5055_v7 = vld [vmem:[#allocation3 + $0x60] sm:$0xff]   ;;  %2079 = vst.msk [vmem:[#allocation4 + $0x40] sm:$0xff] %vm1317_vm3, %v5374_v47  ;;  %2080 = vst.msk [vmem:[#allocation4 + $0x48] sm:$0xff] %vm1317_vm3, %v5374_v47 }
 0x239   : > { %v1827_v29 = vmul.f32 %v5126_v43, %v1731_v40  ;;  %4884 = vmatprep.mubr.msk.bf16.mxu0 %vm1317_vm3, %v5055_v7  ;;  %2081 = vst.msk [vmem:[#allocation4 + $0x50] sm:$0xff] %vm1317_vm3, %v5374_v47  ;;  %2082 = vst.msk [vmem:[#allocation4 + $0x58] sm:$0xff] %vm1317_vm3, %v5374_v47 }
 0x23a   : > { %v1868_v8 = vmul.f32 %v6021_v53, %v1828_v44  ;;  %2083 = vst.msk [vmem:[#allocation4 + $0x60] sm:$0xff] %vm1317_vm3, %v5374_v47  ;;  %2084 = vst.msk [vmem:[#allocation4 + $0x68] sm:$0xff] %vm1317_vm3, %v5374_v47 }
 0x23b   : > { %v5128_v17 = vpop.eup %5127  ;;  %v1867_v36 = vmul.f32 %v6021_v53, %v1827_v29  ;;  %2085 = vst.msk [vmem:[#allocation4 + $0x70] sm:$0xff] %vm1317_vm3, %v5374_v47  ;;  %2086 = vst.msk [vmem:[#allocation4 + $0x78] sm:$0xff] %vm1317_vm3, %v5374_v47 }
 0x23c   : > { %v5130_v9 = vpop.eup %5129  ;;  %v1907_v42 = vadd.f32 %v6030_v15, %v1868_v8  ;;  %v1830_v35 = vmul.f32 %v5128_v17, %v1734_v60  ;;  %v5056_v28 = vld [vmem:[#allocation3 + $0x68] sm:$0xff]   ;;  %2087 = vst.msk [vmem:[#allocation4 + $0x80] sm:$0xff] %vm1317_vm3, %v5374_v47  ;;  %2088 = vst.msk [vmem:[#allocation4 + $0x88] sm:$0xff] %vm1317_vm3, %v5374_v47 }
 0x23d   : > { %v1906_v21 = vadd.f32 %v6030_v15, %v1867_v36  ;;  %v1829_v45 = vmul.f32 %v5130_v9, %v1733_v14  ;;  %4885 = vmatmul.mubr.msk.bf16.gmra.mxu0 %vm1317_vm3, %v5056_v28  ;;  %2089 = vst.msk [vmem:[#allocation4 + $0x90] sm:$0xff] %vm1317_vm3, %v5374_v47  ;;  %2090 = vst.msk [vmem:[#allocation4 + $0x98] sm:$0xff] %vm1317_vm3, %v5374_v47 }
 0x23e   : > { %v4741_v26 = vpack.c.bf16 %v1907_v42, %v1907_v42  ;;  %v1870_v30 = vmul.f32 %v6021_v53, %v1830_v35  ;;  %2091 = vst.msk [vmem:[#allocation4 + $0xa0] sm:$0xff] %vm1317_vm3, %v5374_v47  ;;  %2092 = vst.msk [vmem:[#allocation4 + $0xa8] sm:$0xff] %vm1317_vm3, %v5374_v47 }
 0x23f   : > { %v4740_v38 = vpack.c.bf16 %v1906_v21, %v1906_v21  ;;  %v1869_v51 = vmul.f32 %v6021_v53, %v1829_v45  ;;  %v5065_v53 = vld [vmem:[%s5555_s5 + $0x8] sm:$0xff]   ;;  %2093 = vst.msk [vmem:[#allocation4 + $0xb0] sm:$0xff] %vm1317_vm3, %v5374_v47  ;;  %2094 = vst.msk [vmem:[#allocation4 + $0xb8] sm:$0xff] %vm1317_vm3, %v5374_v47  ;;  %s7335_s5 = sld [smem:[#allocation5_spill]] }
 0x240   : > { %2068 = vst.msk [vmem:[#allocation3 + $0x74] sm:$0xf] %vm2038_vm4, %v4741_v26  ;;  %v1909_v52 = vadd.f32 %v5267_v1, %v1870_v30  ;;  %4904 = vmatprep.subr.bf16.mxu0 %v5065_v53  ;;  %4984 = vmatprep.subr.bf16.mxu1 %v5065_v53 }
 0x241   : > { %2067 = vst.msk [vmem:[#allocation3 + $0x70] sm:$0xf] %vm2038_vm4, %v4740_v38  ;;  %v1908_v15 = vadd.f32 %v5267_v1, %v1869_v51  ;;  %4905 = vmatpush3.bf16.msra.mxu0 %v5065_v53  ;;  %4992 = vmatpush3.bf16.msra.mxu1 %v5065_v53 }
 0x242   : > { %v4743_v19 = vpack.c.bf16 %v1909_v52, %v1909_v52  ;;  %4906 = vmatprep.subr.bf16.mxu0 %v5066_v20  ;;  %4985 = vmatprep.subr.bf16.mxu1 %v5066_v20  ;;  %2095 = vst.msk [vmem:[#allocation4 + $0xc0] sm:$0xff] %vm1317_vm3, %v5374_v47  ;;  %2096 = vst.msk [vmem:[#allocation4 + $0xc8] sm:$0xff] %vm1317_vm3, %v5374_v47 }
 0x243   : > { %v4742_v58 = vpack.c.bf16 %v1908_v15, %v1908_v15  ;;  %2097 = vst.msk [vmem:[#allocation4 + $0xd0] sm:$0xff] %vm1317_vm3, %v5374_v47  ;;  %2098 = vst.msk [vmem:[#allocation4 + $0xd8] sm:$0xff] %vm1317_vm3, %v5374_v47 }
 0x244   : > { %2070 = vst.msk [vmem:[#allocation3 + $0x7c] sm:$0xf] %vm2038_vm4, %v4743_v19 }
 0x245   : > { %2069 = vst.msk [vmem:[#allocation3 + $0x78] sm:$0xf] %vm2038_vm4, %v4742_v58  ;;  %4907 = vmatpush3.bf16.msra.mxu0 %v5066_v20  ;;  %4993 = vmatpush3.bf16.msra.mxu1 %v5066_v20  ;;  %p3218_p8 = scmp.eq.s32.totalorder %s7335_s5, 1 }
 0x246   : > { %2099 = vst.msk [vmem:[#allocation4 + $0xe0] sm:$0xff] %vm1317_vm3, %v5374_v47  ;;  %2100 = vst.msk [vmem:[#allocation4 + $0xe8] sm:$0xff] %vm1317_vm3, %v5374_v47  ;;  %s7339_s27 = sld [smem:[#allocation23_spill]] (%p3218_p8)  ;;  %vm4191_vm5 = vcmask (%p3218_p8), 31744  }
 0x247   : > { %2101 = vst.msk [vmem:[#allocation4 + $0xf0] sm:$0xff] %vm1317_vm3, %v5374_v47  ;;  %2102 = vst.msk [vmem:[#allocation4 + $0xf8] sm:$0xff] %vm1317_vm3, %v5374_v47 }
 0x248   : > { %v5057_v55 = vld [vmem:[#allocation3 + $0x70] sm:$0xff]  }
 0x249   : > { %4888 = vmatprep.mubr.msk.bf16.mxu0 %vm1317_vm3, %v5057_v55 }
 0x24c   : > { %v5058_v10 = vld [vmem:[#allocation3 + $0x78] sm:$0xff]  }
 0x24d   : > { %4889 = vmatmul.mubr.msk.bf16.gmra.mxu0 %vm1317_vm3, %v5058_v10 }
 0x29d   : > { %v4862_v6 = vpop.f32.mrf.mxu0 }
 0x29e   : > { %v6307_v59 = vadd.f32 %v4862_v6, %v6304_v31 }
 0x29f   : > { %v2321_v12 = vpop.f32.mrf.mxu0 }
 0x2a0   : > { %v4644_v63 = vmul.f32 -1.442695, %v6307_v59  ;;  %v6311_v25 = vadd.f32 %v6304_v31, %v2321_v12 }
 0x2a1   : > { %v4863_v2 = vpop.f32.mrf.mxu0 }
 0x2a2   : > { %5131 = vpow2.f32 %v4644_v63  ;;  %v4642_v37 = vmul.f32 -1.442695, %v6311_v25  ;;  %v6315_v23 = vadd.f32 %v4863_v2, %v6304_v31 }
 0x2a3   : > { %v2324_v16 = vpop.f32.mrf.mxu0 }
 0x2a4   : > { %5133 = vpow2.f32 %v4642_v37  ;;  %v4645_v46 = vmul.f32 -1.442695, %v6315_v23  ;;  %v6319_v0 = vadd.f32 %v6304_v31, %v2324_v16 }
 0x2a6   : > { %5135 = vpow2.f32 %v4645_v46  ;;  %v4643_v4 = vmul.f32 -1.442695, %v6319_v0 }
 0x2a8   : > { %5137 = vpow2.f32 %v4643_v4 }
 0x2ad   : > { %v4866_v5 = vpop.f32.mrf.mxu0 }
 0x2ae   : > { %v6323_v56 = vadd.f32 %v4866_v5, %v6304_v31 }
 0x2af   : > { %v5132_v24 = vpop.eup %5131  ;;  %v2337_v61 = vpop.f32.mrf.mxu0 }
 0x2b0   : > { %v2546_v3 = vadd.f32 1.0, %v5132_v24  ;;  %v4648_v11 = vmul.f32 -1.442695, %v6323_v56  ;;  %v6327_v13 = vadd.f32 %v6304_v31, %v2337_v61 }
 0x2b1   : > { %v5134_v34 = vpop.eup %5133  ;;  %v4867_v22 = vpop.f32.mrf.mxu0 }
 0x2b2   : > { %5139 = vrcp.f32 %v2546_v3  ;;  %v2544_v27 = vadd.f32 1.0, %v5134_v34  ;;  %v4646_v32 = vmul.f32 -1.442695, %v6327_v13  ;;  %v6331_v49 = vadd.f32 %v4867_v22, %v6304_v31 }
 0x2b3   : > { %v5136_v62 = vpop.eup %5135  ;;  %5141 = vpow2.f32 %v4648_v11  ;;  %v2340_v57 = vpop.f32.mrf.mxu0 }
 0x2b4   : > { %5143 = vrcp.f32 %v2544_v27  ;;  %v2547_v39 = vadd.f32 1.0, %v5136_v62  ;;  %v4649_v40 = vmul.f32 -1.442695, %v6331_v49  ;;  %v6335_v43 = vadd.f32 %v6304_v31, %v2340_v57 }
 0x2b5   : > { %v5138_v44 = vpop.eup %5137  ;;  %5145 = vpow2.f32 %v4646_v32 }
 0x2b6   : > { %5147 = vrcp.f32 %v2547_v39  ;;  %v2545_v29 = vadd.f32 1.0, %v5138_v44  ;;  %v4647_v7 = vmul.f32 -1.442695, %v6335_v43 }
 0x2b7   : > { %5149 = vpow2.f32 %v4649_v40 }
 0x2b8   : > { %5151 = vrcp.f32 %v2545_v29 }
 0x2b9   : > { %5153 = vpow2.f32 %v4647_v7 }
 0x2bd   : > { %v4870_v48 = vpop.f32.mrf.mxu0 }
 0x2be   : > { %v6371_v8 = vadd.f32 %v4870_v48, %v6304_v31 }
 0x2bf   : > { %v5140_v60 = vpop.eup %5139  ;;  %v2353_v41 = vpop.f32.mrf.mxu0 }
 0x2c0   : > { %v5142_v17 = vpop.eup %5141  ;;  %v4652_v9 = vmul.f32 -1.442695, %v6371_v8  ;;  %v6375_v42 = vadd.f32 %v6304_v31, %v2353_v41  ;;  %v2642_v55 = vmul.f32 %v5140_v60, %v6307_v59 }
 0x2c1   : > { %v5144_v14 = vpop.eup %5143  ;;  %v2550_v36 = vadd.f32 1.0, %v5142_v17  ;;  %v4871_v28 = vpop.f32.mrf.mxu0 }
 0x2c2   : > { %v5146_v35 = vpop.eup %5145  ;;  %v4650_v50 = vmul.f32 -1.442695, %v6375_v42  ;;  %v6379_v26 = vadd.f32 %v4871_v28, %v6304_v31  ;;  %v2640_v58 = vmul.f32 %v5144_v14, %v6311_v25 }
 0x2c3   : > { %v5148_v21 = vpop.eup %5147  ;;  %5155 = vrcp.f32 %v2550_v36  ;;  %v2548_v45 = vadd.f32 1.0, %v5146_v35  ;;  %v2356_v51 = vpop.f32.mrf.mxu0 }
 0x2c4   : > { %v5150_v30 = vpop.eup %5149  ;;  %v2643_v38 = vmul.f32 %v5148_v21, %v6315_v23  ;;  %5157 = vpow2.f32 %v4652_v9  ;;  %v4653_v15 = vmul.f32 -1.442695, %v6379_v26  ;;  %v6384_v54 = vadd.f32 %v6304_v31, %v2356_v51 }
 0x2c5   : > { %v5152_v1 = vpop.eup %5151  ;;  %5159 = vrcp.f32 %v2548_v45  ;;  %v2551_v52 = vadd.f32 1.0, %v5150_v30 }
 0x2c6   : > { %v5154_v19 = vpop.eup %5153  ;;  %v2641_v53 = vmul.f32 %v5152_v1, %v6319_v0  ;;  %5161 = vpow2.f32 %v4650_v50  ;;  %v4651_v10 = vmul.f32 -1.442695, %v6384_v54  ;;  %v2673_v12 = vpack.c.bf16 %v2643_v38, %v2642_v55 }
 0x2c7   : > { %5163 = vrcp.f32 %v2551_v52  ;;  %v2549_v20 = vadd.f32 1.0, %v5154_v19 }
 0x2c8   : > { %5165 = vpow2.f32 %v4653_v15  ;;  %v2672_v6 = vpack.c.bf16 %v2641_v53, %v2640_v58 }
 0x2c9   : > { %5167 = vrcp.f32 %v2549_v20 }
 0x2ca   : > { %5169 = vpow2.f32 %v4651_v10  ;;  %4908 = vmatprep.mubr.bf16.mxu0 %v2672_v6 }
 0x2cb   : > { %4909 = vmatmul.mubr.bf16.vlgmr.msra.gmra.mxu0 %v2673_v12 }
 0x2cd   : > { %v4874_v63 = vpop.f32.mrf.mxu0 }
 0x2ce   : > { %v6391_v2 = vadd.f32 %v4874_v63, %v6304_v31 }
 0x2cf   : > { %v2369_v25 = vpop.f32.mrf.mxu0 }
 0x2d0   : > { %v5156_v37 = vpop.eup %5155  ;;  %v4656_v23 = vmul.f32 -1.442695, %v6391_v2  ;;  %v6395_v59 = vadd.f32 %v6304_v31, %v2369_v25 }
 0x2d1   : > { %v5158_v16 = vpop.eup %5157  ;;  %v4875_v46 = vpop.f32.mrf.mxu0  ;;  %v2646_v47 = vmul.f32 %v5156_v37, %v6323_v56 }
 0x2d2   : > { %v5160_v0 = vpop.eup %5159  ;;  %v2554_v4 = vadd.f32 1.0, %v5158_v16  ;;  %5171 = vpow2.f32 %v4656_v23  ;;  %v4654_v5 = vmul.f32 -1.442695, %v6395_v59  ;;  %v6399_v24 = vadd.f32 %v4875_v46, %v6304_v31 }
 0x2d3   : > { %v5162_v61 = vpop.eup %5161  ;;  %v2372_v3 = vpop.f32.mrf.mxu0  ;;  %v2644_v29 = vmul.f32 %v5160_v0, %v6327_v13 }
 0x2d4   : > { %v5164_v11 = vpop.eup %5163  ;;  %5173 = vrcp.f32 %v2554_v4  ;;  %v2552_v34 = vadd.f32 1.0, %v5162_v61  ;;  %v4657_v22 = vmul.f32 -1.442695, %v6399_v24  ;;  %v6403_v27 = vadd.f32 %v6304_v31, %v2372_v3 }
 0x2d5   : > { %v5166_v32 = vpop.eup %5165  ;;  %5175 = vpow2.f32 %v4654_v5  ;;  %v2647_v57 = vmul.f32 %v5164_v11, %v6331_v49 }
 0x2d6   : > { %v5168_v62 = vpop.eup %5167  ;;  %5177 = vrcp.f32 %v2552_v34  ;;  %v2555_v39 = vadd.f32 1.0, %v5166_v32  ;;  %v4655_v40 = vmul.f32 -1.442695, %v6403_v27 }
 0x2d7   : > { %v5170_v44 = vpop.eup %5169  ;;  %5179 = vpow2.f32 %v4657_v22  ;;  %v2645_v7 = vmul.f32 %v5168_v62, %v6335_v43  ;;  %v2675_v17 = vpack.c.bf16 %v2647_v57, %v2646_v47 }
 0x2d8   : > { %5181 = vrcp.f32 %v2555_v39  ;;  %v2553_v48 = vadd.f32 1.0, %v5170_v44 }
 0x2d9   : > { %5183 = vpow2.f32 %v4655_v40  ;;  %v2674_v60 = vpack.c.bf16 %v2645_v7, %v2644_v29 }
 0x2da   : > { %5185 = vrcp.f32 %v2553_v48 }
 0x2db   : > { %4912 = vmatprep.mubr.bf16.mxu1 %v2674_v60 }
 0x2dc   : > { %4913 = vmatmul.mubr.bf16.vlgmr.msra.gmra.mxu1 %v2675_v17 }
 0x2dd   : > { %v4878_v49 = vpop.f32.mrf.mxu0 }
 0x2de   : > { %v6411_v41 = vadd.f32 %v4878_v49, %v6304_v31 }
 0x2df   : > { %v5172_v14 = vpop.eup %5171  ;;  %v2385_v36 = vpop.f32.mrf.mxu0 }
 0x2e0   : > { %v2558_v9 = vadd.f32 1.0, %v5172_v14  ;;  %v4660_v13 = vmul.f32 -1.442695, %v6411_v41  ;;  %v6415_v43 = vadd.f32 %v6304_v31, %v2385_v36 }
 0x2e1   : > { %v5174_v56 = vpop.eup %5173  ;;  %v4879_v35 = vpop.f32.mrf.mxu0 }
 0x2e2   : > { %v5176_v28 = vpop.eup %5175  ;;  %5187 = vrcp.f32 %v2558_v9  ;;  %v4658_v21 = vmul.f32 -1.442695, %v6415_v43  ;;  %v6419_v45 = vadd.f32 %v4879_v35, %v6304_v31  ;;  %v2650_v63 = vmul.f32 %v5174_v56, %v6371_v8 }
 0x2e3   : > { %v5178_v50 = vpop.eup %5177  ;;  %v2556_v30 = vadd.f32 1.0, %v5176_v28  ;;  %5189 = vpow2.f32 %v4660_v13  ;;  %v2388_v38 = vpop.f32.mrf.mxu0 }
 0x2e4   : > { %v5180_v51 = vpop.eup %5179  ;;  %5191 = vpow2.f32 %v4658_v21  ;;  %v4661_v1 = vmul.f32 -1.442695, %v6419_v45  ;;  %v6423_v52 = vadd.f32 %v6304_v31, %v2388_v38  ;;  %v2648_v6 = vmul.f32 %v5178_v50, %v6375_v42 }
 0x2e5   : > { %v5182_v15 = vpop.eup %5181  ;;  %5193 = vrcp.f32 %v2556_v30  ;;  %v2559_v19 = vadd.f32 1.0, %v5180_v51 }
 0x2e6   : > { %v5184_v58 = vpop.eup %5183  ;;  %5195 = vpow2.f32 %v4661_v1  ;;  %v4659_v53 = vmul.f32 -1.442695, %v6423_v52  ;;  %v2651_v20 = vmul.f32 %v5182_v15, %v6379_v26 }
 0x2e7   : > { %v5186_v55 = vpop.eup %5185  ;;  %5197 = vrcp.f32 %v2559_v19  ;;  %v2557_v10 = vadd.f32 1.0, %v5184_v58 }
 0x2e8   : > { %v2649_v12 = vmul.f32 %v5186_v55, %v6384_v54  ;;  %5199 = vpow2.f32 %v4659_v53  ;;  %v2677_v37 = vpack.c.bf16 %v2651_v20, %v2650_v63 }
 0x2e9   : > { %5201 = vrcp.f32 %v2557_v10 }
 0x2ea   : > { %v2676_v25 = vpack.c.bf16 %v2649_v12, %v2648_v6 }
 0x2ec   : > { %4916 = vmatprep.mubr.bf16.mxu1 %v2676_v25 }
 0x2ed   : > { %4917 = vmatmul.mubr.bf16.gmra.mxu1 %v2677_v37  ;;  %v4882_v23 = vpop.f32.mrf.mxu0 }
 0x2ee   : > { %v6431_v46 = vadd.f32 %v4882_v23, %v6304_v31 }
 0x2ef   : > { %v5188_v16 = vpop.eup %5187  ;;  %v2401_v0 = vpop.f32.mrf.mxu0 }
 0x2f0   : > { %v5190_v26 = vpop.eup %5189  ;;  %v4664_v42 = vmul.f32 -1.442695, %v6431_v46  ;;  %v6435_v54 = vadd.f32 %v6304_v31, %v2401_v0  ;;  %v2654_v49 = vmul.f32 %v5188_v16, %v6391_v2 }
 0x2f1   : > { %v5192_v4 = vpop.eup %5191  ;;  %v2562_v5 = vadd.f32 1.0, %v5190_v26  ;;  %v4883_v3 = vpop.f32.mrf.mxu0 }
 0x2f2   : > { %v5194_v8 = vpop.eup %5193  ;;  %v2560_v61 = vadd.f32 1.0, %v5192_v4  ;;  %v4662_v34 = vmul.f32 -1.442695, %v6435_v54  ;;  %v6439_v22 = vadd.f32 %v4883_v3, %v6304_v31 }
 0x2f3   : > { %v5196_v11 = vpop.eup %5195  ;;  %5203 = vrcp.f32 %v2562_v5  ;;  %v2404_v57 = vpop.f32.mrf.mxu0  ;;  %v2652_v48 = vmul.f32 %v5194_v8, %v6395_v59 }
 0x2f4   : > { %v5198_v32 = vpop.eup %5197  ;;  %5205 = vrcp.f32 %v2560_v61  ;;  %v2563_v62 = vadd.f32 1.0, %v5196_v11  ;;  %v4665_v40 = vmul.f32 -1.442695, %v6439_v22  ;;  %v6443_v44 = vadd.f32 %v6304_v31, %v2404_v57 }
 0x2f5   : > { %v5200_v39 = vpop.eup %5199  ;;  %5207 = vpow2.f32 %v4664_v42  ;;  %v2655_v7 = vmul.f32 %v5198_v32, %v6399_v24 }
 0x2f6   : > { %v5202_v29 = vpop.eup %5201  ;;  %5209 = vrcp.f32 %v2563_v62  ;;  %v2561_v47 = vadd.f32 1.0, %v5200_v39  ;;  %v4663_v17 = vmul.f32 -1.442695, %v6443_v44 }
 0x2f7   : > { %v2653_v60 = vmul.f32 %v5202_v29, %v6403_v27  ;;  %5211 = vpow2.f32 %v4662_v34  ;;  %v2679_v36 = vpack.c.bf16 %v2655_v7, %v2654_v49 }
 0x2f8   : > { %5213 = vrcp.f32 %v2561_v47 }
 0x2f9   : > { %5215 = vpow2.f32 %v4665_v40  ;;  %v2678_v14 = vpack.c.bf16 %v2653_v60, %v2652_v48 }
 0x2fa   : > { %5217 = vpow2.f32 %v4663_v17 }
 0x2fb   : > { %4920 = vmatprep.mubr.bf16.mxu1 %v2678_v14 }
 0x2fc   : > { %4921 = vmatmul.mubr.bf16.gmra.mxu1 %v2679_v36 }
 0x2fd   : > { %v4886_v9 = vpop.f32.mrf.mxu0 }
 0x2fe   : > { %v6451_v24 = vadd.f32 %v4886_v9, %v6304_v31 }
 0x2ff   : > { %v2417_v13 = vpop.f32.mrf.mxu0 }
 0x300   : > { %v5204_v59 = vpop.eup %5203  ;;  %v4668_v27 = vmul.f32 -1.442695, %v6451_v24  ;;  %v6455_v56 = vadd.f32 %v6304_v31, %v2417_v13 }
 0x301   : > { %v5206_v35 = vpop.eup %5205  ;;  %v4887_v2 = vpop.f32.mrf.mxu0  ;;  %v2658_v25 = vmul.f32 %v5204_v59, %v6411_v41 }
 0x302   : > { %v5208_v28 = vpop.eup %5207  ;;  %5219 = vpow2.f32 %v4668_v27  ;;  %v4666_v21 = vmul.f32 -1.442695, %v6455_v56  ;;  %v6459_v50 = vadd.f32 %v4887_v2, %v6304_v31  ;;  %v2656_v10 = vmul.f32 %v5206_v35, %v6415_v43 }
 0x303   : > { %v5210_v30 = vpop.eup %5209  ;;  %v2566_v38 = vadd.f32 1.0, %v5208_v28  ;;  %v2420_v51 = vpop.f32.mrf.mxu0 }
 0x304   : > { %v5212_v1 = vpop.eup %5211  ;;  %5221 = vpow2.f32 %v4666_v21  ;;  %v4669_v15 = vmul.f32 -1.442695, %v6459_v50  ;;  %v6463_v19 = vadd.f32 %v6304_v31, %v2420_v51  ;;  %v2659_v53 = vmul.f32 %v5210_v30, %v6419_v45 }
 0x305   : > { %v5214_v58 = vpop.eup %5213  ;;  %5223 = vrcp.f32 %v2566_v38  ;;  %v2564_v55 = vadd.f32 1.0, %v5212_v1 }
 0x306   : > { %v5216_v20 = vpop.eup %5215  ;;  %v2657_v6 = vmul.f32 %v5214_v58, %v6423_v52  ;;  %5225 = vpow2.f32 %v4669_v15  ;;  %v4667_v12 = vmul.f32 -1.442695, %v6463_v19  ;;  %v2681_v45 = vpack.c.bf16 %v2659_v53, %v2658_v25 }
 0x307   : > { %v5218_v63 = vpop.eup %5217  ;;  %5227 = vrcp.f32 %v2564_v55  ;;  %v2567_v37 = vadd.f32 1.0, %v5216_v20 }
 0x308   : > { %v2565_v23 = vadd.f32 1.0, %v5218_v63  ;;  %5229 = vpow2.f32 %v4667_v12  ;;  %v2680_v16 = vpack.c.bf16 %v2657_v6, %v2656_v10 }
 0x309   : > { %5231 = vrcp.f32 %v2567_v37  ;;  %v2690_v37 = vld [vmem:[#allocation4 + $0x10] sm:$0xff] }
 0x30a   : > { %5233 = vrcp.f32 %v2565_v23  ;;  %4924 = vmatprep.mubr.bf16.mxu1 %v2680_v16  ;;  %v2688_v16 = vld [vmem:[#allocation4] sm:$0xff] }
 0x30b   : > { %4925 = vmatmul.mubr.bf16.gmra.mxu1 %v2681_v45 }
 0x30d   : > { %v4890_v26 = vpop.f32.mrf.mxu0 }
 0x30e   : > { %v6471_v43 = vadd.f32 %v4890_v26, %v6304_v31 }
 0x30f   : > { %v5220_v52 = vpop.eup %5219  ;;  %v2433_v0 = vpop.f32.mrf.mxu0 }
 0x310   : > { %v2570_v4 = vadd.f32 1.0, %v5220_v52  ;;  %v4672_v5 = vmul.f32 -1.442695, %v6471_v43  ;;  %v6475_v41 = vadd.f32 %v6304_v31, %v2433_v0  ;;  %v2691_v52 = vld [vmem:[#allocation4 + $0x18] sm:$0xff] }
 0x311   : > { %v5222_v42 = vpop.eup %5221  ;;  %v4891_v8 = vpop.f32.mrf.mxu0 }
 0x312   : > { %v5224_v61 = vpop.eup %5223  ;;  %5235 = vrcp.f32 %v2570_v4  ;;  %v2568_v3 = vadd.f32 1.0, %v5222_v42  ;;  %v4670_v11 = vmul.f32 -1.442695, %v6475_v41  ;;  %v2445_v34 = vadd.f32 %v4891_v8, %v6304_v31  ;;  %v6498_v8 = vld [vmem:[%s820_s2] ss:$0 sm:$0xff]  ;;  %s7337_s2 = sld [smem:[#allocation22_spill]] (%p3218_p8) }
 0x313   : > { %v5226_v32 = vpop.eup %5225  ;;  %5237 = vpow2.f32 %v4672_v5  ;;  %v2436_v62 = vpop.f32.mrf.mxu0  ;;  %v2662_v9 = vmul.f32 %v5224_v61, %v6431_v46  ;;  %v2689_v5 = vld [vmem:[#allocation4 + $0x8] sm:$0xff] }
 0x314   : > { %v5228_v57 = vpop.eup %5227  ;;  %5239 = vrcp.f32 %v2568_v3  ;;  %v2571_v39 = vadd.f32 1.0, %v5226_v32  ;;  %v4673_v40 = vmul.f32 -1.442695, %v2445_v34  ;;  %v2437_v29 = vadd.f32 %v6304_v31, %v2436_v62  ;;  %v6507_v3 = vld [vmem:[%s7336_s26] ss:$0 sm:$0xff] }
 0x315   : > { %v5230_v7 = vpop.eup %5229  ;;  %5241 = vpow2.f32 %v4670_v11  ;;  %v2660_v14 = vmul.f32 %v5228_v57, %v6435_v54 }
 0x316   : > { %v5232_v47 = vpop.eup %5231  ;;  %5243 = vrcp.f32 %v2571_v39  ;;  %v2569_v48 = vadd.f32 1.0, %v5230_v7  ;;  %v4671_v60 = vmul.f32 -1.442695, %v2437_v29  ;;  %v3083_v39 = vld [vmem:[#allocation2] sm:$0xff] }
 0x317   : > { %v5234_v17 = vpop.eup %5233  ;;  %v2663_v49 = vmul.f32 %v5232_v47, %v6439_v22  ;;  %5245 = vpow2.f32 %v4673_v40 }
 0x318   : > { %v2661_v36 = vmul.f32 %v5234_v17, %v6443_v44  ;;  %5247 = vrcp.f32 %v2569_v48  ;;  %v2694_v48 = vld [vmem:[#allocation4 + $0x30] sm:$0xff] }
 0x319   : > { %5249 = vpow2.f32 %v4671_v60  ;;  %v2683_v31 = vpack.c.bf16 %v2663_v49, %v2662_v9  ;;  %v3086_v60 = vld [vmem:[#allocation2 + $0x18] sm:$0xff] }
 0x31a   : > { %v2682_v13 = vpack.c.bf16 %v2661_v36, %v2660_v14 }
 0x31c   : > { %4928 = vmatprep.mubr.bf16.mxu1 %v2682_v13  ;;  %v2692_v13 = vld [vmem:[#allocation4 + $0x20] sm:$0xff] }
 0x31d   : > { %4929 = vmatmul.mubr.bf16.gmra.mxu1 %v2683_v31  ;;  %v3084_v31 = vld [vmem:[#allocation2 + $0x8] sm:$0xff] }
 0x31f   : > { %v5236_v59 = vpop.eup %5235 }
 0x320   : > { %v5238_v27 = vpop.eup %5237  ;;  %v2666_v15 = vmul.f32 %v5236_v59, %v6451_v24 }
 0x321   : > { %v5240_v35 = vpop.eup %5239  ;;  %v2574_v30 = vadd.f32 1.0, %v5238_v27 }
 0x322   : > { %v5242_v2 = vpop.eup %5241  ;;  %v2664_v46 = vmul.f32 %v5240_v35, %v6455_v56 }
 0x323   : > { %v5244_v28 = vpop.eup %5243  ;;  %v2572_v21 = vadd.f32 1.0, %v5242_v2 }
 0x324   : > { %v5246_v22 = vpop.eup %5245  ;;  %v2667_v54 = vmul.f32 %v5244_v28, %v6459_v50  ;;  %v2695_v28 = vld [vmem:[#allocation4 + $0x38] sm:$0xff] }
 0x325   : > { %v5248_v38 = vpop.eup %5247  ;;  %v2575_v44 = vadd.f32 1.0, %v5246_v22  ;;  %5251 = vrcp.f32 %v2572_v21 }
 0x326   : > { %v5250_v51 = vpop.eup %5249  ;;  %v2665_v1 = vmul.f32 %v5248_v38, %v6463_v19  ;;  %v2685_v55 = vpack.c.bf16 %v2667_v54, %v2666_v15  ;;  %v2693_v38 = vld [vmem:[#allocation4 + $0x28] sm:$0xff]  ;;  %v3089_v15 = vld [vmem:[#allocation2 + $0x30] sm:$0xff] }
 0x327   : > { %5253 = vrcp.f32 %v2575_v44  ;;  %v2573_v58 = vadd.f32 1.0, %v5250_v51 }
 0x328   : > { %5255 = vrcp.f32 %v2574_v30  ;;  %v2684_v53 = vpack.c.bf16 %v2665_v1, %v2664_v46 }
 0x329   : > { %5257 = vrcp.f32 %v2573_v58 }
 0x32a   : > { %4932 = vmatprep.mubr.bf16.mxu1 %v2684_v53 }
 0x32b   : > { %4933 = vmatmul.mubr.bf16.gmra.mxu1 %v2685_v55 }
 0x332   : > { %v5252_v20 = vpop.eup %5251 }
 0x333   : > { %v2668_v56 = vmul.f32 %v5252_v20, %v6475_v41  ;;  %v3087_v20 = vld [vmem:[#allocation2 + $0x20] sm:$0xff] }
 0x334   : > { %v5254_v10 = vpop.eup %5253 }
 0x335   : > { %v5256_v50 = vpop.eup %5255  ;;  %v2671_v12 = vmul.f32 %v5254_v10, %v2445_v34  ;;  %v3085_v34 = vld [vmem:[#allocation2 + $0x10] sm:$0xff] }
 0x336   : > { %v5258_v6 = vpop.eup %5257  ;;  %v2670_v19 = vmul.f32 %v5256_v50, %v6471_v43 }
 0x337   : > { %v2669_v63 = vmul.f32 %v5258_v6, %v2437_v29 }
 0x338   : > { %v2687_v24 = vpack.c.bf16 %v2671_v12, %v2670_v19 }
 0x339   : > { %v2686_v25 = vpack.c.bf16 %v2669_v63, %v2668_v56  ;;  %v2698_v56 = vld [vmem:[#allocation4 + $0x50] sm:$0xff]  ;;  %v3090_v63 = vld [vmem:[#allocation2 + $0x38] sm:$0xff] }
 0x33b   : > { %4936 = vmatprep.mubr.bf16.mxu1 %v2686_v25 }
 0x33c   : > { %4937 = vmatmul.mubr.bf16.gmra.mxu1 %v2687_v24 }
 0x38b   : > { %v4910_v23 = vpop.f32.mrf.mxu0 }
 0x38c   : > { %v2947_v45 = vadd.f32 %v4910_v23, %v2690_v37 }
 0x38d   : > { %v2818_v26 = vpop.f32.mrf.mxu0 }
 0x38e   : > { %2979 = vst.msk [vmem:[#allocation4 + $0x10] sm:$0xff] %vm1317_vm3, %v2947_v45  ;;  %v2945_v0 = vadd.f32 %v2818_v26, %v2688_v16  ;;  %v2696_v16 = vld [vmem:[#allocation4 + $0x40] sm:$0xff]  ;;  %v3088_v45 = vld [vmem:[#allocation2 + $0x28] sm:$0xff] }
 0x38f   : > { %v4911_v4 = vpop.f32.mrf.mxu0 }
 0x390   : > { %2977 = vst.msk [vmem:[#allocation4] sm:$0xff] %vm1317_vm3, %v2945_v0  ;;  %v2948_v43 = vadd.f32 %v4911_v4, %v2691_v52 }
 0x391   : > { %v2821_v41 = vpop.f32.mrf.mxu0 }
 0x392   : > { %2980 = vst.msk [vmem:[#allocation4 + $0x18] sm:$0xff] %vm1317_vm3, %v2948_v43  ;;  %v2946_v42 = vadd.f32 %v2821_v41, %v2689_v5  ;;  %v2699_v5 = vld [vmem:[#allocation4 + $0x58] sm:$0xff] }
 0x394   : > { %2978 = vst.msk [vmem:[#allocation4 + $0x8] sm:$0xff] %vm1317_vm3, %v2946_v42 }
 0x395   : > { %v3014_v61 = vld [vmem:[#allocation4 + $0x10] sm:$0xff] }
 0x396   : > { %v3053_v11 = vadd.f32 %v6498_v8, %v3014_v61  ;;  %v2697_v61 = vld [vmem:[#allocation4 + $0x48] sm:$0xff] }
 0x397   : > { %v3012_v32 = vld [vmem:[#allocation4] sm:$0xff] }
 0x398   : > { %v3124_v62 = vmul.f32 %v6507_v3, %v3053_v11  ;;  %v3051_v57 = vadd.f32 %v6498_v8, %v3012_v32 }
 0x399   : > { %v3015_v40 = vld [vmem:[#allocation4 + $0x18] sm:$0xff] }
 0x39a   : > { %v3156_v29 = vadd.f32 %v3124_v62, %v3085_v34  ;;  %v3122_v7 = vmul.f32 %v6507_v3, %v3051_v57  ;;  %v3054_v47 = vadd.f32 %v6498_v8, %v3015_v40 }
 0x39b   : > { %v3013_v17 = vld [vmem:[#allocation4 + $0x8] sm:$0xff] }
 0x39c   : > { %3188 = vst.msk [vmem:[#allocation2 + $0x10] sm:$0xff] %vm1317_vm3, %v3156_v29  ;;  %v3154_v49 = vadd.f32 %v3122_v7, %v3083_v39  ;;  %v3125_v14 = vmul.f32 %v6507_v3, %v3054_v47  ;;  %v3052_v36 = vadd.f32 %v6498_v8, %v3013_v17  ;;  %v4914_v9 = vpop.f32.mrf.mxu1  ;;  %v3093_v39 = vld [vmem:[#allocation2 + $0x50] sm:$0xff] }
 0x39d   : > { %v2951_v59 = vadd.f32 %v4914_v9, %v2694_v48  ;;  %v2702_v47 = vld [vmem:[#allocation4 + $0x70] sm:$0xff]  ;;  %v3091_v48 = vld [vmem:[#allocation2 + $0x40] sm:$0xff] }
 0x39e   : > { %3186 = vst.msk [vmem:[#allocation2] sm:$0xff] %vm1317_vm3, %v3154_v49  ;;  %v3157_v27 = vadd.f32 %v3125_v14, %v3086_v60  ;;  %v3123_v35 = vmul.f32 %v6507_v3, %v3052_v36  ;;  %v2834_v2 = vpop.f32.mrf.mxu1  ;;  %v2700_v9 = vld [vmem:[#allocation4 + $0x60] sm:$0xff] }
 0x39f   : > { %2983 = vst.msk [vmem:[#allocation4 + $0x30] sm:$0xff] %vm1317_vm3, %v2951_v59  ;;  %v2949_v21 = vadd.f32 %v2834_v2, %v2692_v13  ;;  %v3094_v13 = vld [vmem:[#allocation2 + $0x58] sm:$0xff] }
 0x3a0   : > { %3189 = vst.msk [vmem:[#allocation2 + $0x18] sm:$0xff] %vm1317_vm3, %v3157_v27  ;;  %v3155_v22 = vadd.f32 %v3123_v35, %v3084_v31  ;;  %v4915_v30 = vpop.f32.mrf.mxu1 }
 0x3a1   : > { %2981 = vst.msk [vmem:[#allocation4 + $0x20] sm:$0xff] %vm1317_vm3, %v2949_v21  ;;  %v2952_v54 = vadd.f32 %v4915_v30, %v2695_v28  ;;  %v2703_v21 = vld [vmem:[#allocation4 + $0x78] sm:$0xff] }
 0x3a2   : > { %3187 = vst.msk [vmem:[#allocation2 + $0x8] sm:$0xff] %vm1317_vm3, %v3155_v22  ;;  %v2837_v44 = vpop.f32.mrf.mxu1  ;;  %v3092_v22 = vld [vmem:[#allocation2 + $0x48] sm:$0xff] }
 0x3a3   : > { %2984 = vst.msk [vmem:[#allocation4 + $0x38] sm:$0xff] %vm1317_vm3, %v2952_v54  ;;  %v2950_v51 = vadd.f32 %v2837_v44, %v2693_v38 }
 0x3a5   : > { %2982 = vst.msk [vmem:[#allocation4 + $0x28] sm:$0xff] %vm1317_vm3, %v2950_v51  ;;  %v2701_v51 = vld [vmem:[#allocation4 + $0x68] sm:$0xff] }
 0x3a6   : > { %v3018_v46 = vld [vmem:[#allocation4 + $0x30] sm:$0xff] }
 0x3a7   : > { %v3057_v1 = vadd.f32 %v6498_v8, %v3018_v46 }
 0x3a8   : > { %v3016_v58 = vld [vmem:[#allocation4 + $0x20] sm:$0xff] }
 0x3a9   : > { %v3128_v53 = vmul.f32 %v6507_v3, %v3057_v1  ;;  %v3055_v55 = vadd.f32 %v6498_v8, %v3016_v58 }
 0x3aa   : > { %v3019_v10 = vld [vmem:[#allocation4 + $0x38] sm:$0xff] }
 0x3ab   : > { %v3160_v50 = vadd.f32 %v3128_v53, %v3089_v15  ;;  %v3126_v6 = vmul.f32 %v6507_v3, %v3055_v55  ;;  %v3058_v12 = vadd.f32 %v6498_v8, %v3019_v10 }
 0x3ac   : > { %v3017_v19 = vld [vmem:[#allocation4 + $0x28] sm:$0xff] }
 0x3ad   : > { %3192 = vst.msk [vmem:[#allocation2 + $0x30] sm:$0xff] %vm1317_vm3, %v3160_v50  ;;  %v3158_v25 = vadd.f32 %v3126_v6, %v3087_v20  ;;  %v3129_v24 = vmul.f32 %v6507_v3, %v3058_v12  ;;  %v3056_v37 = vadd.f32 %v6498_v8, %v3017_v19  ;;  %v4918_v23 = vpop.f32.mrf.mxu1  ;;  %v3097_v20 = vld [vmem:[#allocation2 + $0x70] sm:$0xff] }
 0x3ae   : > { %v2955_v26 = vadd.f32 %v4918_v23, %v2698_v56  ;;  %v2706_v12 = vld [vmem:[#allocation4 + $0x90] sm:$0xff]  ;;  %v3095_v56 = vld [vmem:[#allocation2 + $0x60] sm:$0xff] }
 0x3af   : > { %3190 = vst.msk [vmem:[#allocation2 + $0x20] sm:$0xff] %vm1317_vm3, %v3158_v25  ;;  %v3161_v52 = vadd.f32 %v3129_v24, %v3090_v63  ;;  %v3127_v0 = vmul.f32 %v6507_v3, %v3056_v37  ;;  %v2850_v4 = vpop.f32.mrf.mxu1  ;;  %v2704_v23 = vld [vmem:[#allocation4 + $0x80] sm:$0xff] }
 0x3b0   : > { %2987 = vst.msk [vmem:[#allocation4 + $0x50] sm:$0xff] %vm1317_vm3, %v2955_v26  ;;  %v2953_v43 = vadd.f32 %v2850_v4, %v2696_v16  ;;  %v3098_v16 = vld [vmem:[#allocation2 + $0x78] sm:$0xff] }
 0x3b1   : > { %3193 = vst.msk [vmem:[#allocation2 + $0x38] sm:$0xff] %vm1317_vm3, %v3161_v52  ;;  %v3159_v41 = vadd.f32 %v3127_v0, %v3088_v45  ;;  %v4919_v42 = vpop.f32.mrf.mxu1 }
 0x3b2   : > { %2985 = vst.msk [vmem:[#allocation4 + $0x40] sm:$0xff] %vm1317_vm3, %v2953_v43  ;;  %v2956_v11 = vadd.f32 %v4919_v42, %v2699_v5  ;;  %v2707_v43 = vld [vmem:[#allocation4 + $0x98] sm:$0xff] }
 0x3b3   : > { %3191 = vst.msk [vmem:[#allocation2 + $0x28] sm:$0xff] %vm1317_vm3, %v3159_v41  ;;  %v2853_v34 = vpop.f32.mrf.mxu1  ;;  %v3096_v41 = vld [vmem:[#allocation2 + $0x68] sm:$0xff] }
 0x3b4   : > { %2988 = vst.msk [vmem:[#allocation4 + $0x58] sm:$0xff] %vm1317_vm3, %v2956_v11  ;;  %v2954_v32 = vadd.f32 %v2853_v34, %v2697_v61 }
 0x3b6   : > { %2986 = vst.msk [vmem:[#allocation4 + $0x48] sm:$0xff] %vm1317_vm3, %v2954_v32  ;;  %v2705_v32 = vld [vmem:[#allocation4 + $0x88] sm:$0xff] }
 0x3b7   : > { %v3022_v62 = vld [vmem:[#allocation4 + $0x50] sm:$0xff] }
 0x3b8   : > { %v3061_v57 = vadd.f32 %v6498_v8, %v3022_v62 }
 0x3b9   : > { %v3020_v40 = vld [vmem:[#allocation4 + $0x40] sm:$0xff] }
 0x3ba   : > { %v3132_v29 = vmul.f32 %v6507_v3, %v3061_v57  ;;  %v3059_v7 = vadd.f32 %v6498_v8, %v3020_v40 }
 0x3bb   : > { %v3023_v60 = vld [vmem:[#allocation4 + $0x58] sm:$0xff] }
 0x3bc   : > { %v3164_v17 = vadd.f32 %v3132_v29, %v3093_v39  ;;  %v3130_v49 = vmul.f32 %v6507_v3, %v3059_v7  ;;  %v3062_v14 = vadd.f32 %v6498_v8, %v3023_v60  ;;  %v4922_v36 = vpop.f32.mrf.mxu1 }
 0x3bd   : > { %v3021_v31 = vld [vmem:[#allocation4 + $0x48] sm:$0xff]  ;;  %v2959_v59 = vadd.f32 %v4922_v36, %v2702_v47  ;;  %v3101_v47 = vld [vmem:[#allocation2 + $0x90] sm:$0xff] }
 0x3be   : > { %3196 = vst.msk [vmem:[#allocation2 + $0x50] sm:$0xff] %vm1317_vm3, %v3164_v17  ;;  %v3162_v27 = vadd.f32 %v3130_v49, %v3091_v48  ;;  %v3133_v35 = vmul.f32 %v6507_v3, %v3062_v14  ;;  %v3060_v2 = vadd.f32 %v6498_v8, %v3021_v31  ;;  %v2866_v28 = vpop.f32.mrf.mxu1  ;;  %v3099_v49 = vld [vmem:[#allocation2 + $0x80] sm:$0xff]  ;;  %v3102_v31 = vld [vmem:[#allocation2 + $0x98] sm:$0xff] }
 0x3bf   : > { %2991 = vst.msk [vmem:[#allocation4 + $0x70] sm:$0xff] %vm1317_vm3, %v2959_v59  ;;  %v2957_v30 = vadd.f32 %v2866_v28, %v2700_v9 }
 0x3c0   : > { %3194 = vst.msk [vmem:[#allocation2 + $0x40] sm:$0xff] %vm1317_vm3, %v3162_v27  ;;  %v3165_v38 = vadd.f32 %v3133_v35, %v3094_v13  ;;  %v3131_v54 = vmul.f32 %v6507_v3, %v3060_v2  ;;  %v4923_v44 = vpop.f32.mrf.mxu1  ;;  %v2710_v27 = vld [vmem:[#allocation4 + $0xb0] sm:$0xff] }
 0x3c1   : > { %2989 = vst.msk [vmem:[#allocation4 + $0x60] sm:$0xff] %vm1317_vm3, %v2957_v30  ;;  %v2960_v46 = vadd.f32 %v4923_v44, %v2703_v21  ;;  %v3100_v21 = vld [vmem:[#allocation2 + $0x88] sm:$0xff]  ;;  %v2708_v30 = vld [vmem:[#allocation4 + $0xa0] sm:$0xff] }
 0x3c2   : > { %3197 = vst.msk [vmem:[#allocation2 + $0x58] sm:$0xff] %vm1317_vm3, %v3165_v38  ;;  %v3163_v1 = vadd.f32 %v3131_v54, %v3092_v22  ;;  %v2869_v15 = vpop.f32.mrf.mxu1 }
 0x3c3   : > { %2992 = vst.msk [vmem:[#allocation4 + $0x78] sm:$0xff] %vm1317_vm3, %v2960_v46  ;;  %v2958_v58 = vadd.f32 %v2869_v15, %v2701_v51  ;;  %v2711_v46 = vld [vmem:[#allocation4 + $0xb8] sm:$0xff] }
 0x3c4   : > { %3195 = vst.msk [vmem:[#allocation2 + $0x48] sm:$0xff] %vm1317_vm3, %v3163_v1 }
 0x3c5   : > { %2990 = vst.msk [vmem:[#allocation4 + $0x68] sm:$0xff] %vm1317_vm3, %v2958_v58 }
 0x3c6   : > { %v3026_v53 = vld [vmem:[#allocation4 + $0x70] sm:$0xff] }
 0x3c7   : > { %v3065_v55 = vadd.f32 %v6498_v8, %v3026_v53  ;;  %v2709_v53 = vld [vmem:[#allocation4 + $0xa8] sm:$0xff] }
 0x3c8   : > { %v3024_v10 = vld [vmem:[#allocation4 + $0x60] sm:$0xff] }
 0x3c9   : > { %v3136_v50 = vmul.f32 %v6507_v3, %v3065_v55  ;;  %v3063_v6 = vadd.f32 %v6498_v8, %v3024_v10 }
 0x3ca   : > { %v3027_v63 = vld [vmem:[#allocation4 + $0x78] sm:$0xff] }
 0x3cb   : > { %v3168_v19 = vadd.f32 %v3136_v50, %v3097_v20  ;;  %v3134_v25 = vmul.f32 %v6507_v3, %v3063_v6  ;;  %v3066_v24 = vadd.f32 %v6498_v8, %v3027_v63  ;;  %v4926_v37 = vpop.f32.mrf.mxu1  ;;  %v2714_v63 = vld [vmem:[#allocation4 + $0xd0] sm:$0xff] }
 0x3cc   : > { %v3025_v45 = vld [vmem:[#allocation4 + $0x68] sm:$0xff]  ;;  %v2963_v26 = vadd.f32 %v4926_v37, %v2706_v12  ;;  %v3105_v12 = vld [vmem:[#allocation2 + $0xb0] sm:$0xff] }
 0x3cd   : > { %3200 = vst.msk [vmem:[#allocation2 + $0x70] sm:$0xff] %vm1317_vm3, %v3168_v19  ;;  %v3166_v52 = vadd.f32 %v3134_v25, %v3095_v56  ;;  %v3137_v0 = vmul.f32 %v6507_v3, %v3066_v24  ;;  %v3064_v4 = vadd.f32 %v6498_v8, %v3025_v45  ;;  %v2882_v5 = vpop.f32.mrf.mxu1  ;;  %v3103_v24 = vld [vmem:[#allocation2 + $0xa0] sm:$0xff] }
 0x3ce   : > { %2995 = vst.msk [vmem:[#allocation4 + $0x90] sm:$0xff] %vm1317_vm3, %v2963_v26  ;;  %v2961_v42 = vadd.f32 %v2882_v5, %v2704_v23 }
 0x3cf   : > { %3198 = vst.msk [vmem:[#allocation2 + $0x60] sm:$0xff] %vm1317_vm3, %v3166_v52  ;;  %v3169_v61 = vadd.f32 %v3137_v0, %v3098_v16  ;;  %v3135_v11 = vmul.f32 %v6507_v3, %v3064_v4  ;;  %v4927_v34 = vpop.f32.mrf.mxu1  ;;  %v2712_v16 = vld [vmem:[#allocation4 + $0xc0] sm:$0xff]  ;;  %v3106_v4 = vld [vmem:[#allocation2 + $0xb8] sm:$0xff] }
 0x3d0   : > { %2993 = vst.msk [vmem:[#allocation4 + $0x80] sm:$0xff] %vm1317_vm3, %v2961_v42  ;;  %v2964_v62 = vadd.f32 %v4927_v34, %v2707_v43 }
 0x3d1   : > { %3201 = vst.msk [vmem:[#allocation2 + $0x78] sm:$0xff] %vm1317_vm3, %v3169_v61  ;;  %v3167_v57 = vadd.f32 %v3135_v11, %v3096_v41  ;;  %v2885_v39 = vpop.f32.mrf.mxu1  ;;  %v2715_v41 = vld [vmem:[#allocation4 + $0xd8] sm:$0xff] }
 0x3d2   : > { %2996 = vst.msk [vmem:[#allocation4 + $0x98] sm:$0xff] %vm1317_vm3, %v2964_v62  ;;  %v2962_v40 = vadd.f32 %v2885_v39, %v2705_v32  ;;  %v3104_v32 = vld [vmem:[#allocation2 + $0xa8] sm:$0xff] }
 0x3d3   : > { %3199 = vst.msk [vmem:[#allocation2 + $0x68] sm:$0xff] %vm1317_vm3, %v3167_v57  ;;  %v2713_v57 = vld [vmem:[#allocation4 + $0xc8] sm:$0xff] }
 0x3d4   : > { %2994 = vst.msk [vmem:[#allocation4 + $0x88] sm:$0xff] %vm1317_vm3, %v2962_v40 }
 0x3d5   : > { %v3030_v29 = vld [vmem:[#allocation4 + $0x90] sm:$0xff] }
 0x3d6   : > { %v3069_v7 = vadd.f32 %v6498_v8, %v3030_v29 }
 0x3d7   : > { %v3028_v48 = vld [vmem:[#allocation4 + $0x80] sm:$0xff] }
 0x3d8   : > { %v3140_v60 = vmul.f32 %v6507_v3, %v3069_v7  ;;  %v3067_v17 = vadd.f32 %v6498_v8, %v3028_v48 }
 0x3d9   : > { %v3031_v14 = vld [vmem:[#allocation4 + $0x98] sm:$0xff] }
 0x3da   : > { %v3172_v36 = vadd.f32 %v3140_v60, %v3101_v47  ;;  %v3138_v9 = vmul.f32 %v6507_v3, %v3067_v17  ;;  %v3070_v13 = vadd.f32 %v6498_v8, %v3031_v14 }
 0x3db   : > { %v3029_v59 = vld [vmem:[#allocation4 + $0x88] sm:$0xff] }
 0x3dc   : > { %3204 = vst.msk [vmem:[#allocation2 + $0x90] sm:$0xff] %vm1317_vm3, %v3172_v36  ;;  %v3170_v35 = vadd.f32 %v3138_v9, %v3099_v49  ;;  %v3141_v2 = vmul.f32 %v6507_v3, %v3070_v13  ;;  %v3068_v28 = vadd.f32 %v6498_v8, %v3029_v59  ;;  %v3109_v49 = vld [vmem:[#allocation2 + $0xd0] sm:$0xff]  ;;  %v3107_v13 = vld [vmem:[#allocation2 + $0xc0] sm:$0xff] }
 0x3dd   : > { %v4930_v22 = vpop.f32.mrf.mxu1 }
 0x3de   : > { %3202 = vst.msk [vmem:[#allocation2 + $0x80] sm:$0xff] %vm1317_vm3, %v3170_v35  ;;  %v3173_v38 = vadd.f32 %v3141_v2, %v3102_v31  ;;  %v3139_v54 = vmul.f32 %v6507_v3, %v3068_v28  ;;  %v2967_v44 = vadd.f32 %v4930_v22, %v2710_v27  ;;  %v2718_v2 = vld [vmem:[#allocation4 + $0xf0] sm:$0xff]  ;;  %v3110_v28 = vld [vmem:[#allocation2 + $0xd8] sm:$0xff] }
 0x3df   : > { %v2898_v51 = vpop.f32.mrf.mxu1 }
 0x3e0   : > { %3205 = vst.msk [vmem:[#allocation2 + $0x98] sm:$0xff] %vm1317_vm3, %v3173_v38  ;;  %v3171_v1 = vadd.f32 %v3139_v54, %v3100_v21  ;;  %2999 = vst.msk [vmem:[#allocation4 + $0xb0] sm:$0xff] %vm1317_vm3, %v2967_v44  ;;  %v2965_v15 = vadd.f32 %v2898_v51, %v2708_v30  ;;  %v2716_v44 = vld [vmem:[#allocation4 + $0xe0] sm:$0xff]  ;;  %v3108_v51 = vld [vmem:[#allocation2 + $0xc8] sm:$0xff] }
 0x3e1   : > { %v4931_v58 = vpop.f32.mrf.mxu1 }
 0x3e2   : > { %3203 = vst.msk [vmem:[#allocation2 + $0x88] sm:$0xff] %vm1317_vm3, %v3171_v1  ;;  %2997 = vst.msk [vmem:[#allocation4 + $0xa0] sm:$0xff] %vm1317_vm3, %v2965_v15  ;;  %v2968_v55 = vadd.f32 %v4931_v58, %v2711_v46 }
 0x3e3   : > { %v2901_v20 = vpop.f32.mrf.mxu1 }
 0x3e4   : > { %3000 = vst.msk [vmem:[#allocation4 + $0xb8] sm:$0xff] %vm1317_vm3, %v2968_v55  ;;  %v2966_v10 = vadd.f32 %v2901_v20, %v2709_v53  ;;  %v2719_v53 = vld [vmem:[#allocation4 + $0xf8] sm:$0xff] }
 0x3e6   : > { %2998 = vst.msk [vmem:[#allocation4 + $0xa8] sm:$0xff] %vm1317_vm3, %v2966_v10 }
 0x3e7   : > { %v3034_v50 = vld [vmem:[#allocation4 + $0xb0] sm:$0xff] }
 0x3e8   : > { %v3073_v6 = vadd.f32 %v6498_v8, %v3034_v50  ;;  %v2717_v50 = vld [vmem:[#allocation4 + $0xe8] sm:$0xff] }
 0x3e9   : > { %v3032_v56 = vld [vmem:[#allocation4 + $0xa0] sm:$0xff] }
 0x3ea   : > { %v3144_v19 = vmul.f32 %v6507_v3, %v3073_v6  ;;  %v3071_v25 = vadd.f32 %v6498_v8, %v3032_v56 }
 0x3eb   : > { %v3035_v37 = vld [vmem:[#allocation4 + $0xb8] sm:$0xff]  ;;  %v4934_v23 = vpop.f32.mrf.mxu1 }
 0x3ec   : > { %v3176_v45 = vadd.f32 %v3144_v19, %v3105_v12  ;;  %v3142_v26 = vmul.f32 %v6507_v3, %v3071_v25  ;;  %v3074_v52 = vadd.f32 %v6498_v8, %v3035_v37  ;;  %v2971_v0 = vadd.f32 %v4934_v23, %v2714_v63  ;;  %v3113_v25 = vld [vmem:[#allocation2 + $0xf0] sm:$0xff] }
 0x3ed   : > { %v3033_v5 = vld [vmem:[#allocation4 + $0xa8] sm:$0xff]  ;;  %v2914_v43 = vpop.f32.mrf.mxu1 }
 0x3ee   : > { %3208 = vst.msk [vmem:[#allocation2 + $0xb0] sm:$0xff] %vm1317_vm3, %v3176_v45  ;;  %v3174_v42 = vadd.f32 %v3142_v26, %v3103_v24  ;;  %v3145_v61 = vmul.f32 %v6507_v3, %v3074_v52  ;;  %v3072_v11 = vadd.f32 %v6498_v8, %v3033_v5  ;;  %3003 = vst.msk [vmem:[#allocation4 + $0xd0] sm:$0xff] %vm1317_vm3, %v2971_v0 }
 0x3ef   : > { %v2969_v34 = vadd.f32 %v2914_v43, %v2712_v16  ;;  %v4935_v62 = vpop.f32.mrf.mxu1  ;;  %v3111_v16 = vld [vmem:[#allocation2 + $0xe0] sm:$0xff] }
 0x3f0   : > { %3206 = vst.msk [vmem:[#allocation2 + $0xa0] sm:$0xff] %vm1317_vm3, %v3174_v42  ;;  %v3177_v39 = vadd.f32 %v3145_v61, %v3106_v4  ;;  %v3143_v40 = vmul.f32 %v6507_v3, %v3072_v11  ;;  %v2972_v29 = vadd.f32 %v4935_v62, %v2715_v41  ;;  %v3114_v4 = vld [vmem:[#allocation2 + $0xf8] sm:$0xff]  ;;  %v3112_v61 = vld [vmem:[#allocation2 + $0xe8] sm:$0xff]  ;;  %v6635_v62 = vld [vmem:[#allocation2 + $0x10] sm:$0xff] (%p3218_p8) }
 0x3f1   : > { %3001 = vst.msk [vmem:[#allocation4 + $0xc0] sm:$0xff] %vm1317_vm3, %v2969_v34  ;;  %v2917_v7 = vpop.f32.mrf.mxu1 }
 0x3f2   : > { %3209 = vst.msk [vmem:[#allocation2 + $0xb8] sm:$0xff] %vm1317_vm3, %v3177_v39  ;;  %v3175_v47 = vadd.f32 %v3143_v40, %v3104_v32  ;;  %3004 = vst.msk [vmem:[#allocation4 + $0xd8] sm:$0xff] %vm1317_vm3, %v2972_v29  ;;  %v2970_v48 = vadd.f32 %v2917_v7, %v2713_v57  ;;  %v6637_v57 = vld [vmem:[#allocation2] sm:$0xff] (%p3218_p8)  ;;  %v6639_v39 = vld [vmem:[#allocation2 + $0x18] sm:$0xff] (%p3218_p8) }
 0x3f3   : > { %v6645_v40 = vld [vmem:[#allocation2 + $0x8] sm:$0xff] (%p3218_p8)  ;;  %v3264_v29 = vsel (%p3218_p8), %vm1317_vm3, %v6639_v39, 0.0 }
 0x3f4   : > { %3207 = vst.msk [vmem:[#allocation2 + $0xa8] sm:$0xff] %vm1317_vm3, %v3175_v47  ;;  %3002 = vst.msk [vmem:[#allocation4 + $0xc8] sm:$0xff] %vm1317_vm3, %v2970_v48  ;;  %v3258_v7 = vsel (%p3218_p8), %vm1317_vm3, %v6645_v40, 0.0  ;;  %v3385_v47 = vmul.f32 (%p3218_p8), %v6645_v40, %v6645_v40  ;;  %v3384_v48 = vmul.f32 (%p3218_p8), %v6637_v57, %v6637_v57 }
 0x3f5   : > { %v3038_v60 = vld [vmem:[#allocation4 + $0xd0] sm:$0xff] }
 0x3f6   : > { %v3077_v17 = vadd.f32 %v6498_v8, %v3038_v60  ;;  %v3419_v60 = vsel (%p3218_p8), %vm1317_vm3, %v3385_v47, 0.0  ;;  %v6753_v47 = vld [vmem:[#allocation2 + $0x88] sm:$0xff] (%p3218_p8) }
 0x3f8   : > { %v3036_v14 = vld [vmem:[#allocation4 + $0xc0] sm:$0xff]  ;;  %v3148_v36 = vmul.f32 %v6507_v3, %v3077_v17  ;;  %v3416_v17 = vsel (%p3218_p8), %vm1317_vm3, %v3384_v48, 0.0 }
 0x3f9   : > { %v3075_v9 = vadd.f32 %v6498_v8, %v3036_v14  ;;  %v3039_v31 = vld [vmem:[#allocation4 + $0xd8] sm:$0xff]  ;;  %v3386_v14 = vmul.f32 (%p3218_p8), %v6635_v62, %v6635_v62  ;;  %v6755_v48 = vld [vmem:[#allocation2 + $0x80] sm:$0xff] (%p3218_p8) }
 0x3fa   : > { %v3180_v59 = vadd.f32 %v3148_v36, %v3109_v49  ;;  %v3078_v35 = vadd.f32 %v6498_v8, %v3039_v31  ;;  %v3387_v49 = vmul.f32 (%p3218_p8), %v6639_v39, %v6639_v39  ;;  %v6665_v31 = vld [vmem:[#allocation2 + $0x20] sm:$0xff] (%p3218_p8) }
 0x3fb   : > { %v3146_v27 = vmul.f32 %v6507_v3, %v3075_v9  ;;  %v3037_v21 = vld [vmem:[#allocation4 + $0xc8] sm:$0xff]  ;;  %v3422_v9 = vsel (%p3218_p8), %vm1317_vm3, %v3386_v14, 0.0  ;;  %v6763_v14 = vld [vmem:[#allocation2 + $0x90] sm:$0xff] (%p3218_p8) }
 0x3fc   : > { %3212 = vst.msk [vmem:[#allocation2 + $0xd0] sm:$0xff] %vm1317_vm3, %v3180_v59  ;;  %v3149_v30 = vmul.f32 %v6507_v3, %v3078_v35  ;;  %v3076_v38 = vadd.f32 %v6498_v8, %v3037_v21  ;;  %v4938_v54 = vpop.f32.mrf.mxu1  ;;  %v3425_v36 = vsel (%p3218_p8), %vm1317_vm3, %v3387_v49, 0.0  ;;  %v6671_v35 = vld [vmem:[#allocation2 + $0x38] sm:$0xff] (%p3218_p8) }
 0x3fd   : > { %v3178_v22 = vadd.f32 %v3146_v27, %v3107_v13  ;;  %v2975_v46 = vadd.f32 %v4938_v54, %v2718_v2  ;;  %v6663_v13 = vld [vmem:[#allocation2 + $0x28] sm:$0xff] (%p3218_p8)  ;;  %v3267_v27 = vsel (%p3218_p8), %vm1317_vm3, %v6665_v31, 0.0  ;;  %v6673_v2 = vld [vmem:[#allocation2 + $0x30] sm:$0xff] (%p3218_p8)  ;;  %v6761_v49 = vld [vmem:[#allocation2 + $0x98] sm:$0xff] (%p3218_p8) }
 0x3fe   : > { %v3181_v1 = vadd.f32 %v3149_v30, %v3110_v28  ;;  %v3147_v15 = vmul.f32 %v6507_v3, %v3076_v38  ;;  %v2930_v58 = vpop.f32.mrf.mxu1  ;;  %v3270_v59 = vsel (%p3218_p8), %vm1317_vm3, %v6663_v13, 0.0  ;;  %v3276_v28 = vsel (%p3218_p8), %vm1317_vm3, %v6671_v35, 0.0 }
 0x3ff   : > { %3210 = vst.msk [vmem:[#allocation2 + $0xc0] sm:$0xff] %vm1317_vm3, %v3178_v22  ;;  %3007 = vst.msk [vmem:[#allocation4 + $0xf0] sm:$0xff] %vm1317_vm3, %v2975_v46  ;;  %v2973_v55 = vadd.f32 %v2930_v58, %v2716_v44  ;;  %v3273_v21 = vsel (%p3218_p8), %vm1317_vm3, %v6673_v2, 0.0  ;;  %v3389_v22 = vmul.f32 (%p3218_p8), %v6663_v13, %v6663_v13  ;;  %v3388_v30 = vmul.f32 (%p3218_p8), %v6665_v31, %v6665_v31  ;;  %v6693_v58 = vld [vmem:[#allocation2 + $0x40] sm:$0xff] (%p3218_p8) }
 0x400   : > { %3213 = vst.msk [vmem:[#allocation2 + $0xd8] sm:$0xff] %vm1317_vm3, %v3181_v1  ;;  %v3179_v20 = vadd.f32 %v3147_v15, %v3108_v51  ;;  %v4939_v10 = vpop.f32.mrf.mxu1  ;;  %v3391_v44 = vmul.f32 (%p3218_p8), %v6671_v35, %v6671_v35  ;;  %v3390_v51 = vmul.f32 (%p3218_p8), %v6673_v2, %v6673_v2  ;;  %v6691_v15 = vld [vmem:[#allocation2 + $0x48] sm:$0xff] (%p3218_p8) }
 0x401   : > { %3005 = vst.msk [vmem:[#allocation4 + $0xe0] sm:$0xff] %vm1317_vm3, %v2973_v55  ;;  %v2976_v6 = vadd.f32 %v4939_v10, %v2719_v53  ;;  %v3431_v38 = vsel (%p3218_p8), %vm1317_vm3, %v3389_v22, 0.0  ;;  %v3428_v54 = vsel (%p3218_p8), %vm1317_vm3, %v3388_v30, 0.0  ;;  %v3282_v53 = vsel (%p3218_p8), %vm1317_vm3, %v6691_v15, 0.0  ;;  %v6701_v10 = vld [vmem:[#allocation2 + $0x50] sm:$0xff] (%p3218_p8) }
 0x402   : > { %3211 = vst.msk [vmem:[#allocation2 + $0xc8] sm:$0xff] %vm1317_vm3, %v3179_v20  ;;  %v2933_v12 = vpop.f32.mrf.mxu1  ;;  %v3437_v46 = vsel (%p3218_p8), %vm1317_vm3, %v3391_v44, 0.0  ;;  %v3434_v1 = vsel (%p3218_p8), %vm1317_vm3, %v3390_v51, 0.0  ;;  %v3279_v55 = vsel (%p3218_p8), %vm1317_vm3, %v6693_v58, 0.0  ;;  %v6699_v20 = vld [vmem:[#allocation2 + $0x58] sm:$0xff] (%p3218_p8)  ;;  %v3403_v22 = vmul.f32 (%p3218_p8), %v6761_v49, %v6761_v49  ;;  %v6781_v44 = vld [vmem:[#allocation2 + $0xa8] sm:$0xff] (%p3218_p8) }
 0x403   : > { %3008 = vst.msk [vmem:[#allocation4 + $0xf8] sm:$0xff] %vm1317_vm3, %v2976_v6  ;;  %v2974_v56 = vadd.f32 %v2933_v12, %v2717_v50  ;;  %v3288_v50 = vsel (%p3218_p8), %vm1317_vm3, %v6699_v20, 0.0  ;;  %v3285_v6 = vsel (%p3218_p8), %vm1317_vm3, %v6701_v10, 0.0  ;;  %v3393_v12 = vmul.f32 (%p3218_p8), %v6691_v15, %v6691_v15  ;;  %v6783_v51 = vld [vmem:[#allocation2 + $0xa0] sm:$0xff] (%p3218_p8) }
 0x404   : > { %v3402_v30 = vmul.f32 (%p3218_p8), %v6763_v14, %v6763_v14 }
 0x405   : > { %3006 = vst.msk [vmem:[#allocation4 + $0xe8] sm:$0xff] %vm1317_vm3, %v2974_v56  ;;  %v3392_v56 = vmul.f32 (%p3218_p8), %v6693_v58, %v6693_v58 }
 0x406   : > { %v3042_v63 = vld [vmem:[#allocation4 + $0xf0] sm:$0xff] }
 0x407   : > { %v3081_v19 = vadd.f32 %v6498_v8, %v3042_v63  ;;  %v3443_v63 = vsel (%p3218_p8), %vm1317_vm3, %v3393_v12, 0.0  ;;  %v3405_v12 = vmul.f32 (%p3218_p8), %v6781_v44, %v6781_v44 }
 0x408   : > { %v3040_v24 = vld [vmem:[#allocation4 + $0xe0] sm:$0xff] }
 0x409   : > { %v3152_v37 = vmul.f32 %v6507_v3, %v3081_v19  ;;  %v3079_v23 = vadd.f32 %v6498_v8, %v3040_v24  ;;  %v3440_v19 = vsel (%p3218_p8), %vm1317_vm3, %v3392_v56, 0.0  ;;  %v3394_v24 = vmul.f32 (%p3218_p8), %v6701_v10, %v6701_v10 }
 0x40a   : > { %v3043_v45 = vld [vmem:[#allocation4 + $0xf8] sm:$0xff]  ;;  %v3404_v56 = vmul.f32 (%p3218_p8), %v6783_v51, %v6783_v51 }
 0x40b   : > { %v3184_v26 = vadd.f32 %v3152_v37, %v3113_v25  ;;  %v3150_v52 = vmul.f32 %v6507_v3, %v3079_v23  ;;  %v3082_v0 = vadd.f32 %v6498_v8, %v3043_v45  ;;  %v3395_v25 = vmul.f32 (%p3218_p8), %v6699_v20, %v6699_v20  ;;  %v6721_v45 = vld [vmem:[#allocation2 + $0x60] sm:$0xff] (%p3218_p8) }
 0x40c   : > { %v3041_v5 = vld [vmem:[#allocation4 + $0xe8] sm:$0xff]  ;;  %v3446_v23 = vsel (%p3218_p8), %vm1317_vm3, %v3394_v24, 0.0 }
 0x40d   : > { %3216 = vst.msk [vmem:[#allocation2 + $0xf0] sm:$0xff] %vm1317_vm3, %v3184_v26  ;;  %v3182_v43 = vadd.f32 %v3150_v52, %v3111_v16  ;;  %v3153_v41 = vmul.f32 %v6507_v3, %v3082_v0  ;;  %v3080_v42 = vadd.f32 %v6498_v8, %v3041_v5  ;;  %v3261_v8 = vsel (%p3218_p8), %vm1317_vm3, %v6635_v62, 0.0  ;;  %v6719_v16 = vld [vmem:[#allocation2 + $0x68] sm:$0xff] (%p3218_p8)  ;;  %v6732_v5 = vld [vmem:[#allocation2 + $0x70] sm:$0xff] (%p3218_p8) }
 0x40e   : > { %3262 = vadd.xlane.f32.xlu1 (%p3218_p8), %v3261_v8  ;;  %v3449_v37 = vsel (%p3218_p8), %vm1317_vm3, %v3395_v25, 0.0  ;;  %v5268_v26 = vld [vmem:[%s7337_s2 + $0x8] sm:$0xff] (%p3218_p8)   ;;  %v3294_v52 = vsel (%p3218_p8), %vm1317_vm3, %v6719_v16, 0.0  ;;  %v3291_v0 = vsel (%p3218_p8), %vm1317_vm3, %v6721_v45, 0.0 }
 0x40f   : > { %3214 = vst.msk [vmem:[#allocation2 + $0xe0] sm:$0xff] %vm1317_vm3, %v3182_v43  ;;  %v3185_v11 = vadd.f32 %v3153_v41, %v3114_v4  ;;  %v3151_v34 = vmul.f32 %v6507_v3, %v3080_v42  ;;  %3222 = sbr.rel (!%p3218_p8) target bundleno = 1697 (0x6a1), region = 104  ;;  %v3255_v3 = vsel (%p3218_p8), %vm1317_vm3, %v6637_v57, 0.0  ;;  %4940 = vmatprep.subr.bf16.mxu0 (%p3218_p8), %v5268_v26  ;;  %4994 = vmatprep.subr.bf16.mxu1 (%p3218_p8), %v5268_v26  ;;  %v6730_v4 = vld [vmem:[#allocation2 + $0x78] sm:$0xff] (%p3218_p8)  ;;  %v5269_v43 = vld [vmem:[%s7337_s2] sm:$0xff] (%p3218_p8)   ;;  %v3297_v42 = vsel (%p3218_p8), %vm1317_vm3, %v6732_v5, 0.0 }
 0x410   : > { %3256 = vadd.xlane.f32.xlu0 (%p3218_p8), %v3255_v3  ;;  %4941 = vmatpush3.bf16.msra.mxu0 (%p3218_p8), %v5268_v26  ;;  %v3300_v41 = vsel (%p3218_p8), %vm1317_vm3, %v6730_v4, 0.0  ;;  %v3399_v8 = vmul.f32 (%p3218_p8), %v6730_v4, %v6730_v4  ;;  %v3398_v3 = vmul.f32 (%p3218_p8), %v6732_v5, %v6732_v5 }
 0x411   : > { %3217 = vst.msk [vmem:[#allocation2 + $0xf8] sm:$0xff] %vm1317_vm3, %v3185_v11  ;;  %v3183_v32 = vadd.f32 %v3151_v34, %v3112_v61  ;;  %4996 = vmatpush3.bf16.msra.mxu1 (%p3218_p8), %v5268_v26  ;;  %v3397_v61 = vmul.f32 (%p3218_p8), %v6719_v16, %v6719_v16  ;;  %v3396_v11 = vmul.f32 (%p3218_p8), %v6721_v45, %v6721_v45  ;;  %v6809_v26 = vld [vmem:[#allocation2 + $0xc8] sm:$0xff] (%p3218_p8) }
 0x412   : > { %3265 = vadd.xlane.f32.xlu1 (%p3218_p8), %v3264_v29  ;;  %4942 = vmatprep.subr.bf16.mxu0 (%p3218_p8), %v5269_v43  ;;  %v3461_v29 = vsel (%p3218_p8), %vm1317_vm3, %v3399_v8, 0.0 }
 0x413   : > { %3215 = vst.msk [vmem:[#allocation2 + $0xe8] sm:$0xff] %vm1317_vm3, %v3183_v32  ;;  %4995 = vmatprep.subr.bf16.mxu1 (%p3218_p8), %v5269_v43  ;;  %v3455_v34 = vsel (%p3218_p8), %vm1317_vm3, %v3397_v61, 0.0  ;;  %v3452_v32 = vsel (%p3218_p8), %vm1317_vm3, %v3396_v11, 0.0 }
 0x414   : > { %3259 = vadd.xlane.f32.xlu0 %v3258_v7  ;;  %4943 = vmatpush3.bf16.msra.mxu0 %v5269_v43  ;;  %v3458_v7 = vsel %vm1317_vm3, %v3398_v3, 0.0 }
 0x415   : > { %4997 = vmatpush3.bf16.msra.mxu1 %v5269_v43 }
 0x416   : > { %3420 = vadd.xlane.f32.xlu1 %v3419_v60  ;;  %v3306_v60 = vsel %vm1317_vm3, %v6753_v47, 0.0 }
 0x418   : > { %3417 = vadd.xlane.f32.xlu0 %v3416_v17  ;;  %v3303_v17 = vsel %vm1317_vm3, %v6755_v48, 0.0 }
 0x41a   : > { %3426 = vadd.xlane.f32.xlu1 %v3425_v36  ;;  %v3312_v36 = vsel %vm1317_vm3, %v6761_v49, 0.0 }
 0x41c   : > { %3423 = vadd.xlane.f32.xlu0 %v3422_v9  ;;  %v3309_v9 = vsel %vm1317_vm3, %v6763_v14, 0.0 }
 0x41e   : > { %3271 = vadd.xlane.f32.xlu1 %v3270_v59  ;;  %v3401_v59 = vmul.f32 %v6753_v47, %v6753_v47 }
 0x420   : > { %3268 = vadd.xlane.f32.xlu0 %v3267_v27  ;;  %v3400_v27 = vmul.f32 %v6755_v48, %v6755_v48 }
 0x422   : > { %3277 = vadd.xlane.f32.xlu1 %v3276_v28  ;;  %v3467_v28 = vsel %vm1317_vm3, %v3401_v59, 0.0 }
 0x424   : > { %3274 = vadd.xlane.f32.xlu0 %v3273_v21  ;;  %v3464_v21 = vsel %vm1317_vm3, %v3400_v27, 0.0 }
 0x426   : > { %3432 = vadd.xlane.f32.xlu1 %v3431_v38  ;;  %v3473_v38 = vsel %vm1317_vm3, %v3403_v22, 0.0 }
 0x428   : > { %3429 = vadd.xlane.f32.xlu0 %v3428_v54  ;;  %v3470_v54 = vsel %vm1317_vm3, %v3402_v30, 0.0 }
 0x42a   : > { %3438 = vadd.xlane.f32.xlu1 %v3437_v46  ;;  %v3318_v46 = vsel %vm1317_vm3, %v6781_v44, 0.0 }
 0x42c   : > { %3435 = vadd.xlane.f32.xlu0 %v3434_v1  ;;  %v3315_v1 = vsel %vm1317_vm3, %v6783_v51, 0.0 }
 0x42e   : > { %3283 = vadd.xlane.f32.xlu1 %v3282_v53  ;;  %v6789_v53 = vld [vmem:[#allocation2 + $0xb8] sm:$0xff] }
 0x42f   : > { %v3407_v25 = vmul.f32 %v6789_v53, %v6789_v53 }
 0x430   : > { %3280 = vadd.xlane.f32.xlu0 %v3279_v55  ;;  %v6791_v55 = vld [vmem:[#allocation2 + $0xb0] sm:$0xff] }
 0x431   : > { %v3406_v24 = vmul.f32 %v6791_v55, %v6791_v55 }
 0x432   : > { %3289 = vadd.xlane.f32.xlu1 %v3288_v50  ;;  %v3324_v50 = vsel %vm1317_vm3, %v6789_v53, 0.0 }
 0x434   : > { %3286 = vadd.xlane.f32.xlu0 %v3285_v6  ;;  %v3321_v6 = vsel %vm1317_vm3, %v6791_v55, 0.0 }
 0x436   : > { %3444 = vadd.xlane.f32.xlu1 %v3443_v63  ;;  %v3479_v63 = vsel %vm1317_vm3, %v3405_v12, 0.0 }
 0x438   : > { %3441 = vadd.xlane.f32.xlu0 %v3440_v19  ;;  %v3476_v19 = vsel %vm1317_vm3, %v3404_v56, 0.0 }
 0x43a   : > { %3450 = vadd.xlane.f32.xlu1 %v3449_v37  ;;  %v3485_v37 = vsel %vm1317_vm3, %v3407_v25, 0.0 }
 0x43c   : > { %3447 = vadd.xlane.f32.xlu0 %v3446_v23  ;;  %v3482_v23 = vsel %vm1317_vm3, %v3406_v24, 0.0 }
 0x43e   : > { %3295 = vadd.xlane.f32.xlu1 %v3294_v52  ;;  %v6811_v52 = vld [vmem:[#allocation2 + $0xc0] sm:$0xff] }
 0x43f   : > { %v3327_v43 = vsel %vm1317_vm3, %v6811_v52, 0.0 }
 0x440   : > { %3292 = vadd.xlane.f32.xlu0 %v3291_v0  ;;  %v3330_v0 = vsel %vm1317_vm3, %v6809_v26, 0.0 }
 0x442   : > { %3301 = vadd.xlane.f32.xlu1 %v3300_v41  ;;  %v6817_v41 = vld [vmem:[#allocation2 + $0xd8] sm:$0xff] }
 0x443   : > { %v3336_v61 = vsel %vm1317_vm3, %v6817_v41, 0.0 }
 0x444   : > { %3298 = vadd.xlane.f32.xlu0 %v3297_v42  ;;  %v6819_v42 = vld [vmem:[#allocation2 + $0xd0] sm:$0xff] }
 0x445   : > { %v3333_v11 = vsel %vm1317_vm3, %v6819_v42, 0.0 }
 0x446   : > { %3456 = vadd.xlane.f32.xlu1 %v3455_v34  ;;  %v3409_v34 = vmul.f32 %v6809_v26, %v6809_v26 }
 0x448   : > { %3453 = vadd.xlane.f32.xlu0 %v3452_v32  ;;  %v3408_v32 = vmul.f32 %v6811_v52, %v6811_v52  ;;  %v3491_v8 = vsel %vm1317_vm3, %v3409_v34, 0.0 }
 0x44a   : > { %3462 = vadd.xlane.f32.xlu1 %v3461_v29  ;;  %v3488_v3 = vsel %vm1317_vm3, %v3408_v32, 0.0  ;;  %v3411_v29 = vmul.f32 %v6817_v41, %v6817_v41 }
 0x44c   : > { %3459 = vadd.xlane.f32.xlu0 %v3458_v7  ;;  %v3410_v7 = vmul.f32 %v6819_v42, %v6819_v42 }
 0x44e   : > { %3307 = vadd.xlane.f32.xlu1 %v3306_v60  ;;  %v3497_v60 = vsel %vm1317_vm3, %v3411_v29, 0.0 }
 0x450   : > { %3304 = vadd.xlane.f32.xlu0 %v3303_v17  ;;  %v3494_v17 = vsel %vm1317_vm3, %v3410_v7, 0.0 }
 0x452   : > { %3313 = vadd.xlane.f32.xlu1 %v3312_v36  ;;  %v6837_v36 = vld [vmem:[#allocation2 + $0xe8] sm:$0xff] }
 0x453   : > { %v3342_v59 = vsel %vm1317_vm3, %v6837_v36, 0.0 }
 0x454   : > { %3310 = vadd.xlane.f32.xlu0 %v3309_v9  ;;  %v6839_v9 = vld [vmem:[#allocation2 + $0xe0] sm:$0xff] }
 0x455   : > { %v3339_v27 = vsel %vm1317_vm3, %v6839_v9, 0.0 }
 0x456   : > { %3468 = vadd.xlane.f32.xlu1 %v3467_v28  ;;  %v6845_v28 = vld [vmem:[#allocation2 + $0xf8] sm:$0xff] }
 0x457   : > { %v3348_v22 = vsel %vm1317_vm3, %v6845_v28, 0.0 }
 0x458   : > { %3465 = vadd.xlane.f32.xlu0 %v3464_v21  ;;  %v6847_v21 = vld [vmem:[#allocation2 + $0xf0] sm:$0xff] }
 0x459   : > { %v3345_v30 = vsel %vm1317_vm3, %v6847_v21, 0.0 }
 0x45a   : > { %3474 = vadd.xlane.f32.xlu1 %v3473_v38  ;;  %v3413_v38 = vmul.f32 %v6837_v36, %v6837_v36 }
 0x45c   : > { %3471 = vadd.xlane.f32.xlu0 %v3470_v54  ;;  %v3412_v54 = vmul.f32 %v6839_v9, %v6839_v9 }
 0x45e   : > { %3319 = vadd.xlane.f32.xlu1 %v3318_v46  ;;  %v3503_v46 = vsel %vm1317_vm3, %v3413_v38, 0.0 }
 0x460   : > { %3316 = vadd.xlane.f32.xlu0 %v3315_v1  ;;  %v3500_v1 = vsel %vm1317_vm3, %v3412_v54, 0.0 }
 0x462   : > { %3325 = vadd.xlane.f32.xlu1 %v3324_v50  ;;  %v3415_v50 = vmul.f32 %v6845_v28, %v6845_v28 }
 0x464   : > { %3322 = vadd.xlane.f32.xlu0 %v3321_v6  ;;  %v3414_v6 = vmul.f32 %v6847_v21, %v6847_v21  ;;  %v3509_v12 = vsel %vm1317_vm3, %v3415_v50, 0.0 }
 0x466   : > { %3480 = vadd.xlane.f32.xlu1 %v3479_v63  ;;  %v3506_v56 = vsel %vm1317_vm3, %v3414_v6, 0.0 }
 0x468   : > { %3477 = vadd.xlane.f32.xlu0 %v3476_v19 }
 0x46a   : > { %3486 = vadd.xlane.f32.xlu1 %v3485_v37 }
 0x46c   : > { %3483 = vadd.xlane.f32.xlu0 %v3482_v23 }
 0x46e   : > { %3331 = vadd.xlane.f32.xlu1 %v3330_v0 }
 0x470   : > { %3328 = vadd.xlane.f32.xlu0 %v3327_v43 }
 0x472   : > { %3337 = vadd.xlane.f32.xlu1 %v3336_v61 }
 0x474   : > { %3334 = vadd.xlane.f32.xlu0 %v3333_v11 }
 0x476   : > { %3492 = vadd.xlane.f32.xlu1 %v3491_v8 }
 0x478   : > { %3489 = vadd.xlane.f32.xlu0 %v3488_v3 }
 0x47a   : > { %3498 = vadd.xlane.f32.xlu1 %v3497_v60 }
 0x47c   : > { %3495 = vadd.xlane.f32.xlu0 %v3494_v17 }
 0x47e   : > { %3343 = vadd.xlane.f32.xlu1 %v3342_v59 }
 0x480   : > { %3340 = vadd.xlane.f32.xlu0 %v3339_v27 }
 0x482   : > { %3349 = vadd.xlane.f32.xlu1 %v3348_v22 }
 0x484   : > { %3346 = vadd.xlane.f32.xlu0 %v3345_v30 }
 0x486   : > { %3504 = vadd.xlane.f32.xlu1 %v3503_v46 }
 0x488   : > { %3501 = vadd.xlane.f32.xlu0 %v3500_v1 }
 0x48a   : > { %3510 = vadd.xlane.f32.xlu1 %v3509_v12 }
 0x48c   : > { %3507 = vadd.xlane.f32.xlu0 %v3506_v56 }
 0x497   : > { %v3263_v63 = vpop.xlane.xlu1 %3262 }
 0x498   : > { %v6869_v0 = vmul.f32 0.03125, %v3263_v63 }
 0x499   : > { %v3257_v19 = vpop.xlane.xlu0 %3256 }
 0x49a   : > { %v6865_v37 = vmul.f32 0.03125, %v3257_v19  ;;  %v3546_v60 = vmul.f32 %v6869_v0, %v6869_v0 }
 0x49b   : > { %v3266_v25 = vpop.xlane.xlu1 %3265 }
 0x49c   : > { %v6871_v43 = vmul.f32 0.03125, %v3266_v25  ;;  %v3544_v34 = vmul.f32 %v6865_v37, %v6865_v37 }
 0x49d   : > { %v3260_v24 = vpop.xlane.xlu0 %3259 }
 0x49e   : > { %v6867_v23 = vmul.f32 0.03125, %v3260_v24  ;;  %v3547_v17 = vmul.f32 %v6871_v43, %v6871_v43 }
 0x49f   : > { %v3421_v61 = vpop.xlane.xlu1 %3420 }
 0x4a0   : > { %v3545_v32 = vmul.f32 %v6867_v23, %v6867_v23  ;;  %v3513_v8 = vmul.f32 0.03125, %v3421_v61 }
 0x4a1   : > { %v3418_v11 = vpop.xlane.xlu0 %3417 }
 0x4a2   : > { %v3512_v3 = vmul.f32 0.03125, %v3418_v11  ;;  %v3577_v29 = vsub.f32 %v3513_v8, %v3545_v32  ;;  %v3768_v8 = vld [vmem:[%s826_s28] sm:$0x1] }
 0x4a3   : > { %v3427_v59 = vpop.xlane.xlu1 %3426 }
 0x4a4   : > { %v3576_v7 = vsub.f32 %v3512_v3, %v3544_v34  ;;  %v3609_v22 = vmax.f32 %v3577_v29, 0.0  ;;  %v3515_v38 = vmul.f32 0.03125, %v3427_v59 }
 0x4a5   : > { %v3424_v27 = vpop.xlane.xlu0 %3423 }
 0x4a6   : > { %v3608_v30 = vmax.f32 %v3576_v7, 0.0  ;;  %v3514_v54 = vmul.f32 0.03125, %v3424_v27  ;;  %v3673_v46 = vadd.f32 1e-06, %v3609_v22  ;;  %v3579_v50 = vsub.f32 %v3515_v38, %v3547_v17 }
 0x4a7   : > { %v3272_v12 = vpop.xlane.xlu1 %3271 }
 0x4a8   : > { %v3672_v1 = vadd.f32 1e-06, %v3608_v30  ;;  %v3578_v6 = vsub.f32 %v3514_v54, %v3546_v60  ;;  %5270 = vrsqrt.f32 %v3673_v46  ;;  %v3611_v63 = vmax.f32 %v3579_v50, 0.0 }
 0x4a9   : > { %v3269_v56 = vpop.xlane.xlu0 %3268  ;;  %v6881_v34 = vmul.f32 0.03125, %v3272_v12  ;;  %v3769_v30 = vadd.f32 1.0, %v3768_v8 }
 0x4aa   : > { %v3610_v19 = vmax.f32 %v3578_v6, 0.0  ;;  %5272 = vrsqrt.f32 %v3672_v1  ;;  %v3675_v25 = vadd.f32 1e-06, %v3611_v63  ;;  %v6883_v32 = vmul.f32 0.03125, %v3269_v56 }
 0x4ab   : > { %v3278_v61 = vpop.xlane.xlu1 %3277  ;;  %v3549_v17 = vmul.f32 %v6881_v34, %v6881_v34 }
 0x4ac   : > { %v3674_v24 = vadd.f32 1e-06, %v3610_v19  ;;  %5274 = vrsqrt.f32 %v3675_v25  ;;  %v6890_v3 = vmul.f32 0.03125, %v3278_v61  ;;  %v3548_v59 = vmul.f32 %v6883_v32, %v6883_v32 }
 0x4ad   : > { %v3275_v11 = vpop.xlane.xlu0 %3274  ;;  %v3641_v61 = vsub.f32 %v6645_v40, %v6867_v23  ;;  %v3642_v23 = vsub.f32 %v6635_v62, %v6869_v0 }
 0x4ae   : > { %5276 = vrsqrt.f32 %v3674_v24  ;;  %v6892_v29 = vmul.f32 0.03125, %v3275_v11  ;;  %v3551_v46 = vmul.f32 %v6890_v3, %v6890_v3  ;;  %v3640_v24 = vsub.f32 %v6637_v57, %v6865_v37  ;;  %v6915_v57 = vld [vmem:[%s823_s18] ss:$0 sm:$0xff]  ;;  %s7338_s18 = sld [smem:[#allocation12_spill]] }
 0x4af   : > { %v3433_v7 = vpop.xlane.xlu1 %3432  ;;  %v6908_v11 = vrot.slane %v3769_v30, %v1836_v33 }
 0x4b0   : > { %v3517_v27 = vmul.f32 0.03125, %v3433_v7  ;;  %v3550_v1 = vmul.f32 %v6892_v29, %v6892_v29 }
 0x4b1   : > { %v3430_v60 = vpop.xlane.xlu0 %3429 }
 0x4b2   : > { %v3516_v22 = vmul.f32 0.03125, %v3430_v60  ;;  %v3581_v38 = vsub.f32 %v3517_v27, %v3549_v17 }
 0x4b3   : > { %v3439_v50 = vpop.xlane.xlu1 %3438 }
 0x4b4   : > { %v3580_v54 = vsub.f32 %v3516_v22, %v3548_v59  ;;  %v3613_v12 = vmax.f32 %v3581_v38, 0.0  ;;  %v3519_v63 = vmul.f32 0.03125, %v3439_v50 }
 0x4b5   : > { %v3436_v6 = vpop.xlane.xlu0 %3435  ;;  %v5271_v25 = vpop.eup %5270 }
 0x4b6   : > { %v3612_v56 = vmax.f32 %v3580_v54, 0.0  ;;  %v3518_v19 = vmul.f32 0.03125, %v3436_v6  ;;  %v3677_v7 = vadd.f32 1e-06, %v3613_v12  ;;  %v3583_v17 = vsub.f32 %v3519_v63, %v3551_v46 }
 0x4b7   : > { %v5273_v8 = vpop.eup %5272  ;;  %v3284_v27 = vpop.xlane.xlu1 %3283  ;;  %v3737_v54 = vmul.f32 %v5271_v25, %v3641_v61 }
 0x4b8   : > { %v3676_v60 = vadd.f32 1e-06, %v3612_v56  ;;  %v3582_v59 = vsub.f32 %v3518_v19, %v3550_v1  ;;  %v3736_v38 = vmul.f32 %v5273_v8, %v3640_v24  ;;  %5278 = vrsqrt.f32 %v3677_v7 }
 0x4b9   : > { %v3281_v22 = vpop.xlane.xlu0 %3280  ;;  %v3615_v50 = vmax.f32 %v3583_v17, 0.0  ;;  %v5275_v18 = vpop.eup %5274  ;;  %v3777_v40 = vmul.f32 %v6908_v11, %v3737_v54  ;;  %v3643_v1 = vsub.f32 %v6639_v39, %v6871_v43  ;;  %v6925_v25 = vmul.f32 0.03125, %v3284_v27 }
 0x4ba   : > { %v3614_v6 = vmax.f32 %v3582_v59, 0.0  ;;  %5280 = vrsqrt.f32 %v3676_v60  ;;  %v3776_v33 = vmul.f32 %v6908_v11, %v3736_v38  ;;  %v6927_v24 = vmul.f32 0.03125, %v3281_v22 }
 0x4bb   : > { %v5277_v37 = vpop.eup %5276  ;;  %v3679_v30 = vadd.f32 1e-06, %v3615_v50  ;;  %v3290_v12 = vpop.xlane.xlu1 %3289  ;;  %v3816_v19 = vadd.f32 %v6915_v57, %v3777_v40  ;;  %v3739_v62 = vmul.f32 %v5275_v18, %v3643_v1  ;;  %v3553_v59 = vmul.f32 %v6925_v25, %v6925_v25 }
 0x4bc   : > { %v3678_v46 = vadd.f32 1e-06, %v3614_v6  ;;  %v3815_v63 = vadd.f32 %v6915_v57, %v3776_v33  ;;  %v3738_v61 = vmul.f32 %v5277_v37, %v3642_v23  ;;  %v6929_v0 = vmul.f32 0.03125, %v3290_v12 }
 0x4bd   : > { %v3287_v56 = vpop.xlane.xlu0 %3286  ;;  %5282 = vrsqrt.f32 %v3679_v30  ;;  %v3779_v17 = vmul.f32 %v6908_v11, %v3739_v62  ;;  %v3552_v27 = vmul.f32 %v6927_v24, %v6927_v24 }
 0x4be   : > { %5284 = vrsqrt.f32 %v3678_v46  ;;  %v3847_v8 = vpack.c.bf16 %v3816_v19, %v3815_v63  ;;  %v6931_v7 = vmul.f32 0.03125, %v3287_v56  ;;  %v3778_v60 = vmul.f32 %v6908_v11, %v3738_v61 }
 0x4bf   : > { %v3445_v39 = vpop.xlane.xlu1 %3444  ;;  %v3818_v50 = vadd.f32 %v6915_v57, %v3779_v17  ;;  %v3555_v33 = vmul.f32 %v6929_v0, %v6929_v0  ;;  %v3645_v19 = vsub.f32 %v6663_v13, %v6881_v34  ;;  %v3644_v61 = vsub.f32 %v6665_v31, %v6883_v32 }
 0x4c0   : > { %4944 = vmatprep.mubr.msk.bf16.mxu0 %vm1317_vm3, %v3847_v8  ;;  %v3521_v22 = vmul.f32 0.03125, %v3445_v39  ;;  %v3817_v54 = vadd.f32 %v6915_v57, %v3778_v60  ;;  %v3554_v40 = vmul.f32 %v6931_v7, %v6931_v7  ;;  %v3646_v32 = vsub.f32 %v6673_v2, %v6892_v29 }
 0x4c1   : > { %v3442_v43 = vpop.xlane.xlu0 %3441 }
 0x4c2   : > { %v3520_v38 = vmul.f32 0.03125, %v3442_v43  ;;  %v3585_v6 = vsub.f32 %v3521_v22, %v3553_v59  ;;  %v3848_v37 = vpack.c.bf16 %v3818_v50, %v3817_v54 }
 0x4c3   : > { %v3451_v23 = vpop.xlane.xlu1 %3450 }
 0x4c4   : > { %v3584_v18 = vsub.f32 %v3520_v38, %v3552_v27  ;;  %v3617_v46 = vmax.f32 %v3585_v6, 0.0  ;;  %v3523_v12 = vmul.f32 0.03125, %v3451_v23  ;;  %4945 = vmatmul.mubr.msk.bf16.vlgmr.msra.gmra.mxu0 %vm1317_vm3, %v3848_v37 }
 0x4c5   : > { %v3448_v30 = vpop.xlane.xlu0 %3447  ;;  %v5279_v63 = vpop.eup %5278 }
 0x4c6   : > { %v3616_v1 = vmax.f32 %v3584_v18, 0.0  ;;  %v3522_v56 = vmul.f32 0.03125, %v3448_v30  ;;  %v3681_v62 = vadd.f32 1e-06, %v3617_v46  ;;  %v3587_v43 = vsub.f32 %v3523_v12, %v3555_v33 }
 0x4c7   : > { %v5281_v8 = vpop.eup %5280  ;;  %v3296_v17 = vpop.xlane.xlu1 %3295  ;;  %v3741_v22 = vmul.f32 %v5279_v63, %v3645_v19  ;;  %v3647_v33 = vsub.f32 %v6671_v35, %v6890_v3 }
 0x4c8   : > { %v3680_v39 = vadd.f32 1e-06, %v3616_v1  ;;  %v3586_v60 = vsub.f32 %v3522_v56, %v3554_v40  ;;  %v3740_v27 = vmul.f32 %v5281_v8, %v3644_v61  ;;  %5286 = vrsqrt.f32 %v3681_v62 }
 0x4c9   : > { %v3293_v59 = vpop.xlane.xlu0 %3292  ;;  %v3619_v38 = vmax.f32 %v3587_v43, 0.0  ;;  %v3781_v31 = vmul.f32 %v6908_v11, %v3741_v22  ;;  %v6959_v46 = vmul.f32 0.03125, %v3296_v17 }
 0x4ca   : > { %v3618_v54 = vmax.f32 %v3586_v60, 0.0  ;;  %v5283_v50 = vpop.eup %5282  ;;  %5288 = vrsqrt.f32 %v3680_v39  ;;  %v3780_v13 = vmul.f32 %v6908_v11, %v3740_v27  ;;  %v6961_v1 = vmul.f32 0.03125, %v3293_v59 }
 0x4cb   : > { %v5285_v34 = vpop.eup %5284  ;;  %v3683_v6 = vadd.f32 1e-06, %v3619_v38  ;;  %v3302_v40 = vpop.xlane.xlu1 %3301  ;;  %v3820_v30 = vadd.f32 %v6915_v57, %v3781_v31  ;;  %v3743_v2 = vmul.f32 %v5283_v50, %v3647_v33  ;;  %v3557_v8 = vmul.f32 %v6959_v46, %v6959_v46 }
 0x4cc   : > { %v3682_v18 = vadd.f32 1e-06, %v3618_v54  ;;  %v3819_v23 = vadd.f32 %v6915_v57, %v3780_v13  ;;  %v3742_v12 = vmul.f32 %v5285_v34, %v3646_v32  ;;  %v6963_v29 = vmul.f32 0.03125, %v3302_v40 }
 0x4cd   : > { %v3299_v37 = vpop.xlane.xlu0 %3298  ;;  %5290 = vrsqrt.f32 %v3683_v6  ;;  %v3783_v61 = vmul.f32 %v6908_v11, %v3743_v2  ;;  %v3556_v62 = vmul.f32 %v6961_v1, %v6961_v1  ;;  %v3649_v33 = vsub.f32 %v6691_v15, %v6925_v25 }
 0x4ce   : > { %5292 = vrsqrt.f32 %v3682_v18  ;;  %v3849_v56 = vpack.c.bf16 %v3820_v30, %v3819_v23  ;;  %v6965_v63 = vmul.f32 0.03125, %v3299_v37  ;;  %v3782_v19 = vmul.f32 %v6908_v11, %v3742_v12 }
 0x4cf   : > { %v3457_v35 = vpop.xlane.xlu1 %3456  ;;  %v3822_v17 = vadd.f32 %v6915_v57, %v3783_v61  ;;  %v3559_v22 = vmul.f32 %v6963_v29, %v6963_v29  ;;  %v3648_v40 = vsub.f32 %v6693_v58, %v6927_v24  ;;  %v3650_v24 = vsub.f32 %v6701_v10, %v6931_v7 }
 0x4d0   : > { %4948 = vmatprep.mubr.msk.bf16.mxu0 %vm1317_vm3, %v3849_v56  ;;  %v3525_v39 = vmul.f32 0.03125, %v3457_v35  ;;  %v3821_v60 = vadd.f32 %v6915_v57, %v3782_v19  ;;  %v3558_v38 = vmul.f32 %v6965_v63, %v6965_v63 }
 0x4d1   : > { %v3454_v3 = vpop.xlane.xlu0 %3453 }
 0x4d2   : > { %v3524_v43 = vmul.f32 0.03125, %v3454_v3  ;;  %v3589_v59 = vsub.f32 %v3525_v39, %v3557_v8  ;;  %v3850_v54 = vpack.c.bf16 %v3822_v17, %v3821_v60  ;;  %v3651_v60 = vsub.f32 %v6699_v20, %v6929_v0 }
 0x4d3   : > { %v3463_v50 = vpop.xlane.xlu1 %3462 }
 0x4d4   : > { %v3588_v27 = vsub.f32 %v3524_v43, %v3556_v62  ;;  %v3621_v31 = vmax.f32 %v3589_v59, 0.0  ;;  %v3527_v32 = vmul.f32 0.03125, %v3463_v50  ;;  %4949 = vmatmul.mubr.msk.bf16.gmra.mxu0 %vm1317_vm3, %v3850_v54 }
 0x4d5   : > { %v3460_v13 = vpop.xlane.xlu0 %3459  ;;  %v5287_v18 = vpop.eup %5286 }
 0x4d6   : > { %v3620_v34 = vmax.f32 %v3588_v27, 0.0  ;;  %v3526_v6 = vmul.f32 0.03125, %v3460_v13  ;;  %v3685_v23 = vadd.f32 1e-06, %v3621_v31  ;;  %v3591_v12 = vsub.f32 %v3527_v32, %v3559_v22 }
 0x4d7   : > { %v5289_v37 = vpop.eup %5288  ;;  %v3308_v2 = vpop.xlane.xlu1 %3307  ;;  %v3745_v19 = vmul.f32 %v5287_v18, %v3649_v33 }
 0x4d8   : > { %v3684_v30 = vadd.f32 1e-06, %v3620_v34  ;;  %v3590_v56 = vsub.f32 %v3526_v6, %v3558_v38  ;;  %v3744_v3 = vmul.f32 %v5289_v37, %v3648_v40  ;;  %5294 = vrsqrt.f32 %v3685_v23 }
 0x4d9   : > { %v3305_v35 = vpop.xlane.xlu0 %3304  ;;  %v3623_v61 = vmax.f32 %v3591_v12, 0.0  ;;  %v3785_v58 = vmul.f32 %v6908_v11, %v3745_v19  ;;  %v6993_v38 = vmul.f32 0.03125, %v3308_v2 }
 0x4da   : > { %v3622_v8 = vmax.f32 %v3590_v56, 0.0  ;;  %v5291_v62 = vpop.eup %5290  ;;  %5296 = vrsqrt.f32 %v3684_v30  ;;  %v3784_v15 = vmul.f32 %v6908_v11, %v3744_v3  ;;  %v6995_v54 = vmul.f32 0.03125, %v3305_v35 }
 0x4db   : > { %v5293_v25 = vpop.eup %5292  ;;  %v3687_v39 = vadd.f32 1e-06, %v3623_v61  ;;  %v3314_v17 = vpop.xlane.xlu1 %3313  ;;  %v3824_v22 = vadd.f32 %v6915_v57, %v3785_v58  ;;  %v3747_v10 = vmul.f32 %v5291_v62, %v3651_v60  ;;  %v3561_v6 = vmul.f32 %v6993_v38, %v6993_v38 }
 0x4dc   : > { %v3686_v43 = vadd.f32 1e-06, %v3622_v8  ;;  %v3823_v27 = vadd.f32 %v6915_v57, %v3784_v15  ;;  %v3746_v50 = vmul.f32 %v5293_v25, %v3650_v24  ;;  %v6997_v7 = vmul.f32 0.03125, %v3314_v17 }
 0x4dd   : > { %v3311_v59 = vpop.xlane.xlu0 %3310  ;;  %5298 = vrsqrt.f32 %v3687_v39  ;;  %v3787_v32 = vmul.f32 %v6908_v11, %v3747_v10  ;;  %v3560_v18 = vmul.f32 %v6995_v54, %v6995_v54  ;;  %v3653_v25 = vsub.f32 %v6719_v16, %v6959_v46 }
 0x4de   : > { %5300 = vrsqrt.f32 %v3686_v43  ;;  %v3851_v13 = vpack.c.bf16 %v3824_v22, %v3823_v27  ;;  %v6999_v31 = vmul.f32 0.03125, %v3311_v59  ;;  %v3786_v34 = vmul.f32 %v6908_v11, %v3746_v50 }
 0x4df   : > { %v3469_v20 = vpop.xlane.xlu1 %3468  ;;  %v3826_v23 = vadd.f32 %v6915_v57, %v3787_v32  ;;  %v3563_v56 = vmul.f32 %v6997_v7, %v6997_v7  ;;  %v3652_v24 = vsub.f32 %v6721_v45, %v6961_v1  ;;  %v3654_v1 = vsub.f32 %v6732_v5, %v6965_v63 }
 0x4e0   : > { %4952 = vmatprep.mubr.msk.bf16.mxu0 %vm1317_vm3, %v3851_v13  ;;  %v3529_v33 = vmul.f32 0.03125, %v3469_v20  ;;  %v3825_v37 = vadd.f32 %v6915_v57, %v3786_v34  ;;  %v3562_v2 = vmul.f32 %v6999_v31, %v6999_v31 }
 0x4e1   : > { %v3466_v0 = vpop.xlane.xlu0 %3465 }
 0x4e2   : > { %v3528_v40 = vmul.f32 0.03125, %v3466_v0  ;;  %v3593_v30 = vsub.f32 %v3529_v33, %v3561_v6  ;;  %v3852_v35 = vpack.c.bf16 %v3826_v23, %v3825_v37  ;;  %v3655_v6 = vsub.f32 %v6730_v4, %v6963_v29 }
 0x4e3   : > { %v3475_v3 = vpop.xlane.xlu1 %3474 }
 0x4e4   : > { %v3592_v12 = vsub.f32 %v3528_v40, %v3560_v18  ;;  %v3625_v61 = vmax.f32 %v3593_v30, 0.0  ;;  %v3531_v62 = vmul.f32 0.03125, %v3475_v3  ;;  %4953 = vmatmul.mubr.msk.bf16.gmra.mxu0 %vm1317_vm3, %v3852_v35 }
 0x4e5   : > { %v3472_v19 = vpop.xlane.xlu0 %3471  ;;  %v5295_v58 = vpop.eup %5294 }
 0x4e6   : > { %v3624_v8 = vmax.f32 %v3592_v12, 0.0  ;;  %v3530_v15 = vmul.f32 0.03125, %v3472_v19  ;;  %v3689_v43 = vadd.f32 1e-06, %v3625_v61  ;;  %v3595_v17 = vsub.f32 %v3531_v62, %v3563_v56 }
 0x4e7   : > { %v5297_v39 = vpop.eup %5296  ;;  %v3320_v27 = vpop.xlane.xlu1 %3319  ;;  %v3749_v13 = vmul.f32 %v5295_v58, %v3653_v25 }
 0x4e8   : > { %v3688_v60 = vadd.f32 1e-06, %v3624_v8  ;;  %v3594_v59 = vsub.f32 %v3530_v15, %v3562_v2  ;;  %v3748_v50 = vmul.f32 %v5297_v39, %v3652_v24  ;;  %5302 = vrsqrt.f32 %v3689_v43 }
 0x4e9   : > { %v3317_v22 = vpop.xlane.xlu0 %3316  ;;  %v3627_v10 = vmax.f32 %v3595_v17, 0.0  ;;  %v3789_v45 = vmul.f32 %v6908_v11, %v3749_v13  ;;  %v7027_v23 = vmul.f32 0.03125, %v3320_v27 }
 0x4ea   : > { %v3626_v20 = vmax.f32 %v3594_v59, 0.0  ;;  %v5299_v0 = vpop.eup %5298  ;;  %5304 = vrsqrt.f32 %v3688_v60  ;;  %v3788_v16 = vmul.f32 %v6908_v11, %v3748_v50  ;;  %v7029_v30 = vmul.f32 0.03125, %v3317_v22 }
 0x4eb   : > { %v5301_v46 = vpop.eup %5300  ;;  %v3691_v34 = vadd.f32 1e-06, %v3627_v10  ;;  %v3326_v18 = vpop.xlane.xlu1 %3325  ;;  %v3828_v37 = vadd.f32 %v6915_v57, %v3789_v45  ;;  %v3751_v5 = vmul.f32 %v5299_v0, %v3655_v6  ;;  %v3565_v19 = vmul.f32 %v7027_v23, %v7027_v23 }
 0x4ec   : > { %v3690_v32 = vadd.f32 1e-06, %v3626_v20  ;;  %v3827_v40 = vadd.f32 %v6915_v57, %v3788_v16  ;;  %v3750_v12 = vmul.f32 %v5301_v46, %v3654_v1  ;;  %v7031_v63 = vmul.f32 0.03125, %v3326_v18 }
 0x4ed   : > { %v3323_v33 = vpop.xlane.xlu0 %3322  ;;  %5306 = vrsqrt.f32 %v3691_v34  ;;  %v3791_v3 = vmul.f32 %v6908_v11, %v3751_v5  ;;  %v3564_v61 = vmul.f32 %v7029_v30, %v7029_v30  ;;  %v3657_v20 = vsub.f32 %v6753_v47, %v6993_v38 }
 0x4ee   : > { %5308 = vrsqrt.f32 %v3690_v32  ;;  %v3853_v56 = vpack.c.bf16 %v3828_v37, %v3827_v40  ;;  %v7033_v2 = vmul.f32 0.03125, %v3323_v33  ;;  %v3790_v35 = vmul.f32 %v6908_v11, %v3750_v12 }
 0x4ef   : > { %v3481_v4 = vpop.xlane.xlu1 %3480  ;;  %v3830_v58 = vadd.f32 %v6915_v57, %v3791_v3  ;;  %v3567_v39 = vmul.f32 %v7031_v63, %v7031_v63  ;;  %v3656_v0 = vsub.f32 %v6755_v48, %v6995_v54  ;;  %v3658_v54 = vsub.f32 %v6763_v14, %v6999_v31 }
 0x4f0   : > { %4956 = vmatprep.mubr.msk.bf16.mxu0 %vm1317_vm3, %v3853_v56  ;;  %v3533_v8 = vmul.f32 0.03125, %v3481_v4  ;;  %v3829_v15 = vadd.f32 %v6915_v57, %v3790_v35  ;;  %v3566_v43 = vmul.f32 %v7033_v2, %v7033_v2  ;;  %v3659_v4 = vsub.f32 %v6761_v49, %v6997_v7 }
 0x4f1   : > { %v3478_v29 = vpop.xlane.xlu0 %3477 }
 0x4f2   : > { %v3532_v62 = vmul.f32 0.03125, %v3478_v29  ;;  %v3597_v25 = vsub.f32 %v3533_v8, %v3565_v19  ;;  %v3854_v60 = vpack.c.bf16 %v3830_v58, %v3829_v15 }
 0x4f3   : > { %v3487_v17 = vpop.xlane.xlu1 %3486 }
 0x4f4   : > { %v3596_v24 = vsub.f32 %v3532_v62, %v3564_v61  ;;  %v3629_v27 = vmax.f32 %v3597_v25, 0.0  ;;  %v3535_v50 = vmul.f32 0.03125, %v3487_v17  ;;  %4957 = vmatmul.mubr.msk.bf16.gmra.mxu0 %vm1317_vm3, %v3854_v60 }
 0x4f5   : > { %v3484_v59 = vpop.xlane.xlu0 %3483  ;;  %v5303_v10 = vpop.eup %5302 }
 0x4f6   : > { %v3628_v22 = vmax.f32 %v3596_v24, 0.0  ;;  %v3534_v13 = vmul.f32 0.03125, %v3484_v59  ;;  %v3693_v45 = vadd.f32 1e-06, %v3629_v27  ;;  %v3599_v1 = vsub.f32 %v3535_v50, %v3567_v39 }
 0x4f7   : > { %v5305_v16 = vpop.eup %5304  ;;  %v3332_v32 = vpop.xlane.xlu1 %3331  ;;  %v3753_v33 = vmul.f32 %v5303_v10, %v3657_v20 }
 0x4f8   : > { %v3692_v46 = vadd.f32 1e-06, %v3628_v22  ;;  %v3598_v34 = vsub.f32 %v3534_v13, %v3566_v43  ;;  %v3752_v18 = vmul.f32 %v5305_v16, %v3656_v0  ;;  %5310 = vrsqrt.f32 %v3693_v45 }
 0x4f9   : > { %v3329_v6 = vpop.xlane.xlu0 %3328  ;;  %v3631_v40 = vmax.f32 %v3599_v1, 0.0  ;;  %v3793_v48 = vmul.f32 %v6908_v11, %v3753_v33  ;;  %v7061_v61 = vmul.f32 0.03125, %v3332_v32 }
 0x4fa   : > { %v3630_v37 = vmax.f32 %v3598_v34, 0.0  ;;  %v5307_v12 = vpop.eup %5306  ;;  %5312 = vrsqrt.f32 %v3692_v46  ;;  %v3792_v47 = vmul.f32 %v6908_v11, %v3752_v18  ;;  %v7063_v8 = vmul.f32 0.03125, %v3329_v6 }
 0x4fb   : > { %v5309_v38 = vpop.eup %5308  ;;  %v3695_v56 = vadd.f32 1e-06, %v3631_v40  ;;  %v3338_v29 = vpop.xlane.xlu1 %3337  ;;  %v3832_v19 = vadd.f32 %v6915_v57, %v3793_v48  ;;  %v3755_v14 = vmul.f32 %v5307_v12, %v3659_v4  ;;  %v3569_v39 = vmul.f32 %v7061_v61, %v7061_v61 }
 0x4fc   : > { %v3694_v5 = vadd.f32 1e-06, %v3630_v37  ;;  %v3831_v3 = vadd.f32 %v6915_v57, %v3792_v47  ;;  %v3754_v62 = vmul.f32 %v5309_v38, %v3658_v54  ;;  %v7065_v31 = vmul.f32 0.03125, %v3338_v29 }
 0x4fd   : > { %v3335_v35 = vpop.xlane.xlu0 %3334  ;;  %5314 = vrsqrt.f32 %v3695_v56  ;;  %v3795_v24 = vmul.f32 %v6908_v11, %v3755_v14  ;;  %v3568_v43 = vmul.f32 %v7063_v8, %v7063_v8  ;;  %v3661_v6 = vsub.f32 %v6781_v44, %v7027_v23 }
 0x4fe   : > { %5316 = vrsqrt.f32 %v3694_v5  ;;  %v3855_v15 = vpack.c.bf16 %v3832_v19, %v3831_v3  ;;  %v7067_v58 = vmul.f32 0.03125, %v3335_v35  ;;  %v3794_v25 = vmul.f32 %v6908_v11, %v3754_v62 }
 0x4ff   : > { %v3493_v49 = vpop.xlane.xlu1 %3492  ;;  %v3834_v27 = vadd.f32 %v6915_v57, %v3795_v24  ;;  %v3571_v13 = vmul.f32 %v7065_v31, %v7065_v31  ;;  %v3660_v18 = vsub.f32 %v6783_v51, %v7029_v30  ;;  %v3662_v30 = vsub.f32 %v6791_v55, %v7033_v2 }
 0x500   : > { %4960 = vmatprep.mubr.msk.bf16.mxu1 %vm1317_vm3, %v3855_v15  ;;  %v3537_v60 = vmul.f32 0.03125, %v3493_v49  ;;  %v3833_v59 = vadd.f32 %v6915_v57, %v3794_v25  ;;  %v3570_v10 = vmul.f32 %v7067_v58, %v7067_v58  ;;  %v3663_v19 = vsub.f32 %v6789_v53, %v7031_v63 }
 0x501   : > { %v3490_v7 = vpop.xlane.xlu0 %3489 }
 0x502   : > { %v3536_v17 = vmul.f32 0.03125, %v3490_v7  ;;  %v3601_v22 = vsub.f32 %v3537_v60, %v3569_v39  ;;  %v3856_v20 = vpack.c.bf16 %v3834_v27, %v3833_v59 }
 0x503   : > { %v3499_v0 = vpop.xlane.xlu1 %3498 }
 0x504   : > { %v3600_v50 = vsub.f32 %v3536_v17, %v3568_v43  ;;  %v3633_v45 = vmax.f32 %v3601_v22, 0.0  ;;  %v3539_v1 = vmul.f32 0.03125, %v3499_v0  ;;  %4961 = vmatmul.mubr.msk.bf16.vlgmr.msra.gmra.mxu1 %vm1317_vm3, %v3856_v20 }
 0x505   : > { %v3496_v16 = vpop.xlane.xlu0 %3495  ;;  %v5311_v32 = vpop.eup %5310 }
 0x506   : > { %v3632_v46 = vmax.f32 %v3600_v50, 0.0  ;;  %v3538_v34 = vmul.f32 0.03125, %v3496_v16  ;;  %v3697_v40 = vadd.f32 1e-06, %v3633_v45  ;;  %v3603_v12 = vsub.f32 %v3539_v1, %v3571_v13 }
 0x507   : > { %v5313_v33 = vpop.eup %5312  ;;  %v3344_v48 = vpop.xlane.xlu1 %3343  ;;  %v3757_v56 = vmul.f32 %v5311_v32, %v3661_v6 }
 0x508   : > { %v3696_v37 = vadd.f32 1e-06, %v3632_v46  ;;  %v3602_v47 = vsub.f32 %v3538_v34, %v3570_v10  ;;  %v3756_v54 = vmul.f32 %v5313_v33, %v3660_v18  ;;  %5318 = vrsqrt.f32 %v3697_v40 }
 0x509   : > { %v3341_v38 = vpop.xlane.xlu0 %3340  ;;  %v3635_v5 = vmax.f32 %v3603_v12, 0.0  ;;  %v3797_v51 = vmul.f32 %v6908_v11, %v3757_v56  ;;  %v7095_v7 = vmul.f32 0.03125, %v3344_v48  ;;  %v3664_v12 = vsub.f32 %v6811_v52, %v7063_v8 }
 0x50a   : > { %v3634_v4 = vmax.f32 %v3602_v47, 0.0  ;;  %v5315_v29 = vpop.eup %5314  ;;  %5320 = vrsqrt.f32 %v3696_v37  ;;  %v3796_v44 = vmul.f32 %v6908_v11, %v3756_v54  ;;  %v7097_v25 = vmul.f32 0.03125, %v3341_v38 }
 0x50b   : > { %v5317_v23 = vpop.eup %5316  ;;  %v3699_v35 = vadd.f32 1e-06, %v3635_v5  ;;  %v3350_v62 = vpop.xlane.xlu1 %3349  ;;  %v3836_v49 = vadd.f32 %v6915_v57, %v3797_v51  ;;  %v3759_v55 = vmul.f32 %v5315_v29, %v3663_v19  ;;  %v3573_v59 = vmul.f32 %v7095_v7, %v7095_v7 }
 0x50c   : > { %v3698_v3 = vadd.f32 1e-06, %v3634_v4  ;;  %v3835_v14 = vadd.f32 %v6915_v57, %v3796_v44  ;;  %v3758_v24 = vmul.f32 %v5317_v23, %v3662_v30  ;;  %v7099_v2 = vmul.f32 0.03125, %v3350_v62 }
 0x50d   : > { %v3347_v15 = vpop.xlane.xlu0 %3346  ;;  %5322 = vrsqrt.f32 %v3699_v35  ;;  %v3799_v17 = vmul.f32 %v6908_v11, %v3759_v55  ;;  %v3572_v27 = vmul.f32 %v7097_v25, %v7097_v25  ;;  %v3665_v37 = vsub.f32 %v6809_v26, %v7061_v61 }
 0x50e   : > { %5324 = vrsqrt.f32 %v3698_v3  ;;  %v3857_v39 = vpack.c.bf16 %v3836_v49, %v3835_v14  ;;  %v7101_v43 = vmul.f32 0.03125, %v3347_v15  ;;  %v3798_v60 = vmul.f32 %v6908_v11, %v3758_v24 }
 0x50f   : > { %v3505_v53 = vpop.xlane.xlu1 %3504  ;;  %v3838_v10 = vadd.f32 %v6915_v57, %v3799_v17  ;;  %v3575_v16 = vmul.f32 %v7099_v2, %v7099_v2  ;;  %v3667_v29 = vsub.f32 %v6817_v41, %v7065_v31  ;;  %v3666_v26 = vsub.f32 %v6819_v42, %v7067_v58 }
 0x510   : > { %4964 = vmatprep.mubr.msk.bf16.mxu1 %vm1317_vm3, %v3857_v39  ;;  %v3541_v22 = vmul.f32 0.03125, %v3505_v53  ;;  %v3837_v13 = vadd.f32 %v6915_v57, %v3798_v60  ;;  %v3574_v45 = vmul.f32 %v7101_v43, %v7101_v43  ;;  %v3669_v24 = vsub.f32 %v6837_v36, %v7095_v7 }
 0x511   : > { %v3502_v63 = vpop.xlane.xlu0 %3501  ;;  %v3668_v55 = vsub.f32 %v6839_v9, %v7097_v25  ;;  %v3671_v17 = vsub.f32 %v6845_v28, %v7099_v2 }
 0x512   : > { %v3540_v50 = vmul.f32 0.03125, %v3502_v63  ;;  %v3605_v20 = vsub.f32 %v3541_v22, %v3573_v59  ;;  %v3858_v46 = vpack.c.bf16 %v3838_v10, %v3837_v13  ;;  %v3670_v22 = vsub.f32 %v6847_v21, %v7101_v43 }
 0x513   : > { %v3511_v1 = vpop.xlane.xlu1 %3510 }
 0x514   : > { %v3604_v0 = vsub.f32 %v3540_v50, %v3572_v27  ;;  %v3637_v32 = vmax.f32 %v3605_v20, 0.0  ;;  %v3543_v18 = vmul.f32 0.03125, %v3511_v1  ;;  %4965 = vmatmul.mubr.msk.bf16.gmra.mxu1 %vm1317_vm3, %v3858_v46  ;;  %v4095_v1 = vld [vmem:[%s7338_s18] sm:$0xff] }
 0x515   : > { %v3508_v34 = vpop.xlane.xlu0 %3507  ;;  %v5319_v40 = vpop.eup %5318 }
 0x516   : > { %v3636_v6 = vmax.f32 %v3604_v0, 0.0  ;;  %v3542_v33 = vmul.f32 0.03125, %v3508_v34  ;;  %v3701_v48 = vadd.f32 1e-06, %v3637_v32  ;;  %v3607_v54 = vsub.f32 %v3543_v18, %v3575_v16  ;;  %v7156_v0 = vld [vmem:[%s7339_s27] ss:$0 sm:$0xff] }
 0x517   : > { %v5321_v47 = vpop.eup %5320  ;;  %v3761_v4 = vmul.f32 %v5319_v40, %v3665_v37  ;;  %v4096_v37 = vld [vmem:[%s7338_s18 + $0x8] sm:$0xff] }
 0x518   : > { %v3700_v38 = vadd.f32 1e-06, %v3636_v6  ;;  %v3606_v56 = vsub.f32 %v3542_v33, %v3574_v45  ;;  %v3760_v5 = vmul.f32 %v5321_v47, %v3664_v12  ;;  %5326 = vrsqrt.f32 %v3701_v48  ;;  %v4098_v33 = vld [vmem:[%s7338_s18 + $0x18] sm:$0xff] }
 0x519   : > { %v3639_v44 = vmax.f32 %v3607_v54, 0.0  ;;  %v3801_v61 = vmul.f32 %v6908_v11, %v3761_v4 }
 0x51a   : > { %v3638_v51 = vmax.f32 %v3606_v56, 0.0  ;;  %v5323_v23 = vpop.eup %5322  ;;  %5328 = vrsqrt.f32 %v3700_v38  ;;  %v3800_v52 = vmul.f32 %v6908_v11, %v3760_v5 }
 0x51b   : > { %v5325_v8 = vpop.eup %5324  ;;  %v3703_v30 = vadd.f32 1e-06, %v3639_v44  ;;  %v3763_v3 = vmul.f32 %v5323_v23, %v3667_v29  ;;  %v3840_v41 = vadd.f32 %v6915_v57, %v3801_v61 }
 0x51c   : > { %v3702_v35 = vadd.f32 1e-06, %v3638_v51  ;;  %v3839_v19 = vadd.f32 %v6915_v57, %v3800_v52  ;;  %v3762_v31 = vmul.f32 %v5325_v8, %v3666_v26  ;;  %v4101_v52 = vld [vmem:[%s7338_s18 + $0x30] sm:$0xff]  ;;  %v4099_v8 = vld [vmem:[%s7338_s18 + $0x20] sm:$0xff] }
 0x51d   : > { %5330 = vrsqrt.f32 %v3703_v30  ;;  %v3803_v62 = vmul.f32 %v6908_v11, %v3763_v3 }
 0x51e   : > { %5332 = vrsqrt.f32 %v3702_v35  ;;  %v3859_v15 = vpack.c.bf16 %v3840_v41, %v3839_v19  ;;  %v3802_v42 = vmul.f32 %v6908_v11, %v3762_v31  ;;  %v4102_v31 = vld [vmem:[%s7338_s18 + $0x38] sm:$0xff] }
 0x51f   : > { %v3842_v58 = vadd.f32 %v6915_v57, %v3803_v62 }
 0x520   : > { %4968 = vmatprep.mubr.msk.bf16.mxu1 %vm1317_vm3, %v3859_v15  ;;  %v3841_v14 = vadd.f32 %v6915_v57, %v3802_v42  ;;  %v4100_v15 = vld [vmem:[%s7338_s18 + $0x28] sm:$0xff] }
 0x522   : > { %v3860_v49 = vpack.c.bf16 %v3842_v58, %v3841_v14 }
 0x524   : > { %4969 = vmatmul.mubr.msk.bf16.gmra.mxu1 %vm1317_vm3, %v3860_v49 }
 0x525   : > { %v5327_v39 = vpop.eup %5326 }
 0x526   : > { %v3765_v63 = vmul.f32 %v5327_v39, %v3669_v24 }
 0x527   : > { %v5329_v53 = vpop.eup %5328 }
 0x528   : > { %v3764_v60 = vmul.f32 %v5329_v53, %v3668_v55  ;;  %v3805_v59 = vmul.f32 %v6908_v11, %v3765_v63 }
 0x52a   : > { %v5331_v27 = vpop.eup %5330  ;;  %v3804_v50 = vmul.f32 %v6908_v11, %v3764_v60  ;;  %v3844_v36 = vadd.f32 %v6915_v57, %v3805_v59 }
 0x52b   : > { %v5333_v13 = vpop.eup %5332  ;;  %v3767_v7 = vmul.f32 %v5331_v27, %v3671_v17 }
 0x52c   : > { %v3843_v9 = vadd.f32 %v6915_v57, %v3804_v50  ;;  %v3766_v25 = vmul.f32 %v5333_v13, %v3670_v22  ;;  %v4105_v22 = vld [vmem:[%s7338_s18 + $0x50] sm:$0xff]  ;;  %v4103_v13 = vld [vmem:[%s7338_s18 + $0x40] sm:$0xff] }
 0x52d   : > { %v3807_v10 = vmul.f32 %v6908_v11, %v3767_v7 }
 0x52e   : > { %v3861_v28 = vpack.c.bf16 %v3844_v36, %v3843_v9  ;;  %v3806_v2 = vmul.f32 %v6908_v11, %v3766_v25  ;;  %v4097_v11 = vld [vmem:[%s7338_s18 + $0x10] sm:$0xff] }
 0x52f   : > { %v3846_v20 = vadd.f32 %v6915_v57, %v3807_v10 }
 0x530   : > { %4972 = vmatprep.mubr.msk.bf16.mxu1 %vm1317_vm3, %v3861_v28  ;;  %v3845_v21 = vadd.f32 %v6915_v57, %v3806_v2  ;;  %v4106_v28 = vld [vmem:[%s7338_s18 + $0x58] sm:$0xff] }
 0x532   : > { %v3862_v43 = vpack.c.bf16 %v3846_v20, %v3845_v21  ;;  %v4104_v20 = vld [vmem:[%s7338_s18 + $0x48] sm:$0xff] }
 0x534   : > { %4973 = vmatmul.mubr.msk.bf16.gmra.mxu1 %vm1317_vm3, %v3862_v43 }
 0x584   : > { %v4946_v16 = vpop.f32.mrf.mxu0 }
 0x585   : > { %v3977_v45 = vadd.f32 %v4946_v16, %v7156_v0 }
 0x586   : > { %v3968_v46 = vpop.f32.mrf.mxu0 }
 0x587   : > { %v3969_v34 = vadd.f32 %v7156_v0, %v3968_v46  ;;  %v4129_v6 = vsub.f32 %v3977_v45, %v4097_v11 }
 0x588   : > { %v4947_v32 = vpop.f32.mrf.mxu0 }
 0x589   : > { %v4127_v57 = vsub.f32 %v3969_v34, %v4095_v1  ;;  %v3980_v18 = vadd.f32 %v4947_v32, %v7156_v0  ;;  %v4161_v56 = vmul.f32 %v4129_v6, %v4129_v6 }
 0x58a   : > { %v3971_v40 = vpop.f32.mrf.mxu0 }
 0x58b   : > { %v3972_v12 = vadd.f32 %v7156_v0, %v3971_v40  ;;  %v4159_v47 = vmul.f32 %v4127_v57, %v4127_v57  ;;  %v4130_v48 = vsub.f32 %v3980_v18, %v4098_v33  ;;  %v4198_v29 = vsel %vm4191_vm5, %v4161_v56, 0.0  ;;  %v4109_v40 = vld [vmem:[%s7338_s18 + $0x70] sm:$0xff] }
 0x58d   : > { %v4128_v38 = vsub.f32 %v3972_v12, %v4096_v37  ;;  %v4192_v54 = vsel %vm4191_vm5, %v4159_v47, 0.0  ;;  %v4162_v44 = vmul.f32 %v4130_v48, %v4130_v48  ;;  %v4107_v12 = vld [vmem:[%s7338_s18 + $0x60] sm:$0xff] }
 0x58e   : > { %4193 = vadd.xlane.f32.xlu0 %v4192_v54 }
 0x58f   : > { %v4160_v5 = vmul.f32 %v4128_v38, %v4128_v38  ;;  %v4201_v26 = vsel %vm4191_vm5, %v4162_v44, 0.0 }
 0x591   : > { %v4195_v4 = vsel %vm4191_vm5, %v4160_v5, 0.0  ;;  %v4110_v5 = vld [vmem:[%s7338_s18 + $0x78] sm:$0xff] }
 0x592   : > { %4196 = vadd.xlane.f32.xlu1 %v4195_v4  ;;  %4199 = vadd.xlane.f32.xlu0 %v4198_v29  ;;  %v4108_v29 = vld [vmem:[%s7338_s18 + $0x68] sm:$0xff] }
 0x594   : > { %v4950_v51 = vpop.f32.mrf.mxu0 }
 0x595   : > { %v3993_v23 = vadd.f32 %v4950_v51, %v7156_v0 }
 0x596   : > { %4202 = vadd.xlane.f32.xlu1 %v4201_v26  ;;  %v3984_v61 = vpop.f32.mrf.mxu0 }
 0x597   : > { %v3985_v30 = vadd.f32 %v7156_v0, %v3984_v61  ;;  %v4133_v3 = vsub.f32 %v3993_v23, %v4101_v52 }
 0x598   : > { %v4951_v35 = vpop.f32.mrf.mxu0 }
 0x599   : > { %v4131_v19 = vsub.f32 %v3985_v30, %v4099_v8  ;;  %v3996_v41 = vadd.f32 %v4951_v35, %v7156_v0  ;;  %v4165_v39 = vmul.f32 %v4133_v3, %v4133_v3 }
 0x59a   : > { %v3987_v62 = vpop.f32.mrf.mxu0 }
 0x59b   : > { %v3988_v42 = vadd.f32 %v7156_v0, %v3987_v62  ;;  %v4163_v58 = vmul.f32 %v4131_v19, %v4131_v19  ;;  %v4134_v14 = vsub.f32 %v3996_v41, %v4102_v31  ;;  %v4210_v63 = vsel %vm4191_vm5, %v4165_v39, 0.0  ;;  %v4113_v62 = vld [vmem:[%s7338_s18 + $0x90] sm:$0xff] }
 0x59d   : > { %v4132_v49 = vsub.f32 %v3988_v42, %v4100_v15  ;;  %v4204_v24 = vsel %vm4191_vm5, %v4163_v58, 0.0  ;;  %v4166_v60 = vmul.f32 %v4134_v14, %v4134_v14  ;;  %v4111_v42 = vld [vmem:[%s7338_s18 + $0x80] sm:$0xff] }
 0x59e   : > { %4205 = vadd.xlane.f32.xlu0 %v4204_v24 }
 0x59f   : > { %v4164_v55 = vmul.f32 %v4132_v49, %v4132_v49  ;;  %v4213_v27 = vsel %vm4191_vm5, %v4166_v60, 0.0 }
 0x5a1   : > { %v4207_v53 = vsel %vm4191_vm5, %v4164_v55, 0.0  ;;  %v4114_v55 = vld [vmem:[%s7338_s18 + $0x98] sm:$0xff] }
 0x5a2   : > { %4208 = vadd.xlane.f32.xlu1 %v4207_v53  ;;  %4211 = vadd.xlane.f32.xlu0 %v4210_v63  ;;  %v4112_v63 = vld [vmem:[%s7338_s18 + $0x88] sm:$0xff] }
 0x5a4   : > { %v4954_v17 = vpop.f32.mrf.mxu0 }
 0x5a5   : > { %v4009_v59 = vadd.f32 %v4954_v17, %v7156_v0 }
 0x5a6   : > { %4214 = vadd.xlane.f32.xlu1 %v4213_v27  ;;  %v4000_v50 = vpop.f32.mrf.mxu0 }
 0x5a7   : > { %v4001_v36 = vadd.f32 %v7156_v0, %v4000_v50  ;;  %v4137_v9 = vsub.f32 %v4009_v59, %v4105_v22 }
 0x5a8   : > { %v4955_v7 = vpop.f32.mrf.mxu0 }
 0x5a9   : > { %v4135_v25 = vsub.f32 %v4001_v36, %v4103_v13  ;;  %v4012_v10 = vadd.f32 %v4955_v7, %v7156_v0  ;;  %v4169_v46 = vmul.f32 %v4137_v9, %v4137_v9 }
 0x5aa   : > { %v4003_v2 = vpop.f32.mrf.mxu0 }
 0x5ab   : > { %v4004_v21 = vadd.f32 %v7156_v0, %v4003_v2  ;;  %v4167_v43 = vmul.f32 %v4135_v25, %v4135_v25  ;;  %v4138_v16 = vsub.f32 %v4012_v10, %v4106_v28  ;;  %v4222_v32 = vsel %vm4191_vm5, %v4169_v46, 0.0  ;;  %v4117_v2 = vld [vmem:[%s7338_s18 + $0xb0] sm:$0xff] }
 0x5ad   : > { %v4136_v45 = vsub.f32 %v4004_v21, %v4104_v20  ;;  %v4216_v11 = vsel %vm4191_vm5, %v4167_v43, 0.0  ;;  %v4170_v6 = vmul.f32 %v4138_v16, %v4138_v16  ;;  %v4115_v21 = vld [vmem:[%s7338_s18 + $0xa0] sm:$0xff] }
 0x5ae   : > { %4217 = vadd.xlane.f32.xlu0 %v4216_v11 }
 0x5af   : > { %v4168_v1 = vmul.f32 %v4136_v45, %v4136_v45  ;;  %v4225_v33 = vsel %vm4191_vm5, %v4170_v6, 0.0 }
 0x5b1   : > { %v4219_v34 = vsel %vm4191_vm5, %v4168_v1, 0.0  ;;  %v4118_v1 = vld [vmem:[%s7338_s18 + $0xb8] sm:$0xff] }
 0x5b2   : > { %4220 = vadd.xlane.f32.xlu1 %v4219_v34  ;;  %4223 = vadd.xlane.f32.xlu0 %v4222_v32  ;;  %v4116_v32 = vld [vmem:[%s7338_s18 + $0xa8] sm:$0xff] }
 0x5b4   : > { %v4958_v57 = vpop.f32.mrf.mxu0 }
 0x5b5   : > { %v4025_v18 = vadd.f32 %v4958_v57, %v7156_v0 }
 0x5b6   : > { %4226 = vadd.xlane.f32.xlu1 %v4225_v33  ;;  %v4016_v37 = vpop.f32.mrf.mxu0 }
 0x5b7   : > { %v4017_v47 = vadd.f32 %v7156_v0, %v4016_v37  ;;  %v4141_v38 = vsub.f32 %v4025_v18, %v4109_v40 }
 0x5b8   : > { %v4959_v48 = vpop.f32.mrf.mxu0 }
 0x5b9   : > { %v4139_v54 = vsub.f32 %v4017_v47, %v4107_v12  ;;  %v4028_v56 = vadd.f32 %v4959_v48, %v7156_v0  ;;  %v4173_v61 = vmul.f32 %v4141_v38, %v4141_v38 }
 0x5ba   : > { %v4019_v4 = vpop.f32.mrf.mxu0 }
 0x5bb   : > { %v4020_v44 = vadd.f32 %v7156_v0, %v4019_v4  ;;  %v4171_v51 = vmul.f32 %v4139_v54, %v4139_v54  ;;  %v4142_v23 = vsub.f32 %v4028_v56, %v4110_v5  ;;  %v4234_v35 = vsel %vm4191_vm5, %v4173_v61, 0.0  ;;  %v4121_v5 = vld [vmem:[%s7338_s18 + $0xd0] sm:$0xff] }
 0x5bd   : > { %v4140_v26 = vsub.f32 %v4020_v44, %v4108_v29  ;;  %v4228_v52 = vsel %vm4191_vm5, %v4171_v51, 0.0  ;;  %v4174_v3 = vmul.f32 %v4142_v23, %v4142_v23  ;;  %v4119_v29 = vld [vmem:[%s7338_s18 + $0xc0] sm:$0xff] }
 0x5be   : > { %4229 = vadd.xlane.f32.xlu0 %v4228_v52 }
 0x5bf   : > { %v4172_v8 = vmul.f32 %v4140_v26, %v4140_v26  ;;  %v4237_v31 = vsel %vm4191_vm5, %v4174_v3, 0.0 }
 0x5c1   : > { %v4231_v30 = vsel %vm4191_vm5, %v4172_v8, 0.0  ;;  %v4122_v8 = vld [vmem:[%s7338_s18 + $0xd8] sm:$0xff] }
 0x5c2   : > { %4232 = vadd.xlane.f32.xlu1 %v4231_v30  ;;  %4235 = vadd.xlane.f32.xlu0 %v4234_v35  ;;  %v4120_v35 = vld [vmem:[%s7338_s18 + $0xc8] sm:$0xff] }
 0x5c4   : > { %v4962_v19 = vpop.f32.mrf.mxu1 }
 0x5c5   : > { %v4041_v41 = vadd.f32 %v4962_v19, %v7156_v0 }
 0x5c6   : > { %4238 = vadd.xlane.f32.xlu1 %v4237_v31  ;;  %v4032_v15 = vpop.f32.mrf.mxu1 }
 0x5c7   : > { %v4033_v58 = vadd.f32 %v7156_v0, %v4032_v15  ;;  %v4145_v49 = vsub.f32 %v4041_v41, %v4113_v62 }
 0x5c8   : > { %v4963_v14 = vpop.f32.mrf.mxu1 }
 0x5c9   : > { %v4143_v24 = vsub.f32 %v4033_v58, %v4111_v42  ;;  %v4044_v39 = vadd.f32 %v4963_v14, %v7156_v0  ;;  %v4177_v50 = vmul.f32 %v4145_v49, %v4145_v49 }
 0x5ca   : > { %v4035_v53 = vpop.f32.mrf.mxu1 }
 0x5cb   : > { %v4036_v60 = vadd.f32 %v7156_v0, %v4035_v53  ;;  %v4175_v17 = vmul.f32 %v4143_v24, %v4143_v24  ;;  %v4146_v59 = vsub.f32 %v4044_v39, %v4114_v55  ;;  %v4246_v7 = vsel %vm4191_vm5, %v4177_v50, 0.0  ;;  %v4125_v53 = vld [vmem:[%s7338_s18 + $0xf0] sm:$0xff] }
 0x5cd   : > { %v4144_v27 = vsub.f32 %v4036_v60, %v4112_v63  ;;  %v4240_v22 = vsel %vm4191_vm5, %v4175_v17, 0.0  ;;  %v4178_v9 = vmul.f32 %v4146_v59, %v4146_v59  ;;  %v4123_v60 = vld [vmem:[%s7338_s18 + $0xe0] sm:$0xff] }
 0x5ce   : > { %4241 = vadd.xlane.f32.xlu0 %v4240_v22 }
 0x5cf   : > { %v4176_v13 = vmul.f32 %v4144_v27, %v4144_v27  ;;  %v4249_v28 = vsel %vm4191_vm5, %v4178_v9, 0.0 }
 0x5d1   : > { %v4243_v36 = vsel %vm4191_vm5, %v4176_v13, 0.0  ;;  %v4126_v13 = vld [vmem:[%s7338_s18 + $0xf8] sm:$0xff] }
 0x5d2   : > { %4244 = vadd.xlane.f32.xlu1 %v4243_v36  ;;  %4247 = vadd.xlane.f32.xlu0 %v4246_v7  ;;  %v4124_v7 = vld [vmem:[%s7338_s18 + $0xe8] sm:$0xff] }
 0x5d4   : > { %v4966_v25 = vpop.f32.mrf.mxu1 }
 0x5d5   : > { %v4057_v10 = vadd.f32 %v4966_v25, %v7156_v0 }
 0x5d6   : > { %4250 = vadd.xlane.f32.xlu1 %v4249_v28  ;;  %v4048_v20 = vpop.f32.mrf.mxu1 }
 0x5d7   : > { %v4049_v43 = vadd.f32 %v7156_v0, %v4048_v20  ;;  %v4149_v45 = vsub.f32 %v4057_v10, %v4117_v2 }
 0x5d8   : > { %v4967_v16 = vpop.f32.mrf.mxu1 }
 0x5d9   : > { %v4147_v11 = vsub.f32 %v4049_v43, %v4115_v21  ;;  %v4060_v46 = vadd.f32 %v4967_v16, %v7156_v0  ;;  %v4181_v37 = vmul.f32 %v4149_v45, %v4149_v45 }
 0x5da   : > { %v4051_v34 = vpop.f32.mrf.mxu1 }
 0x5db   : > { %v4052_v6 = vadd.f32 %v7156_v0, %v4051_v34  ;;  %v4179_v57 = vmul.f32 %v4147_v11, %v4147_v11  ;;  %v4150_v18 = vsub.f32 %v4060_v46, %v4118_v1  ;;  %v4258_v48 = vsel %vm4191_vm5, %v4181_v37, 0.0 }
 0x5dd   : > { %v4148_v33 = vsub.f32 %v4052_v6, %v4116_v32  ;;  %v4252_v40 = vsel %vm4191_vm5, %v4179_v57, 0.0  ;;  %v4182_v38 = vmul.f32 %v4150_v18, %v4150_v18 }
 0x5de   : > { %4253 = vadd.xlane.f32.xlu0 %v4252_v40 }
 0x5df   : > { %v4180_v12 = vmul.f32 %v4148_v33, %v4148_v33  ;;  %v4261_v44 = vsel %vm4191_vm5, %v4182_v38, 0.0 }
 0x5e1   : > { %v4255_v47 = vsel %vm4191_vm5, %v4180_v12, 0.0 }
 0x5e2   : > { %4256 = vadd.xlane.f32.xlu1 %v4255_v47  ;;  %4259 = vadd.xlane.f32.xlu0 %v4258_v48 }
 0x5e4   : > { %v4970_v54 = vpop.f32.mrf.mxu1 }
 0x5e5   : > { %v4073_v56 = vadd.f32 %v4970_v54, %v7156_v0 }
 0x5e6   : > { %v4064_v4 = vpop.f32.mrf.mxu1  ;;  %4262 = vadd.xlane.f32.xlu1 %v4261_v44 }
 0x5e7   : > { %v4065_v51 = vadd.f32 %v7156_v0, %v4064_v4  ;;  %v4153_v26 = vsub.f32 %v4073_v56, %v4121_v5 }
 0x5e8   : > { %v4971_v23 = vpop.f32.mrf.mxu1 }
 0x5e9   : > { %v4151_v52 = vsub.f32 %v4065_v51, %v4119_v29  ;;  %v4076_v61 = vadd.f32 %v4971_v23, %v7156_v0  ;;  %v4185_v15 = vmul.f32 %v4153_v26, %v4153_v26 }
 0x5ea   : > { %v4067_v30 = vpop.f32.mrf.mxu1 }
 0x5eb   : > { %v4068_v3 = vadd.f32 %v7156_v0, %v4067_v30  ;;  %v4183_v19 = vmul.f32 %v4151_v52, %v4151_v52  ;;  %v4154_v41 = vsub.f32 %v4076_v61, %v4122_v8  ;;  %v4270_v14 = vsel %vm4191_vm5, %v4185_v15, 0.0 }
 0x5ed   : > { %v4152_v31 = vsub.f32 %v4068_v3, %v4120_v35  ;;  %v4264_v62 = vsel %vm4191_vm5, %v4183_v19, 0.0  ;;  %v4186_v49 = vmul.f32 %v4154_v41, %v4154_v41 }
 0x5ee   : > { %4265 = vadd.xlane.f32.xlu0 %v4264_v62 }
 0x5ef   : > { %v4184_v42 = vmul.f32 %v4152_v31, %v4152_v31  ;;  %v4273_v55 = vsel %vm4191_vm5, %v4186_v49, 0.0 }
 0x5f1   : > { %v4267_v58 = vsel %vm4191_vm5, %v4184_v42, 0.0 }
 0x5f2   : > { %4268 = vadd.xlane.f32.xlu1 %v4267_v58  ;;  %4271 = vadd.xlane.f32.xlu0 %v4270_v14 }
 0x5f4   : > { %v4974_v24 = vpop.f32.mrf.mxu1 }
 0x5f5   : > { %v4089_v39 = vadd.f32 %v4974_v24, %v7156_v0 }
 0x5f6   : > { %4274 = vadd.xlane.f32.xlu1 %v4273_v55  ;;  %v4080_v63 = vpop.f32.mrf.mxu1 }
 0x5f7   : > { %v4081_v17 = vadd.f32 %v7156_v0, %v4080_v63  ;;  %v4157_v27 = vsub.f32 %v4089_v39, %v4125_v53 }
 0x5f8   : > { %v4975_v59 = vpop.f32.mrf.mxu1 }
 0x5f9   : > { %v4155_v22 = vsub.f32 %v4081_v17, %v4123_v60  ;;  %v4092_v50 = vadd.f32 %v4975_v59, %v7156_v0  ;;  %v4189_v20 = vmul.f32 %v4157_v27, %v4157_v27 }
 0x5fa   : > { %v4083_v36 = vpop.f32.mrf.mxu1 }
 0x5fb   : > { %v4084_v9 = vadd.f32 %v7156_v0, %v4083_v36  ;;  %v4187_v25 = vmul.f32 %v4155_v22, %v4155_v22  ;;  %v4158_v10 = vsub.f32 %v4092_v50, %v4126_v13  ;;  %v4282_v16 = vsel %vm4191_vm5, %v4189_v20, 0.0 }
 0x5fd   : > { %v4156_v28 = vsub.f32 %v4084_v9, %v4124_v7  ;;  %v4276_v2 = vsel %vm4191_vm5, %v4187_v25, 0.0  ;;  %v4190_v45 = vmul.f32 %v4158_v10, %v4158_v10 }
 0x5fe   : > { %4277 = vadd.xlane.f32.xlu0 %v4276_v2 }
 0x5ff   : > { %v4188_v21 = vmul.f32 %v4156_v28, %v4156_v28  ;;  %v4285_v11 = vsel %vm4191_vm5, %v4190_v45, 0.0 }
 0x601   : > { %v4279_v43 = vsel %vm4191_vm5, %v4188_v21, 0.0 }
 0x602   : > { %4280 = vadd.xlane.f32.xlu1 %v4279_v43  ;;  %4283 = vadd.xlane.f32.xlu0 %v4282_v16 }
 0x606   : > { %4286 = vadd.xlane.f32.xlu1 %v4285_v11 }
 0x617   : > { %v4194_v46 = vpop.xlane.xlu0 %4193 }
 0x61b   : > { %v4197_v0 = vpop.xlane.xlu1 %4196  ;;  %v4200_v34 = vpop.xlane.xlu0 %4199 }
 0x61c   : > { %v4288_v1 = vadd.f32 %v4197_v0, %v4194_v46 }
 0x61e   : > { %v4289_v32 = vadd.f32 %v4288_v1, %v4200_v34 }
 0x61f   : > { %v4203_v6 = vpop.xlane.xlu1 %4202 }
 0x620   : > { %v4290_v18 = vadd.f32 %v4289_v32, %v4203_v6 }
 0x627   : > { %v4206_v57 = vpop.xlane.xlu0 %4205 }
 0x628   : > { %v4291_v40 = vadd.f32 %v4290_v18, %v4206_v57 }
 0x62b   : > { %v4209_v33 = vpop.xlane.xlu1 %4208  ;;  %v4212_v12 = vpop.xlane.xlu0 %4211 }
 0x62c   : > { %v4292_v37 = vadd.f32 %v4291_v40, %v4209_v33 }
 0x62e   : > { %v4293_v47 = vadd.f32 %v4292_v37, %v4212_v12 }
 0x62f   : > { %v4215_v48 = vpop.xlane.xlu1 %4214 }
 0x630   : > { %v4294_v54 = vadd.f32 %v4293_v47, %v4215_v48 }
 0x637   : > { %v4218_v38 = vpop.xlane.xlu0 %4217 }
 0x638   : > { %v4295_v5 = vadd.f32 %v4294_v54, %v4218_v38 }
 0x63b   : > { %v4221_v56 = vpop.xlane.xlu1 %4220  ;;  %v4224_v29 = vpop.xlane.xlu0 %4223 }
 0x63c   : > { %v4296_v4 = vadd.f32 %v4295_v5, %v4221_v56 }
 0x63e   : > { %v4297_v44 = vadd.f32 %v4296_v4, %v4224_v29 }
 0x63f   : > { %v4227_v51 = vpop.xlane.xlu1 %4226 }
 0x640   : > { %v4298_v26 = vadd.f32 %v4297_v44, %v4227_v51 }
 0x647   : > { %v4230_v23 = vpop.xlane.xlu0 %4229 }
 0x648   : > { %v4299_v61 = vadd.f32 %v4298_v26, %v4230_v23 }
 0x64b   : > { %v4233_v52 = vpop.xlane.xlu1 %4232  ;;  %v4236_v30 = vpop.xlane.xlu0 %4235 }
 0x64c   : > { %v4300_v8 = vadd.f32 %v4299_v61, %v4233_v52 }
 0x64e   : > { %v4301_v35 = vadd.f32 %v4300_v8, %v4236_v30 }
 0x64f   : > { %v4239_v3 = vpop.xlane.xlu1 %4238 }
 0x650   : > { %v4302_v41 = vadd.f32 %v4301_v35, %v4239_v3 }
 0x657   : > { %v4242_v19 = vpop.xlane.xlu0 %4241 }
 0x658   : > { %v4303_v62 = vadd.f32 %v4302_v41, %v4242_v19 }
 0x65b   : > { %v4245_v31 = vpop.xlane.xlu1 %4244  ;;  %v4248_v42 = vpop.xlane.xlu0 %4247 }
 0x65c   : > { %v4304_v15 = vadd.f32 %v4303_v62, %v4245_v31 }
 0x65e   : > { %v4305_v58 = vadd.f32 %v4304_v15, %v4248_v42 }
 0x65f   : > { %v4251_v14 = vpop.xlane.xlu1 %4250 }
 0x660   : > { %v4306_v24 = vadd.f32 %v4305_v58, %v4251_v14 }
 0x667   : > { %v4254_v49 = vpop.xlane.xlu0 %4253 }
 0x668   : > { %v4307_v55 = vadd.f32 %v4306_v24, %v4254_v49 }
 0x66b   : > { %v4257_v39 = vpop.xlane.xlu1 %4256  ;;  %v4260_v63 = vpop.xlane.xlu0 %4259 }
 0x66c   : > { %v4308_v53 = vadd.f32 %v4307_v55, %v4257_v39 }
 0x66e   : > { %v4309_v60 = vadd.f32 %v4308_v53, %v4260_v63 }
 0x66f   : > { %v4263_v17 = vpop.xlane.xlu1 %4262 }
 0x670   : > { %v4310_v27 = vadd.f32 %v4309_v60, %v4263_v17 }
 0x677   : > { %v4266_v59 = vpop.xlane.xlu0 %4265 }
 0x678   : > { %v4311_v50 = vadd.f32 %v4310_v27, %v4266_v59 }
 0x67b   : > { %v4269_v22 = vpop.xlane.xlu1 %4268  ;;  %v4272_v36 = vpop.xlane.xlu0 %4271 }
 0x67c   : > { %v4312_v13 = vadd.f32 %v4311_v50, %v4269_v22 }
 0x67e   : > { %v4313_v7 = vadd.f32 %v4312_v13, %v4272_v36 }
 0x67f   : > { %v4275_v9 = vpop.xlane.xlu1 %4274 }
 0x680   : > { %v4314_v10 = vadd.f32 %v4313_v7, %v4275_v9 }
 0x687   : > { %v4278_v25 = vpop.xlane.xlu0 %4277 }
 0x688   : > { %v4315_v28 = vadd.f32 %v4314_v10, %v4278_v25 }
 0x68b   : > { %v4281_v2 = vpop.xlane.xlu1 %4280  ;;  %v4284_v21 = vpop.xlane.xlu0 %4283 }
 0x68c   : > { %v4316_v20 = vadd.f32 %v4315_v28, %v4281_v2 }
 0x68e   : > { %v4317_v43 = vadd.f32 %v4316_v20, %v4284_v21 }
 0x68f   : > { %v4287_v16 = vpop.xlane.xlu1 %4286 }
 0x690   : > { %v4318_v45 = vadd.f32 %v4317_v43, %v4287_v16 }
 0x692   : > { %v4319_v11 = vrot.slane %v4318_v45, 4 }
 0x694   : > { %v4320_v46 = vadd.f32 %v4319_v11, %v4318_v45 }
 0x696   : > { %v4321_v0 = vrot.slane %v4320_v46, 2 }
 0x698   : > { %v4322_v1 = vadd.f32 %v4321_v0, %v4320_v46 }
 0x69a   : > { %v4323_v34 = vrot.slane %v4322_v1, 1 }
 0x69c   : > { %v4324_v32 = vadd.f32 %v4323_v34, %v4322_v1 }
 0x69e   : > { %v4325_v6 = vmul.f32 0.0009765625, %v4324_v32 }
 0x6a0   : > { %4326 = vst [vmem:[%s829_s24] sm:$0x1] %v4325_v6 }
 0x6a1 PF: > { %s7340_s5 = sld [smem:[#allocation8_spill]] }
 0x6a2   : > { %s7341_s24 = sld [smem:[#allocation6_spill]] }
 0x6a3   : > { %s7342_s25 = sld [smem:[#allocation7_spill]] }
 0x6a4   : > { %s7343_s26 = sld [smem:[#allocation9_spill]] }
 0x6a5   : > { %s7344_s27 = sld [smem:[#allocation10_spill]] }
 0x6a7   : > { %s27_s28 = sadd.s32 1, %s7340_s5  }
 0x6a8   : > { %p24_p9 = scmp.ge.s32.totalorder %s27_s28, 6  }
 0x6aa   :  { %26 = sbr.rel (!%p24_p9) target bundleno = 11 (0xb), region = 170 }

</bundles_post_ra>
